<compile_context>
chip_gen: v5e
topology: v5e:2x2
jax: 0.10.0
libtpu: 0.0.40
codegen_flags: <defaults>
</compile_context>

<pallas_src>
import jax
import jax.numpy as jnp
from jax.experimental import pallas as pl
from jax.experimental.pallas import tpu as pltpu


def _round_up(x, m):
    return (x + m - 1) // m * m


# ----------------------------------------------------------------------------
# Fused R-GCN layer kernel
# ----------------------------------------------------------------------------
def _make_rgcn_kernel(rel_meta, tile_m, num_tiles):
    """Build the kernel body.

    rel_meta: per-relation static Python metadata
        (src_row_offset, src_rows_padded, dst_tile_lo, dst_tile_hi)
    All offsets/sizes are multiples of tile_m, so every slice below is
    tile-aligned and lane/sublane dense.
    """

    def kernel(a_ref, inv_ref, x_ref, w_ref, ws_ref, b_ref, o_ref, acc_ref):
        i = pl.program_id(0)

        # Bias folded into the accumulator init (saves an epilogue VPU add).
        acc_ref[...] = jnp.broadcast_to(b_ref[...], acc_ref.shape)

        # Relation loop unrolled in-kernel; all slice bounds are Python ints.
        for r, (src_off, src_pad, lo, hi) in enumerate(rel_meta):

            def contrib(r=r, src_off=src_off, src_pad=src_pad):
                # Compact block-sparse A_r strip: only the src columns that can
                # be nonzero (src_pad <= src_pad_max << n_pad).
                a_blk = a_ref[r, :, :src_pad]                     # [tile_m, src_pad]
                x_src = x_ref[pl.ds(src_off, src_pad), :]         # [src_pad, f_in]
                ax = jnp.dot(a_blk, x_src,
                             preferred_element_type=jnp.float32)  # [tile_m, f_in]
                # GraphConv(norm='right'): per-relation 1/in-degree applied in
                # f32 so A itself stays exact 0/1 in bf16.
                ax = ax * inv_ref[r]
                acc_ref[...] += jnp.dot(ax.astype(w_ref.dtype), w_ref[r],
                                        preferred_element_type=jnp.float32)

            if lo == 0 and hi == num_tiles:
                contrib()                                   # active on every tile
            else:
                # Skip relations whose dst type does not own this row tile
                # (their A strip is structurally zero) -> saves the MXU work.
                pl.when(jnp.logical_and(i >= lo, i < hi))(contrib)

        # Epilogue: self-loop on this row tile of the resident X_all, + ReLU.
        row0 = pl.multiple_of(i * tile_m, tile_m)
        x_dst = x_ref[pl.ds(row0, tile_m), :]
        y = acc_ref[...] + jnp.dot(x_dst, ws_ref[...],
                                   preferred_element_type=jnp.float32)
        o_ref[...] = jnp.maximum(y, 0.0).astype(o_ref.dtype)

    return kernel


def fused_rgcn_forward(a_stack, inv_stack, x_all, w_stack, w_self, bias2d, *,
                       rel_meta, tile_m=128):
    """out_all = relu(sum_r inv_r*(A_r @ X_src(r)) @ W_r + X_all @ W_self + b).

    a_stack   : [R, n_pad, src_pad_max]  compact per-relation 0/1 adjacency (bf16)
    inv_stack : [R, n_pad, 1]            per-relation 1/in-degree at dst rows (f32)
    x_all     : [n_pad, f_in_pad]        packed, per-type tile-aligned features
    w_stack   : [R, f_in_pad, f_out_pad]
    w_self    : [f_in_pad, f_out_pad]
    bias2d    : [1, f_out_pad] (f32)
    """
    num_rels, n_pad, src_pad_max = a_stack.shape
    f_in_pad = x_all.shape[1]
    f_out_pad = w_stack.shape[2]
    assert n_pad % tile_m == 0
    num_tiles = n_pad // tile_m

    # --- VMEM accounting -> vmem_limit_bytes (budget, don't guess) ----------
    bpe = a_stack.dtype.itemsize
    a_blk = num_rels * tile_m * src_pad_max * bpe
    inv_blk = num_rels * tile_m * 4
    resident = ((n_pad * f_in_pad + num_rels * f_in_pad * f_out_pad
                 + f_in_pad * f_out_pad) * bpe + f_out_pad * 4)
    out_blk = tile_m * f_out_pad * 2
    acc_b = tile_m * f_out_pad * 4
    working = 2 * (a_blk + inv_blk + resident + out_blk) + acc_b
    vmem_limit = int(min(64 * 1024 * 1024, max(32 * 1024 * 1024, 2 * working)))

    # --- cost estimate so XLA overlaps host-side packing with the kernel ----
    flops = 2 * n_pad * f_in_pad * f_out_pad                 # self-loop
    for (_off, src_pad, lo, hi) in rel_meta:
        dst_rows = (hi - lo) * tile_m
        flops += 2 * dst_rows * src_pad * f_in_pad           # A_r @ X_src
        flops += 2 * dst_rows * f_in_pad * f_out_pad         # (.) @ W_r
    bytes_accessed = (a_stack.size * bpe + x_all.size * bpe + w_stack.size * bpe
                      + w_self.size * bpe + inv_stack.size * 4
                      + bias2d.size * 4 + n_pad * f_out_pad * 2)

    kernel = _make_rgcn_kernel(rel_meta, tile_m, num_tiles)
    return pl.pallas_call(
        kernel,
        out_shape=jax.ShapeDtypeStruct((n_pad, f_out_pad), jnp.bfloat16),
        grid=(num_tiles,),
        in_specs=[
            # compact per-relation A row strips for this row tile
            pl.BlockSpec((num_rels, tile_m, src_pad_max), lambda i: (0, i, 0)),
            # per-relation right-norm scales for this row tile
            pl.BlockSpec((num_rels, tile_m, 1), lambda i: (0, i, 0)),
            # X_all / W_stack / W_self / bias: constant index -> VMEM resident.
            # TODO(synk): at large N single-buffer these (pipeline_mode=
            # pl.Buffered(1)) and add a K grid axis so v7x's 64 MiB holds.
            pl.BlockSpec((n_pad, f_in_pad), lambda i: (0, 0)),
            pl.BlockSpec((num_rels, f_in_pad, f_out_pad), lambda i: (0, 0, 0)),
            pl.BlockSpec((f_in_pad, f_out_pad), lambda i: (0, 0)),
            pl.BlockSpec((1, f_out_pad), lambda i: (0, 0)),
        ],
        out_specs=pl.BlockSpec((tile_m, f_out_pad), lambda i: (i, 0)),
        scratch_shapes=[pltpu.VMEM((tile_m, f_out_pad), jnp.float32)],
        compiler_params=pltpu.CompilerParams(
            dimension_semantics=("parallel",),   # row tiles shard over v7x TCs
            vmem_limit_bytes=vmem_limit),
        cost_estimate=pl.CostEstimate(flops=int(flops), transcendentals=0,
                                      bytes_accessed=int(bytes_accessed)),
    )(a_stack, inv_stack, x_all, w_stack, w_self, bias2d)


# ----------------------------------------------------------------------------
# RelGraphConvLayer (JAX / Pallas version)
# ----------------------------------------------------------------------------
class RelGraphConvLayerPallas:
    """Matches RelGraphConvLayer(in_feats, out_feats, rel_names, num_bases,
    norm='right', weight=True, bias=True, activation=relu, dropout=None,
    self_loop=True)."""

    NTYPES = ("author", "institution", "paper")

    def __init__(self, in_feats, out_feats, rel_etypes, num_bases, key,
                 compute_dtype=jnp.bfloat16, tile_m=128):
        self.in_feats = in_feats
        self.out_feats = out_feats
        self.rel_etypes = list(rel_etypes)   # list of (src, rel, dst)
        self.num_rels = len(rel_etypes)
        self.num_bases = num_bases
        self.use_basis = num_bases < self.num_rels
        self.compute_dtype = compute_dtype   # bf16 matmul inputs, f32 accumulate
        # tile_m=128 keeps >=2 row tiles for v7x megacore sharding; raise to
        # 256/512 on single-core v5e/v6e to amortize per-step overhead.
        self.tile_m = tile_m

        k1, k2, k3 = jax.random.split(key, 3)
        gain = jnp.sqrt(2.0)                 # xavier-uniform, relu gain
        lim = gain * jnp.sqrt(6.0 / (in_feats + out_feats))
        if self.use_basis:
            # dgl WeightBasis: bases [B, in, out], coeffs [R, B]
            self.bases = jax.random.uniform(
                k1, (num_bases, in_feats, out_feats), jnp.float32, -lim, lim)
            self.coeffs = jax.random.uniform(
                k2, (self.num_rels, num_bases), jnp.float32, -1.0, 1.0)
        else:
            self.weight = jax.random.uniform(
                k1, (self.num_rels, in_feats, out_feats), jnp.float32, -lim, lim)
        self.self_loop_weight = jax.random.uniform(
            k3, (in_feats, out_feats), jnp.float32, -lim, lim)
        self.bias = jnp.zeros((out_feats,), jnp.float32)   # nn.init.zeros_

    def rel_weights(self):
        if self.use_basis:
            return jnp.einsum("rb,bio->rio", self.coeffs, self.bases)
        return self.weight

    def forward(self, adj, inputs):
        """adj:    {(src, rel, dst): A [N_dst, N_src]}  0/1 adjacency
           inputs: {ntype: X [N_ntype, in_feats]}"""
        f_in, f_out = self.in_feats, self.out_feats
        tile_m = self.tile_m
        f_in_pad = _round_up(f_in, 128)
        f_out_pad = _round_up(f_out, 128)

        # Per-type row padding to whole row tiles -> every type owns an integer
        # number of tiles and all per-relation blocks are tile aligned.
        sizes = {nt: inputs[nt].shape[0] for nt in self.NTYPES}
        pads = {nt: _round_up(max(sizes[nt], 1), tile_m) for nt in self.NTYPES}
        offsets, off = {}, 0
        for nt in self.NTYPES:
            offsets[nt] = off
            off += pads[nt]
        n_pad = off
        src_pad_max = max(pads.values())

        # Packed node features (all types) in the global row space.
        x_all = jnp.zeros((n_pad, f_in_pad), jnp.float32)
        for nt in self.NTYPES:
            x_all = x_all.at[offsets[nt]:offsets[nt] + sizes[nt], :f_in].set(
                inputs[nt])

        # Block-sparse adjacency: relation r's 0/1 block lives at the dst
        # type's global rows, src columns start at 0 (NOT the dense
        # n_pad x n_pad embedding). Right-norm 1/in-degree goes in inv_stack.
        a_stack = jnp.zeros((self.num_rels, n_pad, src_pad_max), jnp.float32)
        inv_stack = jnp.ones((self.num_rels, n_pad, 1), jnp.float32)
        rel_meta = []
        for r, (src, rel, dst) in enumerate(self.rel_etypes):
            a = adj[(src, rel, dst)]
            a_stack = a_stack.at[
                r, offsets[dst]:offsets[dst] + sizes[dst], :sizes[src]].set(a)
            inv = 1.0 / jnp.maximum(a.sum(axis=1, keepdims=True), 1.0)
            inv_stack = inv_stack.at[
                r, offsets[dst]:offsets[dst] + sizes[dst], :].set(inv)
            rel_meta.append((offsets[src], pads[src],
                             offsets[dst] // tile_m,
                             (offsets[dst] + pads[dst]) // tile_m))
        rel_meta = tuple(rel_meta)

        # Pad weights / bias to lane-dense multiples of 128.
        w = self.rel_weights()
        w_stack = jnp.zeros((self.num_rels, f_in_pad, f_out_pad), jnp.float32)
        w_stack = w_stack.at[:, :f_in, :f_out].set(w)
        w_self = jnp.zeros((f_in_pad, f_out_pad), jnp.float32)
        w_self = w_self.at[:f_in, :f_out].set(self.self_loop_weight)
        bias2d = jnp.zeros((1, f_out_pad), jnp.float32).at[0, :f_out].set(
            self.bias)

        cd = self.compute_dtype
        out_all = fused_rgcn_forward(
            a_stack.astype(cd), inv_stack, x_all.astype(cd),
            w_stack.astype(cd), w_self.astype(cd), bias2d,
            rel_meta=rel_meta, tile_m=tile_m)

        # TODO(synk): dropout is None in this config (stateful PRNG dropout
        # omitted); dgl block-graph (hg.is_block) dst-node slicing not modeled:
        # full-graph inputs_dst == inputs.
        outs = {nt: out_all[offsets[nt]:offsets[nt] + sizes[nt], :f_out]
                    .astype(jnp.float32)
                for nt in self.NTYPES}
        return outs["author"], outs["institution"], outs["paper"]


# ----------------------------------------------------------------------------
# Pure-JAX f32 reference for verification
# ----------------------------------------------------------------------------
def reference_forward(layer, adj, inputs):
    hi = jax.lax.Precision.HIGHEST
    weights = layer.rel_weights()
    z = {nt: jnp.zeros((inputs[nt].shape[0], layer.out_feats), jnp.float32)
         for nt in layer.NTYPES}
    for r, (src, _rel, dst) in enumerate(layer.rel_etypes):
        a = adj[(src, _rel, dst)]
        a_norm = a / jnp.maximum(a.sum(axis=1, keepdims=True), 1.0)  # norm='right'
        xw = jnp.dot(inputs[src], weights[r], precision=hi)
        z[dst] = z[dst] + jnp.dot(a_norm, xw, precision=hi)
    out = {}
    for nt in layer.NTYPES:
        y = (z[nt]
             + jnp.dot(inputs[nt], layer.self_loop_weight, precision=hi)
             + layer.bias)
        out[nt] = jnp.maximum(y, 0.0)
    return out["author"], out["institution"], out["paper"]


# ----------------------------------------------------------------------------
# Main
# ----------------------------------------------------------------------------
if __name__ == "__main__":
    key = jax.random.PRNGKey(0)

    in_feats, out_feats = 32, 64
    n_author, n_inst, n_paper = 64, 16, 128
    nnodes = {"author": n_author, "institution": n_inst, "paper": n_paper}

    rel_etypes = [
        ("author", "writes", "paper"),
        ("paper", "rev_writes", "author"),
        ("author", "affiliated_with", "institution"),
        ("institution", "rev_affiliated_with", "author"),
        ("paper", "cites", "paper"),
    ]
    num_bases = 2  # < num_rels -> exercises the weight-basis decomposition

    k_feat, k_adj, k_param = jax.random.split(key, 3)

    # node features
    ka, ki, kp = jax.random.split(k_feat, 3)
    inputs = {
        "author": jax.random.normal(ka, (n_author, in_feats), jnp.float32),
        "institution": jax.random.normal(ki, (n_inst, in_feats), jnp.float32),
        "paper": jax.random.normal(kp, (n_paper, in_feats), jnp.float32),
    }

    # random 0/1 graphs (dense per-relation adjacency); the layer applies the
    # dgl GraphConv norm='right' (1/in-degree, clamped to >= 1) itself.
    adj = {}
    adj_keys = jax.random.split(k_adj, len(rel_etypes))
    for (src, rel, dst), kk in zip(rel_etypes, adj_keys):
        a = (jax.random.uniform(kk, (nnodes[dst], nnodes[src])) < 0.3
             ).astype(jnp.float32)
        adj[(src, rel, dst)] = a

    layer = RelGraphConvLayerPallas(in_feats, out_feats, rel_etypes,
                                    num_bases, k_param)

    out_author, out_inst, out_paper = layer.forward(adj, inputs)
    jax.block_until_ready((out_author, out_inst, out_paper))

    ref_author, ref_inst, ref_paper = reference_forward(layer, adj, inputs)
    # bf16 MXU inputs / bf16 output vs f32 reference -> relaxed tolerance
    assert jnp.allclose(out_author, ref_author, atol=5e-2, rtol=5e-2)
    assert jnp.allclose(out_inst, ref_inst, atol=5e-2, rtol=5e-2)
    assert jnp.allclose(out_paper, ref_paper, atol=5e-2, rtol=5e-2)

    print("KERNEL_OK")
</pallas_src>

<mosaic_0001>
module attributes {stable_mosaic.version = 11 : i64} {
  func.func @kernel(%arg0: i32, %arg1: memref<5x128x128xbf16, #tpu.memory_space<vmem>>, %arg2: memref<5x128x1xf32, #tpu.memory_space<vmem>>, %arg3: memref<384x128xbf16, #tpu.memory_space<vmem>>, %arg4: memref<5x128x128xbf16, #tpu.memory_space<vmem>>, %arg5: memref<128x128xbf16, #tpu.memory_space<vmem>>, %arg6: memref<1x128xf32, #tpu.memory_space<vmem>>, %arg7: memref<128x128xbf16, #tpu.memory_space<vmem>>, %arg8: memref<128x128xf32, #tpu.memory_space<vmem>>) attributes {dimension_semantics = [#tpu.dimension_semantics<parallel>], iteration_bounds = array<i64: 3>, scalar_prefetch = 0 : i64, scratch_operands = 1 : i64, tpu.core_type = #tpu.core_type<tc>, window_params = [{transform_indices = @transform_0, window_bounds = array<i64: 5, 128, 128>}, {transform_indices = @transform_1, window_bounds = array<i64: 5, 128, 1>}, {pipeline_mode = #tpu.pipeline_mode<synchronous>, transform_indices = @transform_2, window_bounds = array<i64: 384, 128>}, {pipeline_mode = #tpu.pipeline_mode<synchronous>, transform_indices = @transform_3, window_bounds = array<i64: 5, 128, 128>}, {pipeline_mode = #tpu.pipeline_mode<synchronous>, transform_indices = @transform_4, window_bounds = array<i64: 128, 128>}, {pipeline_mode = #tpu.pipeline_mode<synchronous>, transform_indices = @transform_5, window_bounds = array<i64: 1, 128>}, {transform_indices = @transform_6, window_bounds = array<i64: 128, 128>}]} {
    %c0 = arith.constant 0 : index
    %c0_0 = arith.constant 0 : index
    %0 = vector.load %arg6[%c0, %c0_0] : memref<1x128xf32, #tpu.memory_space<vmem>>, vector<1x128xf32>
    %1 = vector.shape_cast %0 : vector<1x128xf32> to vector<1x128xf32>
    %2 = vector.broadcast %1 : vector<1x128xf32> to vector<128x128xf32>
    %c0_1 = arith.constant 0 : index
    %c0_2 = arith.constant 0 : index
    %3 = vector.load %arg8[%c0_1, %c0_2] : memref<128x128xf32, #tpu.memory_space<vmem>>, vector<128x128xf32>
    tpu.vector_store %arg8[%c0_1, %c0_2], %2 {strides = array<i32>} : memref<128x128xf32, #tpu.memory_space<vmem>>, vector<128x128xf32>,
    %c2_i32 = arith.constant 2 : i32
    %4 = arith.cmpi sge, %arg0, %c2_i32 : i32
    %c3_i32 = arith.constant 3 : i32
    %5 = arith.cmpi slt, %arg0, %c3_i32 : i32
    %6 = arith.andi %4, %5 : i1
    %7 = arith.extui %6 : i1 to i32
    %c0_i32 = arith.constant 0 : i32
    %8 = arith.cmpi ne, %7, %c0_i32 : i32
    scf.if %8 {
      %c0_22 = arith.constant 0 : index
      %c0_23 = arith.constant 0 : index
      %c0_24 = arith.constant 0 : index
      %41 = vector.load %arg1[%c0_22, %c0_23, %c0_24] : memref<5x128x128xbf16, #tpu.memory_space<vmem>>, vector<1x128x128xbf16>
      %42 = vector.shape_cast %41 : vector<1x128x128xbf16> to vector<128x128xbf16>
      %c0_25 = arith.constant 0 : index
      %c0_26 = arith.constant 0 : index
      %43 = vector.load %arg3[%c0_25, %c0_26] : memref<384x128xbf16, #tpu.memory_space<vmem>>, vector<128x128xbf16>
      %cst_27 = arith.constant dense<0.000000e+00> : vector<128x128xf32>
      %44 = tpu.matmul %42, %43, %cst_27 {dimension_numbers = #tpu.dot_dimension_numbers<[1], [0], [0], [1], [0, 0, 1, 1], [], []>} : vector<128x128xbf16>, vector<128x128xbf16>, vector<128x128xf32> -> vector<128x128xf32>
      %c0_28 = arith.constant 0 : index
      %c0_29 = arith.constant 0 : index
      %c0_30 = arith.constant 0 : index
      %45 = vector.load %arg2[%c0_28, %c0_29, %c0_30] : memref<5x128x1xf32, #tpu.memory_space<vmem>>, vector<1x128x1xf32>
      %46 = vector.shape_cast %45 : vector<1x128x1xf32> to vector<128x1xf32>
      %47 = vector.broadcast %46 : vector<128x1xf32> to vector<128x128xf32>
      %48 = arith.mulf %44, %47 : vector<128x128xf32>
      %c0_31 = arith.constant 0 : index
      %c0_32 = arith.constant 0 : index
      %49 = vector.load %arg8[%c0_31, %c0_32] : memref<128x128xf32, #tpu.memory_space<vmem>>, vector<128x128xf32>
      %50 = arith.truncf %48 : vector<128x128xf32> to vector<128x128xbf16>
      %c0_33 = arith.constant 0 : index
      %c0_34 = arith.constant 0 : index
      %c0_35 = arith.constant 0 : index
      %51 = vector.load %arg4[%c0_33, %c0_34, %c0_35] : memref<5x128x128xbf16, #tpu.memory_space<vmem>>, vector<1x128x128xbf16>
      %52 = vector.shape_cast %51 : vector<1x128x128xbf16> to vector<128x128xbf16>
      %cst_36 = arith.constant dense<0.000000e+00> : vector<128x128xf32>
      %53 = tpu.matmul %50, %52, %cst_36 {dimension_numbers = #tpu.dot_dimension_numbers<[1], [0], [0], [1], [0, 0, 1, 1], [], []>} : vector<128x128xbf16>, vector<128x128xbf16>, vector<128x128xf32> -> vector<128x128xf32>
      %54 = arith.addf %49, %53 : vector<128x128xf32>
      %c0_37 = arith.constant 0 : index
      %c0_38 = arith.constant 0 : index
      %55 = vector.load %arg8[%c0_37, %c0_38] : memref<128x128xf32, #tpu.memory_space<vmem>>, vector<128x128xf32>
      tpu.vector_store %arg8[%c0_37, %c0_38], %54 {strides = array<i32>} : memref<128x128xf32, #tpu.memory_space<vmem>>, vector<128x128xf32>,
    } else {
    }
    %c0_i32_3 = arith.constant 0 : i32
    %9 = arith.cmpi sge, %arg0, %c0_i32_3 : i32
    %c1_i32 = arith.constant 1 : i32
    %10 = arith.cmpi slt, %arg0, %c1_i32 : i32
    %11 = arith.andi %9, %10 : i1
    %12 = arith.extui %11 : i1 to i32
    %c0_i32_4 = arith.constant 0 : i32
    %13 = arith.cmpi ne, %12, %c0_i32_4 : i32
    scf.if %13 {
      %c1 = arith.constant 1 : index
      %c0_22 = arith.constant 0 : index
      %c0_23 = arith.constant 0 : index
      %41 = vector.load %arg1[%c1, %c0_22, %c0_23] : memref<5x128x128xbf16, #tpu.memory_space<vmem>>, vector<1x128x128xbf16>
      %42 = vector.shape_cast %41 : vector<1x128x128xbf16> to vector<128x128xbf16>
      %c256 = arith.constant 256 : index
      %c0_24 = arith.constant 0 : index
      %43 = vector.load %arg3[%c256, %c0_24] : memref<384x128xbf16, #tpu.memory_space<vmem>>, vector<128x128xbf16>
      %cst_25 = arith.constant dense<0.000000e+00> : vector<128x128xf32>
      %44 = tpu.matmul %42, %43, %cst_25 {dimension_numbers = #tpu.dot_dimension_numbers<[1], [0], [0], [1], [0, 0, 1, 1], [], []>} : vector<128x128xbf16>, vector<128x128xbf16>, vector<128x128xf32> -> vector<128x128xf32>
      %c1_26 = arith.constant 1 : index
      %c0_27 = arith.constant 0 : index
      %c0_28 = arith.constant 0 : index
      %45 = vector.load %arg2[%c1_26, %c0_27, %c0_28] : memref<5x128x1xf32, #tpu.memory_space<vmem>>, vector<1x128x1xf32>
      %46 = vector.shape_cast %45 : vector<1x128x1xf32> to vector<128x1xf32>
      %47 = vector.broadcast %46 : vector<128x1xf32> to vector<128x128xf32>
      %48 = arith.mulf %44, %47 : vector<128x128xf32>
      %c0_29 = arith.constant 0 : index
      %c0_30 = arith.constant 0 : index
      %49 = vector.load %arg8[%c0_29, %c0_30] : memref<128x128xf32, #tpu.memory_space<vmem>>, vector<128x128xf32>
      %50 = arith.truncf %48 : vector<128x128xf32> to vector<128x128xbf16>
      %c1_31 = arith.constant 1 : index
      %c0_32 = arith.constant 0 : index
      %c0_33 = arith.constant 0 : index
      %51 = vector.load %arg4[%c1_31, %c0_32, %c0_33] : memref<5x128x128xbf16, #tpu.memory_space<vmem>>, vector<1x128x128xbf16>
      %52 = vector.shape_cast %51 : vector<1x128x128xbf16> to vector<128x128xbf16>
      %cst_34 = arith.constant dense<0.000000e+00> : vector<128x128xf32>
      %53 = tpu.matmul %50, %52, %cst_34 {dimension_numbers = #tpu.dot_dimension_numbers<[1], [0], [0], [1], [0, 0, 1, 1], [], []>} : vector<128x128xbf16>, vector<128x128xbf16>, vector<128x128xf32> -> vector<128x128xf32>
      %54 = arith.addf %49, %53 : vector<128x128xf32>
      %c0_35 = arith.constant 0 : index
      %c0_36 = arith.constant 0 : index
      %55 = vector.load %arg8[%c0_35, %c0_36] : memref<128x128xf32, #tpu.memory_space<vmem>>, vector<128x128xf32>
      tpu.vector_store %arg8[%c0_35, %c0_36], %54 {strides = array<i32>} : memref<128x128xf32, #tpu.memory_space<vmem>>, vector<128x128xf32>,
    } else {
    }
    %c1_i32_5 = arith.constant 1 : i32
    %14 = arith.cmpi sge, %arg0, %c1_i32_5 : i32
    %c2_i32_6 = arith.constant 2 : i32
    %15 = arith.cmpi slt, %arg0, %c2_i32_6 : i32
    %16 = arith.andi %14, %15 : i1
    %17 = arith.extui %16 : i1 to i32
    %c0_i32_7 = arith.constant 0 : i32
    %18 = arith.cmpi ne, %17, %c0_i32_7 : i32
    scf.if %18 {
      %c2 = arith.constant 2 : index
      %c0_22 = arith.constant 0 : index
      %c0_23 = arith.constant 0 : index
      %41 = vector.load %arg1[%c2, %c0_22, %c0_23] : memref<5x128x128xbf16, #tpu.memory_space<vmem>>, vector<1x128x128xbf16>
      %42 = vector.shape_cast %41 : vector<1x128x128xbf16> to vector<128x128xbf16>
      %c0_24 = arith.constant 0 : index
      %c0_25 = arith.constant 0 : index
      %43 = vector.load %arg3[%c0_24, %c0_25] : memref<384x128xbf16, #tpu.memory_space<vmem>>, vector<128x128xbf16>
      %cst_26 = arith.constant dense<0.000000e+00> : vector<128x128xf32>
      %44 = tpu.matmul %42, %43, %cst_26 {dimension_numbers = #tpu.dot_dimension_numbers<[1], [0], [0], [1], [0, 0, 1, 1], [], []>} : vector<128x128xbf16>, vector<128x128xbf16>, vector<128x128xf32> -> vector<128x128xf32>
      %c2_27 = arith.constant 2 : index
      %c0_28 = arith.constant 0 : index
      %c0_29 = arith.constant 0 : index
      %45 = vector.load %arg2[%c2_27, %c0_28, %c0_29] : memref<5x128x1xf32, #tpu.memory_space<vmem>>, vector<1x128x1xf32>
      %46 = vector.shape_cast %45 : vector<1x128x1xf32> to vector<128x1xf32>
      %47 = vector.broadcast %46 : vector<128x1xf32> to vector<128x128xf32>
      %48 = arith.mulf %44, %47 : vector<128x128xf32>
      %c0_30 = arith.constant 0 : index
      %c0_31 = arith.constant 0 : index
      %49 = vector.load %arg8[%c0_30, %c0_31] : memref<128x128xf32, #tpu.memory_space<vmem>>, vector<128x128xf32>
      %50 = arith.truncf %48 : vector<128x128xf32> to vector<128x128xbf16>
      %c2_32 = arith.constant 2 : index
      %c0_33 = arith.constant 0 : index
      %c0_34 = arith.constant 0 : index
      %51 = vector.load %arg4[%c2_32, %c0_33, %c0_34] : memref<5x128x128xbf16, #tpu.memory_space<vmem>>, vector<1x128x128xbf16>
      %52 = vector.shape_cast %51 : vector<1x128x128xbf16> to vector<128x128xbf16>
      %cst_35 = arith.constant dense<0.000000e+00> : vector<128x128xf32>
      %53 = tpu.matmul %50, %52, %cst_35 {dimension_numbers = #tpu.dot_dimension_numbers<[1], [0], [0], [1], [0, 0, 1, 1], [], []>} : vector<128x128xbf16>, vector<128x128xbf16>, vector<128x128xf32> -> vector<128x128xf32>
      %54 = arith.addf %49, %53 : vector<128x128xf32>
      %c0_36 = arith.constant 0 : index
      %c0_37 = arith.constant 0 : index
      %55 = vector.load %arg8[%c0_36, %c0_37] : memref<128x128xf32, #tpu.memory_space<vmem>>, vector<128x128xf32>
      tpu.vector_store %arg8[%c0_36, %c0_37], %54 {strides = array<i32>} : memref<128x128xf32, #tpu.memory_space<vmem>>, vector<128x128xf32>,
    } else {
    }
    %c0_i32_8 = arith.constant 0 : i32
    %19 = arith.cmpi sge, %arg0, %c0_i32_8 : i32
    %c1_i32_9 = arith.constant 1 : i32
    %20 = arith.cmpi slt, %arg0, %c1_i32_9 : i32
    %21 = arith.andi %19, %20 : i1
    %22 = arith.extui %21 : i1 to i32
    %c0_i32_10 = arith.constant 0 : i32
    %23 = arith.cmpi ne, %22, %c0_i32_10 : i32
    scf.if %23 {
      %c3 = arith.constant 3 : index
      %c0_22 = arith.constant 0 : index
      %c0_23 = arith.constant 0 : index
      %41 = vector.load %arg1[%c3, %c0_22, %c0_23] : memref<5x128x128xbf16, #tpu.memory_space<vmem>>, vector<1x128x128xbf16>
      %42 = vector.shape_cast %41 : vector<1x128x128xbf16> to vector<128x128xbf16>
      %c128 = arith.constant 128 : index
      %c0_24 = arith.constant 0 : index
      %43 = vector.load %arg3[%c128, %c0_24] : memref<384x128xbf16, #tpu.memory_space<vmem>>, vector<128x128xbf16>
      %cst_25 = arith.constant dense<0.000000e+00> : vector<128x128xf32>
      %44 = tpu.matmul %42, %43, %cst_25 {dimension_numbers = #tpu.dot_dimension_numbers<[1], [0], [0], [1], [0, 0, 1, 1], [], []>} : vector<128x128xbf16>, vector<128x128xbf16>, vector<128x128xf32> -> vector<128x128xf32>
      %c3_26 = arith.constant 3 : index
      %c0_27 = arith.constant 0 : index
      %c0_28 = arith.constant 0 : index
      %45 = vector.load %arg2[%c3_26, %c0_27, %c0_28] : memref<5x128x1xf32, #tpu.memory_space<vmem>>, vector<1x128x1xf32>
      %46 = vector.shape_cast %45 : vector<1x128x1xf32> to vector<128x1xf32>
      %47 = vector.broadcast %46 : vector<128x1xf32> to vector<128x128xf32>
      %48 = arith.mulf %44, %47 : vector<128x128xf32>
      %c0_29 = arith.constant 0 : index
      %c0_30 = arith.constant 0 : index
      %49 = vector.load %arg8[%c0_29, %c0_30] : memref<128x128xf32, #tpu.memory_space<vmem>>, vector<128x128xf32>
      %50 = arith.truncf %48 : vector<128x128xf32> to vector<128x128xbf16>
      %c3_31 = arith.constant 3 : index
      %c0_32 = arith.constant 0 : index
      %c0_33 = arith.constant 0 : index
      %51 = vector.load %arg4[%c3_31, %c0_32, %c0_33] : memref<5x128x128xbf16, #tpu.memory_space<vmem>>, vector<1x128x128xbf16>
      %52 = vector.shape_cast %51 : vector<1x128x128xbf16> to vector<128x128xbf16>
      %cst_34 = arith.constant dense<0.000000e+00> : vector<128x128xf32>
      %53 = tpu.matmul %50, %52, %cst_34 {dimension_numbers = #tpu.dot_dimension_numbers<[1], [0], [0], [1], [0, 0, 1, 1], [], []>} : vector<128x128xbf16>, vector<128x128xbf16>, vector<128x128xf32> -> vector<128x128xf32>
      %54 = arith.addf %49, %53 : vector<128x128xf32>
      %c0_35 = arith.constant 0 : index
      %c0_36 = arith.constant 0 : index
      %55 = vector.load %arg8[%c0_35, %c0_36] : memref<128x128xf32, #tpu.memory_space<vmem>>, vector<128x128xf32>
      tpu.vector_store %arg8[%c0_35, %c0_36], %54 {strides = array<i32>} : memref<128x128xf32, #tpu.memory_space<vmem>>, vector<128x128xf32>,
    } else {
    }
    %c2_i32_11 = arith.constant 2 : i32
    %24 = arith.cmpi sge, %arg0, %c2_i32_11 : i32
    %c3_i32_12 = arith.constant 3 : i32
    %25 = arith.cmpi slt, %arg0, %c3_i32_12 : i32
    %26 = arith.andi %24, %25 : i1
    %27 = arith.extui %26 : i1 to i32
    %c0_i32_13 = arith.constant 0 : i32
    %28 = arith.cmpi ne, %27, %c0_i32_13 : i32
    scf.if %28 {
      %c4 = arith.constant 4 : index
      %c0_22 = arith.constant 0 : index
      %c0_23 = arith.constant 0 : index
      %41 = vector.load %arg1[%c4, %c0_22, %c0_23] : memref<5x128x128xbf16, #tpu.memory_space<vmem>>, vector<1x128x128xbf16>
      %42 = vector.shape_cast %41 : vector<1x128x128xbf16> to vector<128x128xbf16>
      %c256 = arith.constant 256 : index
      %c0_24 = arith.constant 0 : index
      %43 = vector.load %arg3[%c256, %c0_24] : memref<384x128xbf16, #tpu.memory_space<vmem>>, vector<128x128xbf16>
      %cst_25 = arith.constant dense<0.000000e+00> : vector<128x128xf32>
      %44 = tpu.matmul %42, %43, %cst_25 {dimension_numbers = #tpu.dot_dimension_numbers<[1], [0], [0], [1], [0, 0, 1, 1], [], []>} : vector<128x128xbf16>, vector<128x128xbf16>, vector<128x128xf32> -> vector<128x128xf32>
      %c4_26 = arith.constant 4 : index
      %c0_27 = arith.constant 0 : index
      %c0_28 = arith.constant 0 : index
      %45 = vector.load %arg2[%c4_26, %c0_27, %c0_28] : memref<5x128x1xf32, #tpu.memory_space<vmem>>, vector<1x128x1xf32>
      %46 = vector.shape_cast %45 : vector<1x128x1xf32> to vector<128x1xf32>
      %47 = vector.broadcast %46 : vector<128x1xf32> to vector<128x128xf32>
      %48 = arith.mulf %44, %47 : vector<128x128xf32>
      %c0_29 = arith.constant 0 : index
      %c0_30 = arith.constant 0 : index
      %49 = vector.load %arg8[%c0_29, %c0_30] : memref<128x128xf32, #tpu.memory_space<vmem>>, vector<128x128xf32>
      %50 = arith.truncf %48 : vector<128x128xf32> to vector<128x128xbf16>
      %c4_31 = arith.constant 4 : index
      %c0_32 = arith.constant 0 : index
      %c0_33 = arith.constant 0 : index
      %51 = vector.load %arg4[%c4_31, %c0_32, %c0_33] : memref<5x128x128xbf16, #tpu.memory_space<vmem>>, vector<1x128x128xbf16>
      %52 = vector.shape_cast %51 : vector<1x128x128xbf16> to vector<128x128xbf16>
      %cst_34 = arith.constant dense<0.000000e+00> : vector<128x128xf32>
      %53 = tpu.matmul %50, %52, %cst_34 {dimension_numbers = #tpu.dot_dimension_numbers<[1], [0], [0], [1], [0, 0, 1, 1], [], []>} : vector<128x128xbf16>, vector<128x128xbf16>, vector<128x128xf32> -> vector<128x128xf32>
      %54 = arith.addf %49, %53 : vector<128x128xf32>
      %c0_35 = arith.constant 0 : index
      %c0_36 = arith.constant 0 : index
      %55 = vector.load %arg8[%c0_35, %c0_36] : memref<128x128xf32, #tpu.memory_space<vmem>>, vector<128x128xf32>
      tpu.vector_store %arg8[%c0_35, %c0_36], %54 {strides = array<i32>} : memref<128x128xf32, #tpu.memory_space<vmem>>, vector<128x128xf32>,
    } else {
    }
    %c128_i32 = arith.constant 128 : i32
    %29 = arith.muli %arg0, %c128_i32 : i32
    %30 = tpu.assume_multiple %29, 128 : i32
    %31 = arith.index_cast %30 : i32 to index
    %c0_14 = arith.constant 0 : index
    %32 = vector.load %arg3[%31, %c0_14] : memref<384x128xbf16, #tpu.memory_space<vmem>>, vector<128x128xbf16>
    %c0_15 = arith.constant 0 : index
    %c0_16 = arith.constant 0 : index
    %33 = vector.load %arg8[%c0_15, %c0_16] : memref<128x128xf32, #tpu.memory_space<vmem>>, vector<128x128xf32>
    %c0_17 = arith.constant 0 : index
    %c0_18 = arith.constant 0 : index
    %34 = vector.load %arg5[%c0_17, %c0_18] : memref<128x128xbf16, #tpu.memory_space<vmem>>, vector<128x128xbf16>
    %cst = arith.constant dense<0.000000e+00> : vector<128x128xf32>
    %35 = tpu.matmul %32, %34, %cst {dimension_numbers = #tpu.dot_dimension_numbers<[1], [0], [0], [1], [0, 0, 1, 1], [], []>} : vector<128x128xbf16>, vector<128x128xbf16>, vector<128x128xf32> -> vector<128x128xf32>
    %36 = arith.addf %33, %35 : vector<128x128xf32>
    %cst_19 = arith.constant 0.000000e+00 : f32
    %37 = vector.broadcast %cst_19 : f32 to vector<128x128xf32>
    %38 = arith.maximumf %36, %37 : vector<128x128xf32>
    %39 = arith.truncf %38 : vector<128x128xf32> to vector<128x128xbf16>
    %c0_20 = arith.constant 0 : index
    %c0_21 = arith.constant 0 : index
    %40 = vector.load %arg7[%c0_20, %c0_21] : memref<128x128xbf16, #tpu.memory_space<vmem>>, vector<128x128xbf16>
    tpu.vector_store %arg7[%c0_20, %c0_21], %39 {strides = array<i32>} : memref<128x128xbf16, #tpu.memory_space<vmem>>, vector<128x128xbf16>,
    return
  }
  func.func @transform_0(%arg0: i32) -> (i32, i32, i32) {
    %c0_i32 = arith.constant 0 : i32
    %c0_i32_0 = arith.constant 0 : i32
    %c0_i32_1 = arith.constant 0 : i32
    return %c0_i32, %arg0, %c0_i32_0 : i32, i32, i32
  }
  func.func @transform_1(%arg0: i32) -> (i32, i32, i32) {
    %c0_i32 = arith.constant 0 : i32
    %c0_i32_0 = arith.constant 0 : i32
    %c0_i32_1 = arith.constant 0 : i32
    return %c0_i32, %arg0, %c0_i32_0 : i32, i32, i32
  }
  func.func @transform_2(%arg0: i32) -> (i32, i32) {
    %c0_i32 = arith.constant 0 : i32
    %c0_i32_0 = arith.constant 0 : i32
    %c0_i32_1 = arith.constant 0 : i32
    return %c0_i32, %c0_i32_0 : i32, i32
  }
  func.func @transform_3(%arg0: i32) -> (i32, i32, i32) {
    %c0_i32 = arith.constant 0 : i32
    %c0_i32_0 = arith.constant 0 : i32
    %c0_i32_1 = arith.constant 0 : i32
    %c0_i32_2 = arith.constant 0 : i32
    return %c0_i32, %c0_i32_0, %c0_i32_1 : i32, i32, i32
  }
  func.func @transform_4(%arg0: i32) -> (i32, i32) {
    %c0_i32 = arith.constant 0 : i32
    %c0_i32_0 = arith.constant 0 : i32
    %c0_i32_1 = arith.constant 0 : i32
    return %c0_i32, %c0_i32_0 : i32, i32
  }
  func.func @transform_5(%arg0: i32) -> (i32, i32) {
    %c0_i32 = arith.constant 0 : i32
    %c0_i32_0 = arith.constant 0 : i32
    %c0_i32_1 = arith.constant 0 : i32
    return %c0_i32, %c0_i32_0 : i32, i32
  }
  func.func @transform_6(%arg0: i32) -> (i32, i32) {
    %c0_i32 = arith.constant 0 : i32
    %c0_i32_0 = arith.constant 0 : i32
    return %arg0, %c0_i32 : i32, i32
  }
}

</mosaic_0001>

<bundles_post_ra>
// kernel: tpu_custom_call.1
= control target key start
LH: loop header
LB: loop body
LE: loop exit
PB: predicated region body
PF: predicated region fallthrough
CT: control target
= control target key end

     0   :  { %11 = vsyncpa [#allocation6], 0  ;;  %s5691_s0 = inlined_call_operand.vmem [shape: bf16[5,384,128], index: 0, kind: input, shape index: {}]   ;;  %s5692_s1 = inlined_call_operand.vmem [shape: f32[5,384,1], index: 1, kind: input, shape index: {}]   ;;  %s5693_s2 = inlined_call_operand.vmem [shape: bf16[384,128], index: 2, kind: input, shape index: {}]   ;;  %s5694_s3 = inlined_call_operand.vmem [shape: bf16[5,128,128], index: 3, kind: input, shape index: {}]   ;;  %s5695_s4 = inlined_call_operand.vmem [shape: bf16[128,128], index: 4, kind: input, shape index: {}]   ;;  %s5696_s5 = inlined_call_operand.vmem [shape: f32[1,128], index: 5, kind: input, shape index: {}]   ;;  %s5697_s6 = inlined_call_operand.hbm [shape: bf16[384,128], index: 6, kind: output, shape index: {}]  }
   0x1   :  { %13 = vsyncpa [#allocation6 + $0x1], 0  ;;  %s4909_s21 = smov 0   ;;  %s4911_s22 = smov 0  }
   0x2   :  { %s4913_s23 = smov 0   ;;  %s4915_s24 = smov 0  }
   0x3 LB: > { %s4930_s25 = sadd.s32 4294967295, %s4865_s24   ;;  %s3695_s26 = sadd.s32 4294967294, %s4865_s24   ;;  %s4865_s24 = sphi %s4915_s24, %s5706_s24   ;;  %s4861_s23 = sphi %s4913_s23, %s5705_s23   ;;  %s4857_s22 = sphi %s4911_s22, %s5704_s22   ;;  %s4853_s21 = sphi %s4909_s21, %s5703_s21  }
   0x4   : > { %s4934_s27 = sadd.s32 1, %s4865_s24   ;;  %s26_s28 = sadd.s32 1, %s4861_s23 }
   0x5   : > { %s23_s29 = ssub.s32 %s4865_s24, %s4934_s27  ;;  %p33_p0 = scmp.ne.s32.totalorder %s4861_s23, %s4857_s22 }
   0x6   : > { %p24_p1 = scmp.eq.s32.totalorder %s23_s29, 0  ;;  %p34_p2 = scmp.eq.s32.totalorder %s4865_s24, 0 }
   0x7   : > { %p173_p3 = scmp.eq.s32.totalorder %s4930_s25, 2  ;;  %p178_p4 = scmp.ne.s32.totalorder %s4857_s22, %s4853_s21 }
   0x8   : > { %s4946_s30 = scalar_select %p24_p1, %s4861_s23, %s26_s28  }
   0x9   : > { %p4948_p5 = por %p34_p2, %p33_p0  ;;  %p4952_p6 = por %p173_p3, %p33_p0 }
   0xa   : > { %p179_p7 = scmp.eq.s32.totalorder %s3695_s26, 2  ;;  %p3697_p9 = scmp.ge.s32.totalorder %s4865_s24, 3 }
   0xc   : > { %p4956_p8 = por %p179_p7, %p178_p4  ;;  %207 = sbr.rel (%p3697_p9) target bundleno = 145 (0x91), region = 32 }
  0x11   : > { %210 = sbr.rel (!%p4948_p5) target bundleno = 61 (0x3d), region = 36  ;;  %s212_s10 = sand.u32 (%p4948_p5), 1, %s4861_s23  }
  0x12   : > { %s4447_s11 = sshll.u32 (%p4948_p5), %s4865_s24, 6  ;;  %s4737_s12 = smul.u32 (%p4948_p5), 320, %s212_s10 }
  0x13   : > { %s4968_s15 = scalar_lea.vmem (%p4948_p5), %s5691_s0, %s4447_s11 }
  0x14   : > { %v234_v0 = vld [vmem:[%s4968_s15] sm:$0xff] (%p4948_p5)   ;;  %v238_v1 = vld [vmem:[%s4968_s15 + $0x8] sm:$0xff] (%p4948_p5)   ;;  %v242_v2 = vld [vmem:[%s4968_s15 + $0x10] sm:$0xff] (%p4948_p5)   ;;  %s4973_s16 = scalar_lea.vmem (%p4948_p5), [#allocation3], %s4737_s12 }
  0x15   : > { %235 = vst [vmem:[%s4973_s16] sm:$0xff] (%p4948_p5), %v234_v0   ;;  %v246_v3 = vld [vmem:[%s4968_s15 + $0x18] sm:$0xff] (%p4948_p5)   ;;  %v250_v4 = vld [vmem:[%s4968_s15 + $0x20] sm:$0xff] (%p4948_p5)   ;;  %v254_v5 = vld [vmem:[%s4968_s15 + $0x28] sm:$0xff] (%p4948_p5)  }
  0x16   : > { %239 = vst [vmem:[%s4973_s16 + $0x8] sm:$0xff] %v238_v1   ;;  %v258_v6 = vld [vmem:[%s4968_s15 + $0x30] sm:$0xff]   ;;  %v262_v7 = vld [vmem:[%s4968_s15 + $0x38] sm:$0xff]   ;;  %v266_v8 = vld [vmem:[%s4968_s15 + $0xc0] sm:$0xff]  }
  0x17   : > { %243 = vst [vmem:[%s4973_s16 + $0x10] sm:$0xff] %v242_v2   ;;  %v270_v9 = vld [vmem:[%s4968_s15 + $0xc8] sm:$0xff]   ;;  %v274_v10 = vld [vmem:[%s4968_s15 + $0xd0] sm:$0xff]   ;;  %v278_v11 = vld [vmem:[%s4968_s15 + $0xd8] sm:$0xff]  }
  0x18   : > { %247 = vst [vmem:[%s4973_s16 + $0x18] sm:$0xff] %v246_v3   ;;  %v282_v12 = vld [vmem:[%s4968_s15 + $0xe0] sm:$0xff]   ;;  %v286_v13 = vld [vmem:[%s4968_s15 + $0xe8] sm:$0xff]   ;;  %v290_v14 = vld [vmem:[%s4968_s15 + $0xf0] sm:$0xff]  }
  0x19   : > { %251 = vst [vmem:[%s4973_s16 + $0x20] sm:$0xff] %v250_v4   ;;  %v294_v15 = vld [vmem:[%s4968_s15 + $0xf8] sm:$0xff]   ;;  %v298_v16 = vld [vmem:[%s4968_s15 + $0x180] sm:$0xff]   ;;  %v302_v17 = vld [vmem:[%s4968_s15 + $0x188] sm:$0xff]  }
  0x1a   : > { %255 = vst [vmem:[%s4973_s16 + $0x28] sm:$0xff] %v254_v5   ;;  %v306_v18 = vld [vmem:[%s4968_s15 + $0x190] sm:$0xff]   ;;  %v310_v19 = vld [vmem:[%s4968_s15 + $0x198] sm:$0xff]   ;;  %v314_v20 = vld [vmem:[%s4968_s15 + $0x1a0] sm:$0xff]  }
  0x1b   : > { %259 = vst [vmem:[%s4973_s16 + $0x30] sm:$0xff] %v258_v6   ;;  %v318_v21 = vld [vmem:[%s4968_s15 + $0x1a8] sm:$0xff]   ;;  %v322_v22 = vld [vmem:[%s4968_s15 + $0x1b0] sm:$0xff]   ;;  %v326_v23 = vld [vmem:[%s4968_s15 + $0x1b8] sm:$0xff]  }
  0x1c   : > { %263 = vst [vmem:[%s4973_s16 + $0x38] sm:$0xff] %v262_v7   ;;  %v330_v24 = vld [vmem:[%s4968_s15 + $0x240] sm:$0xff]   ;;  %v334_v25 = vld [vmem:[%s4968_s15 + $0x248] sm:$0xff]   ;;  %v338_v26 = vld [vmem:[%s4968_s15 + $0x250] sm:$0xff]  }
  0x1d   : > { %267 = vst [vmem:[%s4973_s16 + $0x40] sm:$0xff] %v266_v8   ;;  %v342_v27 = vld [vmem:[%s4968_s15 + $0x258] sm:$0xff]   ;;  %v346_v28 = vld [vmem:[%s4968_s15 + $0x260] sm:$0xff]   ;;  %v350_v29 = vld [vmem:[%s4968_s15 + $0x268] sm:$0xff]  }
  0x1e   : > { %271 = vst [vmem:[%s4973_s16 + $0x48] sm:$0xff] %v270_v9   ;;  %v354_v30 = vld [vmem:[%s4968_s15 + $0x270] sm:$0xff]   ;;  %v358_v31 = vld [vmem:[%s4968_s15 + $0x278] sm:$0xff]   ;;  %v362_v32 = vld [vmem:[%s4968_s15 + $0x300] sm:$0xff]  }
  0x1f   : > { %275 = vst [vmem:[%s4973_s16 + $0x50] sm:$0xff] %v274_v10   ;;  %v366_v33 = vld [vmem:[%s4968_s15 + $0x308] sm:$0xff]   ;;  %v370_v34 = vld [vmem:[%s4968_s15 + $0x310] sm:$0xff]   ;;  %v374_v35 = vld [vmem:[%s4968_s15 + $0x318] sm:$0xff]  }
  0x20   : > { %279 = vst [vmem:[%s4973_s16 + $0x58] sm:$0xff] %v278_v11   ;;  %v378_v36 = vld [vmem:[%s4968_s15 + $0x320] sm:$0xff]   ;;  %v382_v37 = vld [vmem:[%s4968_s15 + $0x328] sm:$0xff]   ;;  %v386_v38 = vld [vmem:[%s4968_s15 + $0x330] sm:$0xff]  }
  0x21   : > { %283 = vst [vmem:[%s4973_s16 + $0x60] sm:$0xff] %v282_v12   ;;  %v390_v39 = vld [vmem:[%s4968_s15 + $0x338] sm:$0xff]  }
  0x22   : > { %287 = vst [vmem:[%s4973_s16 + $0x68] sm:$0xff] %v286_v13  }
  0x23   : > { %291 = vst [vmem:[%s4973_s16 + $0x70] sm:$0xff] %v290_v14  }
  0x24   : > { %295 = vst [vmem:[%s4973_s16 + $0x78] sm:$0xff] %v294_v15  }
  0x25   : > { %299 = vst [vmem:[%s4973_s16 + $0x80] sm:$0xff] %v298_v16  }
  0x26   : > { %303 = vst [vmem:[%s4973_s16 + $0x88] sm:$0xff] %v302_v17  }
  0x27   : > { %307 = vst [vmem:[%s4973_s16 + $0x90] sm:$0xff] %v306_v18  }
  0x28   : > { %311 = vst [vmem:[%s4973_s16 + $0x98] sm:$0xff] %v310_v19  }
  0x29   : > { %315 = vst [vmem:[%s4973_s16 + $0xa0] sm:$0xff] %v314_v20  }
  0x2a   : > { %319 = vst [vmem:[%s4973_s16 + $0xa8] sm:$0xff] %v318_v21  }
  0x2b   : > { %323 = vst [vmem:[%s4973_s16 + $0xb0] sm:$0xff] %v322_v22  }
  0x2c   : > { %327 = vst [vmem:[%s4973_s16 + $0xb8] sm:$0xff] %v326_v23  }
  0x2d   : > { %331 = vst [vmem:[%s4973_s16 + $0xc0] sm:$0xff] %v330_v24  }
  0x2e   : > { %335 = vst [vmem:[%s4973_s16 + $0xc8] sm:$0xff] %v334_v25  }
  0x2f   : > { %339 = vst [vmem:[%s4973_s16 + $0xd0] sm:$0xff] %v338_v26  }
  0x30   : > { %343 = vst [vmem:[%s4973_s16 + $0xd8] sm:$0xff] %v342_v27  }
  0x31   : > { %347 = vst [vmem:[%s4973_s16 + $0xe0] sm:$0xff] %v346_v28  }
  0x32   : > { %351 = vst [vmem:[%s4973_s16 + $0xe8] sm:$0xff] %v350_v29  }
  0x33   : > { %355 = vst [vmem:[%s4973_s16 + $0xf0] sm:$0xff] %v354_v30  }
  0x34   : > { %359 = vst [vmem:[%s4973_s16 + $0xf8] sm:$0xff] %v358_v31  }
  0x35   : > { %363 = vst [vmem:[%s4973_s16 + $0x100] sm:$0xff] %v362_v32  }
  0x36   : > { %367 = vst [vmem:[%s4973_s16 + $0x108] sm:$0xff] %v366_v33  }
  0x37   : > { %371 = vst [vmem:[%s4973_s16 + $0x110] sm:$0xff] %v370_v34  }
  0x38   : > { %375 = vst [vmem:[%s4973_s16 + $0x118] sm:$0xff] %v374_v35  }
  0x39   : > { %379 = vst [vmem:[%s4973_s16 + $0x120] sm:$0xff] %v378_v36  }
  0x3a   : > { %383 = vst [vmem:[%s4973_s16 + $0x128] sm:$0xff] %v382_v37  }
  0x3b   : > { %387 = vst [vmem:[%s4973_s16 + $0x130] sm:$0xff] %v386_v38  }
  0x3c   : > { %391 = vst [vmem:[%s4973_s16 + $0x138] sm:$0xff] %v390_v39  }
  0x3d PF: > { %577 = sbr.rel (!%p4948_p5) target bundleno = 145 (0x91), region = 77  ;;  %s579_s17 = sand.u32 (%p4948_p5), 1, %s4861_s23  }
  0x3e   : > { %s4448_s18 = sshll.u32 (%p4948_p5), %s4865_s24, 7  ;;  %s4738_s19 = smul.u32 (%p4948_p5), 640, %s579_s17 }
  0x3f   : > { %s5059_s28 = scalar_lea.vmem (%p4948_p5), %s5692_s1, %s4448_s18 }
  0x40   : > { %v771_v40 = vld [vmem:[%s5059_s28] sm:$0xff] (%p4948_p5)  ;;  %v773_v41 = vld [vmem:[%s5059_s28 + $0x8] sm:$0xff] (%p4948_p5)  ;;  %v775_v42 = vld [vmem:[%s5059_s28 + $0x10] sm:$0xff] (%p4948_p5)  ;;  %s5064_s29 = scalar_lea.vmem (%p4948_p5), [#allocation4], %s4738_s19 }
  0x41   : > { %772 = vst [vmem:[%s5064_s29] sm:$0xff] (%p4948_p5), %v771_v40  ;;  %v777_v43 = vld [vmem:[%s5059_s28 + $0x18] sm:$0xff] (%p4948_p5)  ;;  %v779_v44 = vld [vmem:[%s5059_s28 + $0x20] sm:$0xff] (%p4948_p5)  ;;  %v781_v45 = vld [vmem:[%s5059_s28 + $0x28] sm:$0xff] (%p4948_p5) }
  0x42   : > { %774 = vst [vmem:[%s5064_s29 + $0x8] sm:$0xff] %v773_v41  ;;  %v783_v46 = vld [vmem:[%s5059_s28 + $0x30] sm:$0xff]  ;;  %v785_v47 = vld [vmem:[%s5059_s28 + $0x38] sm:$0xff]  ;;  %v787_v48 = vld [vmem:[%s5059_s28 + $0x40] sm:$0xff] }
  0x43   : > { %776 = vst [vmem:[%s5064_s29 + $0x10] sm:$0xff] %v775_v42  ;;  %v789_v49 = vld [vmem:[%s5059_s28 + $0x48] sm:$0xff]  ;;  %v791_v50 = vld [vmem:[%s5059_s28 + $0x50] sm:$0xff]  ;;  %v793_v51 = vld [vmem:[%s5059_s28 + $0x58] sm:$0xff] }
  0x44   : > { %778 = vst [vmem:[%s5064_s29 + $0x18] sm:$0xff] %v777_v43  ;;  %v795_v52 = vld [vmem:[%s5059_s28 + $0x60] sm:$0xff]  ;;  %v797_v53 = vld [vmem:[%s5059_s28 + $0x68] sm:$0xff]  ;;  %v799_v54 = vld [vmem:[%s5059_s28 + $0x70] sm:$0xff] }
  0x45   : > { %780 = vst [vmem:[%s5064_s29 + $0x20] sm:$0xff] %v779_v44  ;;  %v801_v55 = vld [vmem:[%s5059_s28 + $0x78] sm:$0xff]  ;;  %v803_v56 = vld [vmem:[%s5059_s28 + $0x180] sm:$0xff]  ;;  %v805_v57 = vld [vmem:[%s5059_s28 + $0x188] sm:$0xff] }
  0x46   : > { %782 = vst [vmem:[%s5064_s29 + $0x28] sm:$0xff] %v781_v45  ;;  %v807_v58 = vld [vmem:[%s5059_s28 + $0x190] sm:$0xff]  ;;  %v809_v59 = vld [vmem:[%s5059_s28 + $0x198] sm:$0xff]  ;;  %v811_v60 = vld [vmem:[%s5059_s28 + $0x1a0] sm:$0xff] }
  0x47   : > { %784 = vst [vmem:[%s5064_s29 + $0x30] sm:$0xff] %v783_v46  ;;  %v813_v61 = vld [vmem:[%s5059_s28 + $0x1a8] sm:$0xff]  ;;  %v815_v62 = vld [vmem:[%s5059_s28 + $0x1b0] sm:$0xff]  ;;  %v817_v63 = vld [vmem:[%s5059_s28 + $0x1b8] sm:$0xff] }
  0x48   : > { %786 = vst [vmem:[%s5064_s29 + $0x38] sm:$0xff] %v785_v47  ;;  %v819_v0 = vld [vmem:[%s5059_s28 + $0x1c0] sm:$0xff]  ;;  %v821_v1 = vld [vmem:[%s5059_s28 + $0x1c8] sm:$0xff]  ;;  %v823_v2 = vld [vmem:[%s5059_s28 + $0x1d0] sm:$0xff] }
  0x49   : > { %788 = vst [vmem:[%s5064_s29 + $0x40] sm:$0xff] %v787_v48  ;;  %v825_v3 = vld [vmem:[%s5059_s28 + $0x1d8] sm:$0xff]  ;;  %v827_v4 = vld [vmem:[%s5059_s28 + $0x1e0] sm:$0xff]  ;;  %v829_v5 = vld [vmem:[%s5059_s28 + $0x1e8] sm:$0xff] }
  0x4a   : > { %790 = vst [vmem:[%s5064_s29 + $0x48] sm:$0xff] %v789_v49  ;;  %v831_v6 = vld [vmem:[%s5059_s28 + $0x1f0] sm:$0xff]  ;;  %v833_v7 = vld [vmem:[%s5059_s28 + $0x1f8] sm:$0xff]  ;;  %v835_v8 = vld [vmem:[%s5059_s28 + $0x300] sm:$0xff] }
  0x4b   : > { %792 = vst [vmem:[%s5064_s29 + $0x50] sm:$0xff] %v791_v50  ;;  %v837_v9 = vld [vmem:[%s5059_s28 + $0x308] sm:$0xff]  ;;  %v839_v10 = vld [vmem:[%s5059_s28 + $0x310] sm:$0xff]  ;;  %v841_v11 = vld [vmem:[%s5059_s28 + $0x318] sm:$0xff] }
  0x4c   : > { %794 = vst [vmem:[%s5064_s29 + $0x58] sm:$0xff] %v793_v51  ;;  %v843_v12 = vld [vmem:[%s5059_s28 + $0x320] sm:$0xff]  ;;  %v845_v13 = vld [vmem:[%s5059_s28 + $0x328] sm:$0xff]  ;;  %v847_v14 = vld [vmem:[%s5059_s28 + $0x330] sm:$0xff] }
  0x4d   : > { %796 = vst [vmem:[%s5064_s29 + $0x60] sm:$0xff] %v795_v52  ;;  %v849_v15 = vld [vmem:[%s5059_s28 + $0x338] sm:$0xff]  ;;  %v851_v16 = vld [vmem:[%s5059_s28 + $0x340] sm:$0xff]  ;;  %v853_v17 = vld [vmem:[%s5059_s28 + $0x348] sm:$0xff] }
  0x4e   : > { %798 = vst [vmem:[%s5064_s29 + $0x68] sm:$0xff] %v797_v53  ;;  %v855_v18 = vld [vmem:[%s5059_s28 + $0x350] sm:$0xff]  ;;  %v857_v19 = vld [vmem:[%s5059_s28 + $0x358] sm:$0xff]  ;;  %v859_v20 = vld [vmem:[%s5059_s28 + $0x360] sm:$0xff] }
  0x4f   : > { %800 = vst [vmem:[%s5064_s29 + $0x70] sm:$0xff] %v799_v54  ;;  %v861_v21 = vld [vmem:[%s5059_s28 + $0x368] sm:$0xff]  ;;  %v863_v22 = vld [vmem:[%s5059_s28 + $0x370] sm:$0xff]  ;;  %v865_v23 = vld [vmem:[%s5059_s28 + $0x378] sm:$0xff] }
  0x50   : > { %802 = vst [vmem:[%s5064_s29 + $0x78] sm:$0xff] %v801_v55  ;;  %v867_v24 = vld [vmem:[%s5059_s28 + $0x480] sm:$0xff]  ;;  %v869_v25 = vld [vmem:[%s5059_s28 + $0x488] sm:$0xff]  ;;  %v871_v26 = vld [vmem:[%s5059_s28 + $0x490] sm:$0xff] }
  0x51   : > { %804 = vst [vmem:[%s5064_s29 + $0x80] sm:$0xff] %v803_v56  ;;  %v873_v27 = vld [vmem:[%s5059_s28 + $0x498] sm:$0xff]  ;;  %v875_v28 = vld [vmem:[%s5059_s28 + $0x4a0] sm:$0xff]  ;;  %v877_v29 = vld [vmem:[%s5059_s28 + $0x4a8] sm:$0xff] }
  0x52   : > { %806 = vst [vmem:[%s5064_s29 + $0x88] sm:$0xff] %v805_v57  ;;  %v879_v30 = vld [vmem:[%s5059_s28 + $0x4b0] sm:$0xff]  ;;  %v881_v31 = vld [vmem:[%s5059_s28 + $0x4b8] sm:$0xff]  ;;  %v883_v32 = vld [vmem:[%s5059_s28 + $0x4c0] sm:$0xff] }
  0x53   : > { %808 = vst [vmem:[%s5064_s29 + $0x90] sm:$0xff] %v807_v58  ;;  %v885_v33 = vld [vmem:[%s5059_s28 + $0x4c8] sm:$0xff]  ;;  %v887_v34 = vld [vmem:[%s5059_s28 + $0x4d0] sm:$0xff]  ;;  %v889_v35 = vld [vmem:[%s5059_s28 + $0x4d8] sm:$0xff] }
  0x54   : > { %810 = vst [vmem:[%s5064_s29 + $0x98] sm:$0xff] %v809_v59  ;;  %v891_v36 = vld [vmem:[%s5059_s28 + $0x4e0] sm:$0xff]  ;;  %v893_v37 = vld [vmem:[%s5059_s28 + $0x4e8] sm:$0xff]  ;;  %v895_v38 = vld [vmem:[%s5059_s28 + $0x4f0] sm:$0xff] }
  0x55   : > { %812 = vst [vmem:[%s5064_s29 + $0xa0] sm:$0xff] %v811_v60  ;;  %v897_v39 = vld [vmem:[%s5059_s28 + $0x4f8] sm:$0xff]  ;;  %v899_v40 = vld [vmem:[%s5059_s28 + $0x600] sm:$0xff]  ;;  %v901_v41 = vld [vmem:[%s5059_s28 + $0x608] sm:$0xff] }
  0x56   : > { %814 = vst [vmem:[%s5064_s29 + $0xa8] sm:$0xff] %v813_v61  ;;  %v903_v42 = vld [vmem:[%s5059_s28 + $0x610] sm:$0xff]  ;;  %v905_v43 = vld [vmem:[%s5059_s28 + $0x618] sm:$0xff]  ;;  %v907_v44 = vld [vmem:[%s5059_s28 + $0x620] sm:$0xff] }
  0x57   : > { %816 = vst [vmem:[%s5064_s29 + $0xb0] sm:$0xff] %v815_v62  ;;  %v909_v45 = vld [vmem:[%s5059_s28 + $0x628] sm:$0xff]  ;;  %v911_v46 = vld [vmem:[%s5059_s28 + $0x630] sm:$0xff]  ;;  %v913_v47 = vld [vmem:[%s5059_s28 + $0x638] sm:$0xff] }
  0x58   : > { %818 = vst [vmem:[%s5064_s29 + $0xb8] sm:$0xff] %v817_v63  ;;  %v915_v48 = vld [vmem:[%s5059_s28 + $0x640] sm:$0xff]  ;;  %v917_v49 = vld [vmem:[%s5059_s28 + $0x648] sm:$0xff]  ;;  %v919_v50 = vld [vmem:[%s5059_s28 + $0x650] sm:$0xff] }
  0x59   : > { %820 = vst [vmem:[%s5064_s29 + $0xc0] sm:$0xff] %v819_v0  ;;  %v921_v51 = vld [vmem:[%s5059_s28 + $0x658] sm:$0xff]  ;;  %v923_v52 = vld [vmem:[%s5059_s28 + $0x660] sm:$0xff]  ;;  %v925_v53 = vld [vmem:[%s5059_s28 + $0x668] sm:$0xff] }
  0x5a   : > { %822 = vst [vmem:[%s5064_s29 + $0xc8] sm:$0xff] %v821_v1  ;;  %v927_v54 = vld [vmem:[%s5059_s28 + $0x670] sm:$0xff]  ;;  %v929_v55 = vld [vmem:[%s5059_s28 + $0x678] sm:$0xff] }
  0x5b   : > { %824 = vst [vmem:[%s5064_s29 + $0xd0] sm:$0xff] %v823_v2 }
  0x5c   : > { %826 = vst [vmem:[%s5064_s29 + $0xd8] sm:$0xff] %v825_v3 }
  0x5d   : > { %828 = vst [vmem:[%s5064_s29 + $0xe0] sm:$0xff] %v827_v4 }
  0x5e   : > { %830 = vst [vmem:[%s5064_s29 + $0xe8] sm:$0xff] %v829_v5 }
  0x5f   : > { %832 = vst [vmem:[%s5064_s29 + $0xf0] sm:$0xff] %v831_v6 }
  0x60   : > { %834 = vst [vmem:[%s5064_s29 + $0xf8] sm:$0xff] %v833_v7 }
  0x61   : > { %836 = vst [vmem:[%s5064_s29 + $0x100] sm:$0xff] %v835_v8 }
  0x62   : > { %838 = vst [vmem:[%s5064_s29 + $0x108] sm:$0xff] %v837_v9 }
  0x63   : > { %840 = vst [vmem:[%s5064_s29 + $0x110] sm:$0xff] %v839_v10 }
  0x64   : > { %842 = vst [vmem:[%s5064_s29 + $0x118] sm:$0xff] %v841_v11 }
  0x65   : > { %844 = vst [vmem:[%s5064_s29 + $0x120] sm:$0xff] %v843_v12 }
  0x66   : > { %846 = vst [vmem:[%s5064_s29 + $0x128] sm:$0xff] %v845_v13 }
  0x67   : > { %848 = vst [vmem:[%s5064_s29 + $0x130] sm:$0xff] %v847_v14 }
  0x68   : > { %850 = vst [vmem:[%s5064_s29 + $0x138] sm:$0xff] %v849_v15 }
  0x69   : > { %852 = vst [vmem:[%s5064_s29 + $0x140] sm:$0xff] %v851_v16 }
  0x6a   : > { %854 = vst [vmem:[%s5064_s29 + $0x148] sm:$0xff] %v853_v17 }
  0x6b   : > { %856 = vst [vmem:[%s5064_s29 + $0x150] sm:$0xff] %v855_v18 }
  0x6c   : > { %858 = vst [vmem:[%s5064_s29 + $0x158] sm:$0xff] %v857_v19 }
  0x6d   : > { %860 = vst [vmem:[%s5064_s29 + $0x160] sm:$0xff] %v859_v20 }
  0x6e   : > { %862 = vst [vmem:[%s5064_s29 + $0x168] sm:$0xff] %v861_v21 }
  0x6f   : > { %864 = vst [vmem:[%s5064_s29 + $0x170] sm:$0xff] %v863_v22 }
  0x70   : > { %866 = vst [vmem:[%s5064_s29 + $0x178] sm:$0xff] %v865_v23 }
  0x71   : > { %868 = vst [vmem:[%s5064_s29 + $0x180] sm:$0xff] %v867_v24 }
  0x72   : > { %870 = vst [vmem:[%s5064_s29 + $0x188] sm:$0xff] %v869_v25 }
  0x73   : > { %872 = vst [vmem:[%s5064_s29 + $0x190] sm:$0xff] %v871_v26 }
  0x74   : > { %874 = vst [vmem:[%s5064_s29 + $0x198] sm:$0xff] %v873_v27 }
  0x75   : > { %876 = vst [vmem:[%s5064_s29 + $0x1a0] sm:$0xff] %v875_v28 }
  0x76   : > { %878 = vst [vmem:[%s5064_s29 + $0x1a8] sm:$0xff] %v877_v29 }
  0x77   : > { %880 = vst [vmem:[%s5064_s29 + $0x1b0] sm:$0xff] %v879_v30 }
  0x78   : > { %882 = vst [vmem:[%s5064_s29 + $0x1b8] sm:$0xff] %v881_v31 }
  0x79   : > { %884 = vst [vmem:[%s5064_s29 + $0x1c0] sm:$0xff] %v883_v32 }
  0x7a   : > { %886 = vst [vmem:[%s5064_s29 + $0x1c8] sm:$0xff] %v885_v33 }
  0x7b   : > { %888 = vst [vmem:[%s5064_s29 + $0x1d0] sm:$0xff] %v887_v34 }
  0x7c   : > { %890 = vst [vmem:[%s5064_s29 + $0x1d8] sm:$0xff] %v889_v35 }
  0x7d   : > { %892 = vst [vmem:[%s5064_s29 + $0x1e0] sm:$0xff] %v891_v36 }
  0x7e   : > { %894 = vst [vmem:[%s5064_s29 + $0x1e8] sm:$0xff] %v893_v37 }
  0x7f   : > { %896 = vst [vmem:[%s5064_s29 + $0x1f0] sm:$0xff] %v895_v38 }
  0x80   : > { %898 = vst [vmem:[%s5064_s29 + $0x1f8] sm:$0xff] %v897_v39 }
  0x81   : > { %900 = vst [vmem:[%s5064_s29 + $0x200] sm:$0xff] %v899_v40 }
  0x82   : > { %902 = vst [vmem:[%s5064_s29 + $0x208] sm:$0xff] %v901_v41 }
  0x83   : > { %904 = vst [vmem:[%s5064_s29 + $0x210] sm:$0xff] %v903_v42 }
  0x84   : > { %906 = vst [vmem:[%s5064_s29 + $0x218] sm:$0xff] %v905_v43 }
  0x85   : > { %908 = vst [vmem:[%s5064_s29 + $0x220] sm:$0xff] %v907_v44 }
  0x86   : > { %910 = vst [vmem:[%s5064_s29 + $0x228] sm:$0xff] %v909_v45 }
  0x87   : > { %912 = vst [vmem:[%s5064_s29 + $0x230] sm:$0xff] %v911_v46 }
  0x88   : > { %914 = vst [vmem:[%s5064_s29 + $0x238] sm:$0xff] %v913_v47 }
  0x89   : > { %916 = vst [vmem:[%s5064_s29 + $0x240] sm:$0xff] %v915_v48 }
  0x8a   : > { %918 = vst [vmem:[%s5064_s29 + $0x248] sm:$0xff] %v917_v49 }
  0x8b   : > { %920 = vst [vmem:[%s5064_s29 + $0x250] sm:$0xff] %v919_v50 }
  0x8c   : > { %922 = vst [vmem:[%s5064_s29 + $0x258] sm:$0xff] %v921_v51 }
  0x8d   : > { %924 = vst [vmem:[%s5064_s29 + $0x260] sm:$0xff] %v923_v52 }
  0x8e   : > { %926 = vst [vmem:[%s5064_s29 + $0x268] sm:$0xff] %v925_v53 }
  0x8f   : > { %928 = vst [vmem:[%s5064_s29 + $0x270] sm:$0xff] %v927_v54 }
  0x90   : > { %930 = vst [vmem:[%s5064_s29 + $0x278] sm:$0xff] %v929_v55 }
  0x91 PF: > { %p3702_p10 = scmp.ge.s32.totalorder %s4865_s24, 1  ;;  %p935_p11 = scmp.lt.s32.totalorder %s4865_s24, 4 }
  0x93   : > { %p936_p12 = pnand %p3702_p10, %p935_p11 }
  0x94   : > { %s5226_s7 = sand.u32 (!%p936_p12), 1, %s4857_s22   ;;  %p1005_p13 = scmp.ge.s32.totalorder (!%p936_p12), %s4930_s25, 2 }
  0x95   : > { %939 = sbr.rel (%p936_p12) target bundleno = 2239 (0x8bf), region = 115  ;;  %s3703_s13 = sshll.u32 (!%p936_p12), %s5226_s7, 6 }
  0x96   : > { %s4739_s12 = smul.u32 (!%p936_p12), 320, %s5226_s7  ;;  %p1006_p0 = scmp.lt.s32.totalorder (!%p936_p12), %s4930_s25, 3 }
  0x97   : > { %s4740_s14 = smul.u32 (!%p936_p12), 640, %s5226_s7  ;;  %s5244_s18 = scalar_lea.vmem (!%p936_p12), [#allocation5], %s3703_s13 }
  0x98   : > { %p5236_p1 = pnand (!%p936_p12), %p1006_p0, %p1005_p13  ;;  %s5240_s16 = scalar_lea.vmem (!%p936_p12), [#allocation3], %s4739_s12 }
  0x99   : > { %s5242_s17 = scalar_lea.vmem (!%p936_p12), [#allocation4], %s4740_s14 }
  0x9a   : > { %v4787_v56 = vld [vmem:[%s5696_s5] ss:$0 sm:$0xff] }
  0x9b   : > { %989 = vst [vmem:[#allocation2 + $0x30] sm:$0xff] %v4787_v56 }
  0x9c   : > { %990 = vst [vmem:[#allocation2] sm:$0xff] %v4787_v56 }
  0x9d   : > { %991 = vst [vmem:[#allocation2 + $0x58] sm:$0xff] %v4787_v56 }
  0x9e   : > { %992 = vst [vmem:[#allocation2 + $0x18] sm:$0xff] %v4787_v56 }
  0x9f   : > { %993 = vst [vmem:[#allocation2 + $0x50] sm:$0xff] %v4787_v56 }
  0xa0   : > { %994 = vst [vmem:[#allocation2 + $0x68] sm:$0xff] %v4787_v56 }
  0xa1   : > { %995 = vst [vmem:[#allocation2 + $0x8] sm:$0xff] %v4787_v56 }
  0xa2   : > { %996 = vst [vmem:[#allocation2 + $0x48] sm:$0xff] %v4787_v56 }
  0xa3   : > { %997 = vst [vmem:[#allocation2 + $0x40] sm:$0xff] %v4787_v56 }
  0xa4   : > { %998 = vst [vmem:[#allocation2 + $0x20] sm:$0xff] %v4787_v56 }
  0xa5   : > { %999 = vst [vmem:[#allocation2 + $0x10] sm:$0xff] %v4787_v56 }
  0xa6   : > { %1000 = vst [vmem:[#allocation2 + $0x38] sm:$0xff] %v4787_v56  ;;  %1010 = sbr.rel (%p5236_p1) target bundleno = 539 (0x21b), region = 127 }
  0xa7   : > { %1001 = vst [vmem:[#allocation2 + $0x60] sm:$0xff] %v4787_v56 }
  0xa8   : > { %1002 = vst [vmem:[#allocation2 + $0x70] sm:$0xff] %v4787_v56 }
  0xa9   : > { %1003 = vst [vmem:[#allocation2 + $0x78] sm:$0xff] %v4787_v56 }
  0xaa   : > { %1004 = vst [vmem:[#allocation2 + $0x28] sm:$0xff] %v4787_v56 }
  0xab   : > { %v4464_v57 = vld [vmem:[%s5693_s2 + $0x38] sm:$0xff]  ;;  %v1196_v58 = vld [vmem:[%s5242_s17 + $0x40] sm:$0xff]  ;;  %v4867_v59 = vmov 0   ;;  %v4463_v60 = vld [vmem:[%s5693_s2 + $0x30] sm:$0xff] }
  0xac   : > { %4788 = vset.pattern.permute.xlu0 %v4867_v59  ;;  %4789 = vset.pattern.permute.xlu1 %v4867_v59  ;;  %v1188_v61 = vld [vmem:[%s5242_s17] sm:$0xff]  ;;  %v4462_v62 = vld [vmem:[%s5693_s2 + $0x28] sm:$0xff]  ;;  %v4460_v2 = vld [vmem:[%s5693_s2 + $0x18] sm:$0xff] }
  0xad   : > { %1139 = vmatpush.bf16.msra.mxu0 %v4464_v57  ;;  %4633 = vmatpush.bf16.msra.mxu2 %v4464_v57  ;;  %v1197_v63 = vld [vmem:[%s5242_s17 + $0x48] sm:$0xff]  ;;  %v4461_v1 = vld [vmem:[%s5693_s2 + $0x20] sm:$0xff]  ;;  %v1190_v3 = vld [vmem:[%s5242_s17 + $0x10] sm:$0xff] }
  0xae   : > { %1246 = vperm.xlu0 %4788, %v1196_v58   ;;  %1206 = vperm.xlu1 %4789, %v1188_v61   ;;  %v1189_v0 = vld [vmem:[%s5242_s17 + $0x8] sm:$0xff]  ;;  %v1191_v4 = vld [vmem:[%s5242_s17 + $0x18] sm:$0xff]  ;;  %v1198_v5 = vld [vmem:[%s5242_s17 + $0x50] sm:$0xff] }
  0xaf   : > { %4790 = vset.pattern.permute.xlu2 %v4867_v59  ;;  %v4459_v6 = vld [vmem:[%s5693_s2 + $0x10] sm:$0xff]  ;;  %v4458_v7 = vld [vmem:[%s5693_s2 + $0x8] sm:$0xff]  ;;  %v1192_v9 = vld [vmem:[%s5242_s17 + $0x20] sm:$0xff] }
  0xb0   : > { %1256 = vperm.xlu2 %4790, %v1198_v5   ;;  %v1201_v8 = vld [vmem:[%s5242_s17 + $0x68] sm:$0xff]  ;;  %v4457_v10 = vld [vmem:[%s5693_s2] sm:$0xff]  ;;  %v1202_v13 = vld [vmem:[%s5242_s17 + $0x70] sm:$0xff] }
  0xb1   : > { %1140 = vmatpush.bf16.msra.mxu0 %v4463_v60  ;;  %4634 = vmatpush.bf16.msra.mxu2 %v4463_v60  ;;  %v4449_v11 = vld [vmem:[%s5240_s16] sm:$0xff]  ;;  %v1203_v14 = vld [vmem:[%s5242_s17 + $0x78] sm:$0xff]  ;;  %v4450_v18 = vld [vmem:[%s5240_s16 + $0x8] sm:$0xff] }
  0xb2   : > { %v4453_v12 = vld [vmem:[%s5240_s16 + $0x20] sm:$0xff]  ;;  %v1199_v15 = vld [vmem:[%s5242_s17 + $0x58] sm:$0xff]  ;;  %v4454_v19 = vld [vmem:[%s5240_s16 + $0x28] sm:$0xff] }
  0xb3   : > { %v1200_v16 = vld [vmem:[%s5242_s17 + $0x60] sm:$0xff]  ;;  %v1195_v17 = vld [vmem:[%s5242_s17 + $0x38] sm:$0xff]  ;;  %v1193_v20 = vld [vmem:[%s5242_s17 + $0x28] sm:$0xff] }
  0xb4   : > { %v1194_v21 = vld [vmem:[%s5242_s17 + $0x30] sm:$0xff]  ;;  %v4452_v24 = vld [vmem:[%s5240_s16 + $0x18] sm:$0xff]  ;;  %v4470_v28 = vld [vmem:[%s5694_s3 + $0x28] sm:$0xff] }
  0xb5   : > { %1141 = vmatpush.bf16.msra.mxu0 %v4462_v62  ;;  %4635 = vmatpush.bf16.msra.mxu2 %v4462_v62  ;;  %v4451_v22 = vld [vmem:[%s5240_s16 + $0x10] sm:$0xff]  ;;  %v4456_v25 = vld [vmem:[%s5240_s16 + $0x38] sm:$0xff]  ;;  %v4469_v29 = vld [vmem:[%s5694_s3 + $0x20] sm:$0xff] }
  0xb6   : > { %1251 = vperm.xlu0 %4788, %v1197_v63   ;;  %1211 = vperm.xlu1 %4789, %v1189_v0   ;;  %v4455_v23 = vld [vmem:[%s5240_s16 + $0x30] sm:$0xff]  ;;  %v4472_v26 = vld [vmem:[%s5694_s3 + $0x38] sm:$0xff]  ;;  %v4466_v32 = vld [vmem:[%s5694_s3 + $0x8] sm:$0xff] }
  0xb7   : > { %1388 = vmatpush.bf16.msra.mxu1 %v4472_v26  ;;  %4641 = vmatpush.bf16.msra.mxu3 %v4472_v26  ;;  %v4471_v27 = vld [vmem:[%s5694_s3 + $0x30] sm:$0xff]  ;;  %v4468_v30 = vld [vmem:[%s5694_s3 + $0x18] sm:$0xff]  ;;  %v4465_v33 = vld [vmem:[%s5694_s3] sm:$0xff] }
  0xb8   : > { %1261 = vperm.xlu2 %4790, %v1199_v15   ;;  %v4467_v31 = vld [vmem:[%s5694_s3 + $0x10] sm:$0xff] }
  0xb9   : > { %1142 = vmatpush.bf16.msra.mxu0 %v4461_v1  ;;  %4636 = vmatpush.bf16.msra.mxu2 %v4461_v1  ;;  %v1300_v26 = vld [vmem:[#allocation2 + $0x30] sm:$0xff] }
  0xbb   : > { %1389 = vmatpush.bf16.msra.mxu1 %v4471_v27  ;;  %4642 = vmatpush.bf16.msra.mxu3 %v4471_v27 }
  0xbd   : > { %1143 = vmatpush.bf16.msra.mxu0 %v4460_v2  ;;  %4637 = vmatpush.bf16.msra.mxu2 %v4460_v2 }
  0xbe   : > { %1216 = vperm.xlu0 %4788, %v1190_v3   ;;  %1221 = vperm.xlu1 %4789, %v1191_v4  }
  0xbf   : > { %1390 = vmatpush.bf16.msra.mxu1 %v4470_v28  ;;  %4643 = vmatpush.bf16.msra.mxu3 %v4470_v28 }
  0xc0   : > { %1266 = vperm.xlu2 %4790, %v1200_v16  }
  0xc1   : > { %1144 = vmatpush.bf16.msra.mxu0 %v4459_v6  ;;  %4638 = vmatpush.bf16.msra.mxu2 %v4459_v6 }
  0xc3   : > { %1391 = vmatpush.bf16.msra.mxu1 %v4469_v29  ;;  %4644 = vmatpush.bf16.msra.mxu3 %v4469_v29  ;;  %v1301_v29 = vld [vmem:[#allocation2] sm:$0xff] }
  0xc5   : > { %1145 = vmatpush.bf16.msra.mxu0 %v4458_v7  ;;  %4639 = vmatpush.bf16.msra.mxu2 %v4458_v7 }
  0xc6   : > { %1271 = vperm.xlu0 %4788, %v1201_v8   ;;  %1226 = vperm.xlu1 %4789, %v1192_v9  }
  0xc7   : > { %1392 = vmatpush.bf16.msra.mxu1 %v4468_v30  ;;  %4645 = vmatpush.bf16.msra.mxu3 %v4468_v30 }
  0xc8   : > { %1231 = vperm.xlu2 %4790, %v1193_v20  }
  0xc9   : > { %1146 = vmatpush.bf16.msra.mxu0 %v4457_v10  ;;  %4640 = vmatpush.bf16.msra.mxu2 %v4457_v10 }
  0xcb   : > { %1393 = vmatpush.bf16.msra.mxu1 %v4467_v31  ;;  %4646 = vmatpush.bf16.msra.mxu3 %v4467_v31 }
  0xcc   : > { %1147 = vmatmul.bf16.vlgmr.msra.gmra.mxu0 %v4449_v11  ;;  %1167 = vmatmul.bf16.vlgmr.msra.gmra.mxu2 %v4453_v12 }
  0xce   : > { %1276 = vperm.xlu0 %4788, %v1202_v13   ;;  %1281 = vperm.xlu1 %4789, %v1203_v14  }
  0xcf   : > { %1394 = vmatpush.bf16.msra.mxu1 %v4466_v32  ;;  %4647 = vmatpush.bf16.msra.mxu3 %v4466_v32  ;;  %v1308_v32 = vld [vmem:[#allocation2 + $0x40] sm:$0xff] }
  0xd0   : > { %1236 = vperm.xlu2 %4790, %v1194_v21  }
  0xd3   : > { %1395 = vmatpush.bf16.msra.mxu1 %v4465_v33  ;;  %4648 = vmatpush.bf16.msra.mxu3 %v4465_v33 }
  0xd6   : > { %1241 = vperm.xlu0 %4788, %v1195_v17  }
  0xdc   : > { %1152 = vmatmul.bf16.gmra.mxu0 %v4450_v18  ;;  %1172 = vmatmul.bf16.gmra.mxu2 %v4454_v19 }
  0xec   : > { %1157 = vmatmul.bf16.gmra.mxu0 %v4451_v22  ;;  %1177 = vmatmul.bf16.gmra.mxu2 %v4455_v23 }
  0xfc   : > { %1162 = vmatmul.bf16.gmra.mxu0 %v4452_v24  ;;  %1182 = vmatmul.bf16.gmra.mxu2 %v4456_v25 }
 0x10a   : > { %v1257_v41 = vpop.permute.xlu2 %1256 }
 0x112   : > { %v1262_v50 = vpop.permute.xlu2 %1261 }
 0x11a   : > { %v1267_v58 = vpop.permute.xlu2 %1266 }
 0x120   : > { %v1207_v34 = vpop.permute.xlu1 %1206  ;;  %v1247_v36 = vpop.permute.xlu0 %1246 }
 0x122   : > { %v1232_v2 = vpop.permute.xlu2 %1231 }
 0x128   : > { %v1212_v39 = vpop.permute.xlu1 %1211  ;;  %v1252_v44 = vpop.permute.xlu0 %1251 }
 0x12a   : > { %v1237_v15 = vpop.permute.xlu2 %1236 }
 0x130   : > { %v1217_v52 = vpop.permute.xlu0 %1216  ;;  %v1222_v53 = vpop.permute.xlu1 %1221 }
 0x138   : > { %v1272_v0 = vpop.permute.xlu0 %1271  ;;  %v1227_v3 = vpop.permute.xlu1 %1226 }
 0x140   : > { %v1277_v8 = vpop.permute.xlu0 %1276  ;;  %v1282_v21 = vpop.permute.xlu1 %1281 }
 0x148   : > { %v1242_v16 = vpop.permute.xlu0 %1241 }
 0x149   : > { %v1148_v35 = vpop.f32.mrf.mxu0 }
 0x14a   : > { %v1284_v38 = vmul.f32 %v1207_v34, %v1148_v35  ;;  %v1302_v35 = vld [vmem:[#allocation2 + $0x58] sm:$0xff] }
 0x14f   : > { %v1168_v37 = vpop.f32.mrf.mxu2 }
 0x150   : > { %v1292_v46 = vmul.f32 %v1247_v36, %v1168_v37 }
 0x151   : > { %v1150_v40 = vpop.f32.mrf.mxu0 }
 0x152   : > { %v1285_v42 = vmul.f32 %v1212_v39, %v1150_v40 }
 0x154   : > { %v1316_v43 = vpack.c.bf16 %v1285_v42, %v1284_v38  ;;  %v1309_v38 = vld [vmem:[#allocation2 + $0x20] sm:$0xff] }
 0x156   : > { %1396 = vmatmul.bf16.vlgmr.msra.gmra.mxu1 %v1316_v43 }
 0x157   : > { %v1170_v45 = vpop.f32.mrf.mxu2 }
 0x158   : > { %v1293_v47 = vmul.f32 %v1252_v44, %v1170_v45  ;;  %v1310_v44 = vld [vmem:[#allocation2 + $0x10] sm:$0xff] }
 0x159   : > { %v1153_v48 = vpop.f32.mrf.mxu0 }
 0x15a   : > { %v1320_v49 = vpack.c.bf16 %v1293_v47, %v1292_v46  ;;  %v1286_v55 = vmul.f32 %v1217_v52, %v1153_v48  ;;  %v1304_v47 = vld [vmem:[#allocation2 + $0x50] sm:$0xff] }
 0x15c   : > { %1416 = vmatmul.bf16.vlgmr.msra.gmra.mxu3 %v1320_v49 }
 0x15f   : > { %v1173_v51 = vpop.f32.mrf.mxu2 }
 0x160   : > { %v1294_v60 = vmul.f32 %v1257_v41, %v1173_v51  ;;  %v1303_v41 = vld [vmem:[#allocation2 + $0x18] sm:$0xff] }
 0x161   : > { %v1155_v54 = vpop.f32.mrf.mxu0 }
 0x162   : > { %v1287_v56 = vmul.f32 %v1222_v53, %v1155_v54  ;;  %v1305_v53 = vld [vmem:[#allocation2 + $0x68] sm:$0xff] }
 0x164   : > { %v1317_v57 = vpack.c.bf16 %v1287_v56, %v1286_v55  ;;  %v1312_v56 = vld [vmem:[#allocation2 + $0x60] sm:$0xff] }
 0x166   : > { %1401 = vmatmul.bf16.gmra.mxu1 %v1317_v57 }
 0x167   : > { %v1175_v59 = vpop.f32.mrf.mxu2 }
 0x168   : > { %v1295_v61 = vmul.f32 %v1262_v50, %v1175_v59  ;;  %v1311_v50 = vld [vmem:[#allocation2 + $0x38] sm:$0xff]  ;;  %v1306_v59 = vld [vmem:[#allocation2 + $0x8] sm:$0xff] }
 0x169   : > { %v1158_v62 = vpop.f32.mrf.mxu0 }
 0x16a   : > { %v1321_v63 = vpack.c.bf16 %v1295_v61, %v1294_v60  ;;  %v1288_v5 = vmul.f32 %v1227_v3, %v1158_v62  ;;  %v1313_v62 = vld [vmem:[#allocation2 + $0x70] sm:$0xff] }
 0x16c   : > { %1421 = vmatmul.bf16.gmra.mxu3 %v1321_v63 }
 0x16f   : > { %v1178_v1 = vpop.f32.mrf.mxu2 }
 0x170   : > { %v1296_v10 = vmul.f32 %v1267_v58, %v1178_v1  ;;  %v1307_v1 = vld [vmem:[#allocation2 + $0x48] sm:$0xff] }
 0x171   : > { %v1160_v4 = vpop.f32.mrf.mxu0 }
 0x172   : > { %v1289_v6 = vmul.f32 %v1232_v2, %v1160_v4  ;;  %v1314_v4 = vld [vmem:[#allocation2 + $0x78] sm:$0xff] }
 0x174   : > { %v1318_v7 = vpack.c.bf16 %v1289_v6, %v1288_v5 }
 0x176   : > { %1406 = vmatmul.bf16.gmra.mxu1 %v1318_v7  ;;  %v1315_v7 = vld [vmem:[#allocation2 + $0x28] sm:$0xff] }
 0x177   : > { %v1180_v9 = vpop.f32.mrf.mxu2 }
 0x178   : > { %v1297_v11 = vmul.f32 %v1272_v0, %v1180_v9 }
 0x179   : > { %v1163_v12 = vpop.f32.mrf.mxu0 }
 0x17a   : > { %v1322_v13 = vpack.c.bf16 %v1297_v11, %v1296_v10  ;;  %v1290_v18 = vmul.f32 %v1237_v15, %v1163_v12 }
 0x17c   : > { %1426 = vmatmul.bf16.gmra.mxu3 %v1322_v13 }
 0x17f   : > { %v1183_v14 = vpop.f32.mrf.mxu2 }
 0x180   : > { %v1298_v23 = vmul.f32 %v1277_v8, %v1183_v14 }
 0x181   : > { %v1165_v17 = vpop.f32.mrf.mxu0 }
 0x182   : > { %v1291_v19 = vmul.f32 %v1242_v16, %v1165_v17 }
 0x184   : > { %v1319_v20 = vpack.c.bf16 %v1291_v19, %v1290_v18 }
 0x186   : > { %1411 = vmatmul.bf16.gmra.mxu1 %v1319_v20 }
 0x187   : > { %v1185_v22 = vpop.f32.mrf.mxu2 }
 0x188   : > { %v1299_v24 = vmul.f32 %v1282_v21, %v1185_v22 }
 0x18a   : > { %v1323_v25 = vpack.c.bf16 %v1299_v24, %v1298_v23 }
 0x18c   : > { %1431 = vmatmul.bf16.gmra.mxu3 %v1323_v25 }
 0x1d3   : > { %v1397_v27 = vpop.f32.mrf.mxu1 }
 0x1d4   : > { %v1437_v28 = vadd.f32 %v1397_v27, %v1300_v26 }
 0x1d6   : > { %1453 = vst [vmem:[#allocation2 + $0x30] sm:$0xff] %v1437_v28 }
 0x1db   : > { %v1399_v30 = vpop.f32.mrf.mxu1 }
 0x1dc   : > { %v1438_v31 = vadd.f32 %v1399_v30, %v1301_v29 }
 0x1de   : > { %1454 = vst [vmem:[#allocation2] sm:$0xff] %v1438_v31 }
 0x1df   : > { %v1417_v33 = vpop.f32.mrf.mxu3 }
 0x1e0   : > { %v1445_v34 = vadd.f32 %v1417_v33, %v1308_v32 }
 0x1e2   : > { %1461 = vst [vmem:[#allocation2 + $0x40] sm:$0xff] %v1445_v34 }
 0x1e3   : > { %v1402_v36 = vpop.f32.mrf.mxu1 }
 0x1e4   : > { %v1439_v37 = vadd.f32 %v1402_v36, %v1302_v35 }
 0x1e6   : > { %1455 = vst [vmem:[#allocation2 + $0x58] sm:$0xff] %v1439_v37 }
 0x1e7   : > { %v1419_v39 = vpop.f32.mrf.mxu3 }
 0x1e8   : > { %v1446_v40 = vadd.f32 %v1419_v39, %v1309_v38 }
 0x1ea   : > { %1462 = vst [vmem:[#allocation2 + $0x20] sm:$0xff] %v1446_v40 }
 0x1eb   : > { %v1404_v42 = vpop.f32.mrf.mxu1 }
 0x1ec   : > { %v1440_v43 = vadd.f32 %v1404_v42, %v1303_v41 }
 0x1ee   : > { %1456 = vst [vmem:[#allocation2 + $0x18] sm:$0xff] %v1440_v43 }
 0x1ef   : > { %v1422_v45 = vpop.f32.mrf.mxu3 }
 0x1f0   : > { %v1447_v46 = vadd.f32 %v1422_v45, %v1310_v44 }
 0x1f2   : > { %1463 = vst [vmem:[#allocation2 + $0x10] sm:$0xff] %v1447_v46 }
 0x1f3   : > { %v1407_v48 = vpop.f32.mrf.mxu1 }
 0x1f4   : > { %v1441_v49 = vadd.f32 %v1407_v48, %v1304_v47 }
 0x1f6   : > { %1457 = vst [vmem:[#allocation2 + $0x50] sm:$0xff] %v1441_v49 }
 0x1f7   : > { %v1424_v51 = vpop.f32.mrf.mxu3 }
 0x1f8   : > { %v1448_v52 = vadd.f32 %v1424_v51, %v1311_v50 }
 0x1fa   : > { %1464 = vst [vmem:[#allocation2 + $0x38] sm:$0xff] %v1448_v52 }
 0x1fb   : > { %v1409_v54 = vpop.f32.mrf.mxu1 }
 0x1fc   : > { %v1442_v55 = vadd.f32 %v1409_v54, %v1305_v53 }
 0x1fe   : > { %1458 = vst [vmem:[#allocation2 + $0x68] sm:$0xff] %v1442_v55 }
 0x1ff   : > { %v1427_v57 = vpop.f32.mrf.mxu3 }
 0x200   : > { %v1449_v58 = vadd.f32 %v1427_v57, %v1312_v56 }
 0x202   : > { %1465 = vst [vmem:[#allocation2 + $0x60] sm:$0xff] %v1449_v58 }
 0x203   : > { %v1412_v60 = vpop.f32.mrf.mxu1 }
 0x204   : > { %v1443_v61 = vadd.f32 %v1412_v60, %v1306_v59 }
 0x206   : > { %1459 = vst [vmem:[#allocation2 + $0x8] sm:$0xff] %v1443_v61 }
 0x207   : > { %v1429_v63 = vpop.f32.mrf.mxu3 }
 0x208   : > { %v1450_v0 = vadd.f32 %v1429_v63, %v1313_v62 }
 0x20a   : > { %1466 = vst [vmem:[#allocation2 + $0x70] sm:$0xff] %v1450_v0 }
 0x20b   : > { %v1414_v2 = vpop.f32.mrf.mxu1 }
 0x20c   : > { %v1444_v3 = vadd.f32 %v1414_v2, %v1307_v1 }
 0x20e   : > { %1460 = vst [vmem:[#allocation2 + $0x48] sm:$0xff] %v1444_v3 }
 0x20f   : > { %v1432_v5 = vpop.f32.mrf.mxu3 }
 0x210   : > { %v1451_v6 = vadd.f32 %v1432_v5, %v1314_v4 }
 0x212   : > { %1467 = vst [vmem:[#allocation2 + $0x78] sm:$0xff] %v1451_v6 }
 0x217   : > { %v1434_v8 = vpop.f32.mrf.mxu3 }
 0x218   : > { %v1452_v9 = vadd.f32 %v1434_v8, %v1315_v7 }
 0x21a   : > { %1468 = vst [vmem:[#allocation2 + $0x28] sm:$0xff] %v1452_v9 }
 0x21b PF: > { %p1469_p2 = scmp.ge.s32.totalorder %s4930_s25, 0  ;;  %p1470_p3 = scmp.lt.s32.totalorder %s4930_s25, 1 }
 0x21d   : > { %p5322_p4 = pnand %p1470_p3, %p1469_p2 }
 0x21f   : > { %1474 = sbr.rel (%p5322_p4) target bundleno = 916 (0x394), region = 131 }
 0x224   : > { %v4488_v10 = vld [vmem:[%s5693_s2 + $0xb8] sm:$0xff]  ;;  %v3888_v11 = vld [vmem:[%s5242_s17 + $0xc0] sm:$0xff]  ;;  %v4868_v12 = vmov 0   ;;  %v4487_v13 = vld [vmem:[%s5693_s2 + $0xb0] sm:$0xff] }
 0x225   : > { %4791 = vset.pattern.permute.xlu0 %v4868_v12  ;;  %4792 = vset.pattern.permute.xlu1 %v4868_v12  ;;  %v3880_v14 = vld [vmem:[%s5242_s17 + $0x80] sm:$0xff]  ;;  %v4486_v15 = vld [vmem:[%s5693_s2 + $0xa8] sm:$0xff]  ;;  %v4484_v19 = vld [vmem:[%s5693_s2 + $0x98] sm:$0xff] }
 0x226   : > { %1604 = vmatpush.bf16.msra.mxu0 %v4488_v10  ;;  %4649 = vmatpush.bf16.msra.mxu2 %v4488_v10  ;;  %v3889_v16 = vld [vmem:[%s5242_s17 + $0xc8] sm:$0xff]  ;;  %v4485_v18 = vld [vmem:[%s5693_s2 + $0xa0] sm:$0xff]  ;;  %v3882_v20 = vld [vmem:[%s5242_s17 + $0x90] sm:$0xff] }
 0x227   : > { %1712 = vperm.xlu0 %4791, %v3888_v11   ;;  %1672 = vperm.xlu1 %4792, %v3880_v14   ;;  %v3881_v17 = vld [vmem:[%s5242_s17 + $0x88] sm:$0xff]  ;;  %v3883_v21 = vld [vmem:[%s5242_s17 + $0x98] sm:$0xff]  ;;  %v3890_v22 = vld [vmem:[%s5242_s17 + $0xd0] sm:$0xff] }
 0x228   : > { %4793 = vset.pattern.permute.xlu2 %v4868_v12  ;;  %v4483_v23 = vld [vmem:[%s5693_s2 + $0x90] sm:$0xff]  ;;  %v4482_v24 = vld [vmem:[%s5693_s2 + $0x88] sm:$0xff]  ;;  %v3884_v26 = vld [vmem:[%s5242_s17 + $0xa0] sm:$0xff] }
 0x229   : > { %1722 = vperm.xlu2 %4793, %v3890_v22   ;;  %v3893_v25 = vld [vmem:[%s5242_s17 + $0xe8] sm:$0xff]  ;;  %v4481_v27 = vld [vmem:[%s5693_s2 + $0x80] sm:$0xff]  ;;  %v3894_v30 = vld [vmem:[%s5242_s17 + $0xf0] sm:$0xff] }
 0x22a   : > { %1605 = vmatpush.bf16.msra.mxu0 %v4487_v13  ;;  %4650 = vmatpush.bf16.msra.mxu2 %v4487_v13  ;;  %v4473_v28 = vld [vmem:[%s5240_s16 + $0x40] sm:$0xff]  ;;  %v3895_v31 = vld [vmem:[%s5242_s17 + $0xf8] sm:$0xff]  ;;  %v4474_v35 = vld [vmem:[%s5240_s16 + $0x48] sm:$0xff] }
 0x22b   : > { %v4477_v29 = vld [vmem:[%s5240_s16 + $0x60] sm:$0xff]  ;;  %v3891_v32 = vld [vmem:[%s5242_s17 + $0xd8] sm:$0xff]  ;;  %v4478_v36 = vld [vmem:[%s5240_s16 + $0x68] sm:$0xff] }
 0x22c   : > { %v3892_v33 = vld [vmem:[%s5242_s17 + $0xe0] sm:$0xff]  ;;  %v3887_v34 = vld [vmem:[%s5242_s17 + $0xb8] sm:$0xff]  ;;  %v3885_v37 = vld [vmem:[%s5242_s17 + $0xa8] sm:$0xff] }
 0x22d   : > { %v3886_v38 = vld [vmem:[%s5242_s17 + $0xb0] sm:$0xff]  ;;  %v4476_v41 = vld [vmem:[%s5240_s16 + $0x58] sm:$0xff]  ;;  %v4494_v45 = vld [vmem:[%s5694_s3 + $0x68] sm:$0xff] }
 0x22e   : > { %1606 = vmatpush.bf16.msra.mxu0 %v4486_v15  ;;  %4651 = vmatpush.bf16.msra.mxu2 %v4486_v15  ;;  %v4475_v39 = vld [vmem:[%s5240_s16 + $0x50] sm:$0xff]  ;;  %v4480_v42 = vld [vmem:[%s5240_s16 + $0x78] sm:$0xff]  ;;  %v4493_v46 = vld [vmem:[%s5694_s3 + $0x60] sm:$0xff] }
 0x22f   : > { %1717 = vperm.xlu0 %4791, %v3889_v16   ;;  %1677 = vperm.xlu1 %4792, %v3881_v17   ;;  %v4479_v40 = vld [vmem:[%s5240_s16 + $0x70] sm:$0xff]  ;;  %v4496_v43 = vld [vmem:[%s5694_s3 + $0x78] sm:$0xff]  ;;  %v4490_v49 = vld [vmem:[%s5694_s3 + $0x48] sm:$0xff] }
 0x230   : > { %1855 = vmatpush.bf16.msra.mxu1 %v4496_v43  ;;  %4657 = vmatpush.bf16.msra.mxu3 %v4496_v43  ;;  %v4495_v44 = vld [vmem:[%s5694_s3 + $0x70] sm:$0xff]  ;;  %v4492_v47 = vld [vmem:[%s5694_s3 + $0x58] sm:$0xff]  ;;  %v4489_v50 = vld [vmem:[%s5694_s3 + $0x40] sm:$0xff] }
 0x231   : > { %1727 = vperm.xlu2 %4793, %v3891_v32   ;;  %v4491_v48 = vld [vmem:[%s5694_s3 + $0x50] sm:$0xff] }
 0x232   : > { %1607 = vmatpush.bf16.msra.mxu0 %v4485_v18  ;;  %4652 = vmatpush.bf16.msra.mxu2 %v4485_v18  ;;  %v1766_v43 = vld [vmem:[#allocation2 + $0x30] sm:$0xff] }
 0x234   : > { %1856 = vmatpush.bf16.msra.mxu1 %v4495_v44  ;;  %4658 = vmatpush.bf16.msra.mxu3 %v4495_v44 }
 0x236   : > { %1608 = vmatpush.bf16.msra.mxu0 %v4484_v19  ;;  %4653 = vmatpush.bf16.msra.mxu2 %v4484_v19 }
 0x237   : > { %1682 = vperm.xlu0 %4791, %v3882_v20   ;;  %1687 = vperm.xlu1 %4792, %v3883_v21  }
 0x238   : > { %1857 = vmatpush.bf16.msra.mxu1 %v4494_v45  ;;  %4659 = vmatpush.bf16.msra.mxu3 %v4494_v45 }
 0x239   : > { %1732 = vperm.xlu2 %4793, %v3892_v33  }
 0x23a   : > { %1609 = vmatpush.bf16.msra.mxu0 %v4483_v23  ;;  %4654 = vmatpush.bf16.msra.mxu2 %v4483_v23 }
 0x23c   : > { %1858 = vmatpush.bf16.msra.mxu1 %v4493_v46  ;;  %4660 = vmatpush.bf16.msra.mxu3 %v4493_v46  ;;  %v1767_v46 = vld [vmem:[#allocation2] sm:$0xff] }
 0x23e   : > { %1610 = vmatpush.bf16.msra.mxu0 %v4482_v24  ;;  %4655 = vmatpush.bf16.msra.mxu2 %v4482_v24 }
 0x23f   : > { %1737 = vperm.xlu0 %4791, %v3893_v25   ;;  %1692 = vperm.xlu1 %4792, %v3884_v26  }
 0x240   : > { %1859 = vmatpush.bf16.msra.mxu1 %v4492_v47  ;;  %4661 = vmatpush.bf16.msra.mxu3 %v4492_v47 }
 0x241   : > { %1697 = vperm.xlu2 %4793, %v3885_v37  }
 0x242   : > { %1611 = vmatpush.bf16.msra.mxu0 %v4481_v27  ;;  %4656 = vmatpush.bf16.msra.mxu2 %v4481_v27 }
 0x244   : > { %1860 = vmatpush.bf16.msra.mxu1 %v4491_v48  ;;  %4662 = vmatpush.bf16.msra.mxu3 %v4491_v48 }
 0x245   : > { %1612 = vmatmul.bf16.vlgmr.msra.gmra.mxu0 %v4473_v28  ;;  %1632 = vmatmul.bf16.vlgmr.msra.gmra.mxu2 %v4477_v29 }
 0x247   : > { %1742 = vperm.xlu0 %4791, %v3894_v30   ;;  %1747 = vperm.xlu1 %4792, %v3895_v31  }
 0x248   : > { %1861 = vmatpush.bf16.msra.mxu1 %v4490_v49  ;;  %4663 = vmatpush.bf16.msra.mxu3 %v4490_v49  ;;  %v1774_v49 = vld [vmem:[#allocation2 + $0x40] sm:$0xff] }
 0x249   : > { %1702 = vperm.xlu2 %4793, %v3886_v38  }
 0x24c   : > { %1862 = vmatpush.bf16.msra.mxu1 %v4489_v50  ;;  %4664 = vmatpush.bf16.msra.mxu3 %v4489_v50 }
 0x24f   : > { %1707 = vperm.xlu0 %4791, %v3887_v34  }
 0x255   : > { %1617 = vmatmul.bf16.gmra.mxu0 %v4474_v35  ;;  %1637 = vmatmul.bf16.gmra.mxu2 %v4478_v36 }
 0x265   : > { %1622 = vmatmul.bf16.gmra.mxu0 %v4475_v39  ;;  %1642 = vmatmul.bf16.gmra.mxu2 %v4479_v40 }
 0x275   : > { %1627 = vmatmul.bf16.gmra.mxu0 %v4476_v41  ;;  %1647 = vmatmul.bf16.gmra.mxu2 %v4480_v42 }
 0x283   : > { %v1723_v58 = vpop.permute.xlu2 %1722 }
 0x28b   : > { %v1728_v3 = vpop.permute.xlu2 %1727 }
 0x293   : > { %v1733_v11 = vpop.permute.xlu2 %1732 }
 0x299   : > { %v1673_v51 = vpop.permute.xlu1 %1672  ;;  %v1713_v53 = vpop.permute.xlu0 %1712 }
 0x29b   : > { %v1698_v19 = vpop.permute.xlu2 %1697 }
 0x2a1   : > { %v1678_v56 = vpop.permute.xlu1 %1677  ;;  %v1718_v61 = vpop.permute.xlu0 %1717 }
 0x2a3   : > { %v1703_v32 = vpop.permute.xlu2 %1702 }
 0x2a9   : > { %v1683_v5 = vpop.permute.xlu0 %1682  ;;  %v1688_v6 = vpop.permute.xlu1 %1687 }
 0x2b1   : > { %v1738_v17 = vpop.permute.xlu0 %1737  ;;  %v1693_v20 = vpop.permute.xlu1 %1692 }
 0x2b9   : > { %v1743_v25 = vpop.permute.xlu0 %1742  ;;  %v1748_v38 = vpop.permute.xlu1 %1747 }
 0x2c1   : > { %v1708_v33 = vpop.permute.xlu0 %1707 }
 0x2c2   : > { %v1613_v52 = vpop.f32.mrf.mxu0 }
 0x2c3   : > { %v1750_v55 = vmul.f32 %v1673_v51, %v1613_v52  ;;  %v1768_v52 = vld [vmem:[#allocation2 + $0x58] sm:$0xff] }
 0x2c8   : > { %v1633_v54 = vpop.f32.mrf.mxu2 }
 0x2c9   : > { %v1758_v63 = vmul.f32 %v1713_v53, %v1633_v54 }
 0x2ca   : > { %v1615_v57 = vpop.f32.mrf.mxu0 }
 0x2cb   : > { %v1751_v59 = vmul.f32 %v1678_v56, %v1615_v57 }
 0x2cd   : > { %v1782_v60 = vpack.c.bf16 %v1751_v59, %v1750_v55  ;;  %v1775_v55 = vld [vmem:[#allocation2 + $0x20] sm:$0xff] }
 0x2cf   : > { %1863 = vmatmul.bf16.vlgmr.msra.gmra.mxu1 %v1782_v60 }
 0x2d0   : > { %v1635_v62 = vpop.f32.mrf.mxu2 }
 0x2d1   : > { %v1759_v0 = vmul.f32 %v1718_v61, %v1635_v62  ;;  %v1776_v61 = vld [vmem:[#allocation2 + $0x10] sm:$0xff] }
 0x2d2   : > { %v1618_v1 = vpop.f32.mrf.mxu0 }
 0x2d3   : > { %v1786_v2 = vpack.c.bf16 %v1759_v0, %v1758_v63  ;;  %v1752_v8 = vmul.f32 %v1683_v5, %v1618_v1  ;;  %v1770_v0 = vld [vmem:[#allocation2 + $0x50] sm:$0xff] }
 0x2d5   : > { %1883 = vmatmul.bf16.vlgmr.msra.gmra.mxu3 %v1786_v2 }
 0x2d8   : > { %v1638_v4 = vpop.f32.mrf.mxu2 }
 0x2d9   : > { %v1760_v13 = vmul.f32 %v1723_v58, %v1638_v4  ;;  %v1769_v58 = vld [vmem:[#allocation2 + $0x18] sm:$0xff] }
 0x2da   : > { %v1620_v7 = vpop.f32.mrf.mxu0 }
 0x2db   : > { %v1753_v9 = vmul.f32 %v1688_v6, %v1620_v7  ;;  %v1771_v6 = vld [vmem:[#allocation2 + $0x68] sm:$0xff] }
 0x2dd   : > { %v1783_v10 = vpack.c.bf16 %v1753_v9, %v1752_v8  ;;  %v1778_v9 = vld [vmem:[#allocation2 + $0x60] sm:$0xff] }
 0x2df   : > { %1868 = vmatmul.bf16.gmra.mxu1 %v1783_v10 }
 0x2e0   : > { %v1640_v12 = vpop.f32.mrf.mxu2 }
 0x2e1   : > { %v1761_v14 = vmul.f32 %v1728_v3, %v1640_v12  ;;  %v1777_v3 = vld [vmem:[#allocation2 + $0x38] sm:$0xff]  ;;  %v1772_v12 = vld [vmem:[#allocation2 + $0x8] sm:$0xff] }
 0x2e2   : > { %v1623_v15 = vpop.f32.mrf.mxu0 }
 0x2e3   : > { %v1787_v16 = vpack.c.bf16 %v1761_v14, %v1760_v13  ;;  %v1754_v22 = vmul.f32 %v1693_v20, %v1623_v15  ;;  %v1779_v15 = vld [vmem:[#allocation2 + $0x70] sm:$0xff] }
 0x2e5   : > { %1888 = vmatmul.bf16.gmra.mxu3 %v1787_v16 }
 0x2e8   : > { %v1643_v18 = vpop.f32.mrf.mxu2 }
 0x2e9   : > { %v1762_v27 = vmul.f32 %v1733_v11, %v1643_v18  ;;  %v1773_v18 = vld [vmem:[#allocation2 + $0x48] sm:$0xff] }
 0x2ea   : > { %v1625_v21 = vpop.f32.mrf.mxu0 }
 0x2eb   : > { %v1755_v23 = vmul.f32 %v1698_v19, %v1625_v21  ;;  %v1780_v21 = vld [vmem:[#allocation2 + $0x78] sm:$0xff] }
 0x2ed   : > { %v1784_v24 = vpack.c.bf16 %v1755_v23, %v1754_v22 }
 0x2ef   : > { %1873 = vmatmul.bf16.gmra.mxu1 %v1784_v24  ;;  %v1781_v24 = vld [vmem:[#allocation2 + $0x28] sm:$0xff] }
 0x2f0   : > { %v1645_v26 = vpop.f32.mrf.mxu2 }
 0x2f1   : > { %v1763_v28 = vmul.f32 %v1738_v17, %v1645_v26 }
 0x2f2   : > { %v1628_v29 = vpop.f32.mrf.mxu0 }
 0x2f3   : > { %v1788_v30 = vpack.c.bf16 %v1763_v28, %v1762_v27  ;;  %v1756_v35 = vmul.f32 %v1703_v32, %v1628_v29 }
 0x2f5   : > { %1893 = vmatmul.bf16.gmra.mxu3 %v1788_v30 }
 0x2f8   : > { %v1648_v31 = vpop.f32.mrf.mxu2 }
 0x2f9   : > { %v1764_v40 = vmul.f32 %v1743_v25, %v1648_v31 }
 0x2fa   : > { %v1630_v34 = vpop.f32.mrf.mxu0 }
 0x2fb   : > { %v1757_v36 = vmul.f32 %v1708_v33, %v1630_v34 }
 0x2fd   : > { %v1785_v37 = vpack.c.bf16 %v1757_v36, %v1756_v35 }
 0x2ff   : > { %1878 = vmatmul.bf16.gmra.mxu1 %v1785_v37 }
 0x300   : > { %v1650_v39 = vpop.f32.mrf.mxu2 }
 0x301   : > { %v1765_v41 = vmul.f32 %v1748_v38, %v1650_v39 }
 0x303   : > { %v1789_v42 = vpack.c.bf16 %v1765_v41, %v1764_v40 }
 0x305   : > { %1898 = vmatmul.bf16.gmra.mxu3 %v1789_v42 }
 0x34c   : > { %v1864_v44 = vpop.f32.mrf.mxu1 }
 0x34d   : > { %v1904_v45 = vadd.f32 %v1864_v44, %v1766_v43 }
 0x34f   : > { %1920 = vst [vmem:[#allocation2 + $0x30] sm:$0xff] %v1904_v45 }
 0x354   : > { %v1866_v47 = vpop.f32.mrf.mxu1 }
 0x355   : > { %v1905_v48 = vadd.f32 %v1866_v47, %v1767_v46 }
 0x357   : > { %1921 = vst [vmem:[#allocation2] sm:$0xff] %v1905_v48 }
 0x358   : > { %v1884_v50 = vpop.f32.mrf.mxu3 }
 0x359   : > { %v1912_v51 = vadd.f32 %v1884_v50, %v1774_v49 }
 0x35b   : > { %1928 = vst [vmem:[#allocation2 + $0x40] sm:$0xff] %v1912_v51 }
 0x35c   : > { %v1869_v53 = vpop.f32.mrf.mxu1 }
 0x35d   : > { %v1906_v54 = vadd.f32 %v1869_v53, %v1768_v52 }
 0x35f   : > { %1922 = vst [vmem:[#allocation2 + $0x58] sm:$0xff] %v1906_v54 }
 0x360   : > { %v1886_v56 = vpop.f32.mrf.mxu3 }
 0x361   : > { %v1913_v57 = vadd.f32 %v1886_v56, %v1775_v55 }
 0x363   : > { %1929 = vst [vmem:[#allocation2 + $0x20] sm:$0xff] %v1913_v57 }
 0x364   : > { %v1871_v59 = vpop.f32.mrf.mxu1 }
 0x365   : > { %v1907_v60 = vadd.f32 %v1871_v59, %v1769_v58 }
 0x367   : > { %1923 = vst [vmem:[#allocation2 + $0x18] sm:$0xff] %v1907_v60 }
 0x368   : > { %v1889_v62 = vpop.f32.mrf.mxu3 }
 0x369   : > { %v1914_v63 = vadd.f32 %v1889_v62, %v1776_v61 }
 0x36b   : > { %1930 = vst [vmem:[#allocation2 + $0x10] sm:$0xff] %v1914_v63 }
 0x36c   : > { %v1874_v1 = vpop.f32.mrf.mxu1 }
 0x36d   : > { %v1908_v2 = vadd.f32 %v1874_v1, %v1770_v0 }
 0x36f   : > { %1924 = vst [vmem:[#allocation2 + $0x50] sm:$0xff] %v1908_v2 }
 0x370   : > { %v1891_v4 = vpop.f32.mrf.mxu3 }
 0x371   : > { %v1915_v5 = vadd.f32 %v1891_v4, %v1777_v3 }
 0x373   : > { %1931 = vst [vmem:[#allocation2 + $0x38] sm:$0xff] %v1915_v5 }
 0x374   : > { %v1876_v7 = vpop.f32.mrf.mxu1 }
 0x375   : > { %v1909_v8 = vadd.f32 %v1876_v7, %v1771_v6 }
 0x377   : > { %1925 = vst [vmem:[#allocation2 + $0x68] sm:$0xff] %v1909_v8 }
 0x378   : > { %v1894_v10 = vpop.f32.mrf.mxu3 }
 0x379   : > { %v1916_v11 = vadd.f32 %v1894_v10, %v1778_v9 }
 0x37b   : > { %1932 = vst [vmem:[#allocation2 + $0x60] sm:$0xff] %v1916_v11 }
 0x37c   : > { %v1879_v13 = vpop.f32.mrf.mxu1 }
 0x37d   : > { %v1910_v14 = vadd.f32 %v1879_v13, %v1772_v12 }
 0x37f   : > { %1926 = vst [vmem:[#allocation2 + $0x8] sm:$0xff] %v1910_v14 }
 0x380   : > { %v1896_v16 = vpop.f32.mrf.mxu3 }
 0x381   : > { %v1917_v17 = vadd.f32 %v1896_v16, %v1779_v15 }
 0x383   : > { %1933 = vst [vmem:[#allocation2 + $0x70] sm:$0xff] %v1917_v17 }
 0x384   : > { %v1881_v19 = vpop.f32.mrf.mxu1 }
 0x385   : > { %v1911_v20 = vadd.f32 %v1881_v19, %v1773_v18 }
 0x387   : > { %1927 = vst [vmem:[#allocation2 + $0x48] sm:$0xff] %v1911_v20 }
 0x388   : > { %v1899_v22 = vpop.f32.mrf.mxu3 }
 0x389   : > { %v1918_v23 = vadd.f32 %v1899_v22, %v1780_v21 }
 0x38b   : > { %1934 = vst [vmem:[#allocation2 + $0x78] sm:$0xff] %v1918_v23 }
 0x390   : > { %v1901_v25 = vpop.f32.mrf.mxu3 }
 0x391   : > { %v1919_v26 = vadd.f32 %v1901_v25, %v1781_v24 }
 0x393   : > { %1935 = vst [vmem:[#allocation2 + $0x28] sm:$0xff] %v1919_v26 }
 0x394 PF: > { %p1936_p5 = scmp.ge.s32.totalorder %s4930_s25, 1  ;;  %p1937_p7 = scmp.lt.s32.totalorder %s4930_s25, 2 }
 0x396   : > { %p1938_p9 = pnand %p1937_p7, %p1936_p5 }
 0x398   : > { %1941 = sbr.rel (%p1938_p9) target bundleno = 1293 (0x50d), region = 135 }
 0x39d   : > { %v4512_v27 = vld [vmem:[%s5693_s2 + $0x38] sm:$0xff]  ;;  %v4032_v28 = vld [vmem:[%s5242_s17 + $0x140] sm:$0xff]  ;;  %v4869_v29 = vmov 0   ;;  %v4511_v30 = vld [vmem:[%s5693_s2 + $0x30] sm:$0xff] }
 0x39e   : > { %4794 = vset.pattern.permute.xlu0 %v4869_v29  ;;  %4795 = vset.pattern.permute.xlu1 %v4869_v29  ;;  %v4024_v31 = vld [vmem:[%s5242_s17 + $0x100] sm:$0xff]  ;;  %v4510_v32 = vld [vmem:[%s5693_s2 + $0x28] sm:$0xff]  ;;  %v4508_v36 = vld [vmem:[%s5693_s2 + $0x18] sm:$0xff] }
 0x39f   : > { %2071 = vmatpush.bf16.msra.mxu0 %v4512_v27  ;;  %4665 = vmatpush.bf16.msra.mxu2 %v4512_v27  ;;  %v4033_v33 = vld [vmem:[%s5242_s17 + $0x148] sm:$0xff]  ;;  %v4509_v35 = vld [vmem:[%s5693_s2 + $0x20] sm:$0xff]  ;;  %v4026_v37 = vld [vmem:[%s5242_s17 + $0x110] sm:$0xff] }
 0x3a0   : > { %2179 = vperm.xlu0 %4794, %v4032_v28   ;;  %2139 = vperm.xlu1 %4795, %v4024_v31   ;;  %v4025_v34 = vld [vmem:[%s5242_s17 + $0x108] sm:$0xff]  ;;  %v4027_v38 = vld [vmem:[%s5242_s17 + $0x118] sm:$0xff]  ;;  %v4034_v39 = vld [vmem:[%s5242_s17 + $0x150] sm:$0xff] }
 0x3a1   : > { %4796 = vset.pattern.permute.xlu2 %v4869_v29  ;;  %v4507_v40 = vld [vmem:[%s5693_s2 + $0x10] sm:$0xff]  ;;  %v4506_v41 = vld [vmem:[%s5693_s2 + $0x8] sm:$0xff]  ;;  %v4028_v43 = vld [vmem:[%s5242_s17 + $0x120] sm:$0xff] }
 0x3a2   : > { %2189 = vperm.xlu2 %4796, %v4034_v39   ;;  %v4037_v42 = vld [vmem:[%s5242_s17 + $0x168] sm:$0xff]  ;;  %v4505_v44 = vld [vmem:[%s5693_s2] sm:$0xff]  ;;  %v4038_v47 = vld [vmem:[%s5242_s17 + $0x170] sm:$0xff] }
 0x3a3   : > { %2072 = vmatpush.bf16.msra.mxu0 %v4511_v30  ;;  %4666 = vmatpush.bf16.msra.mxu2 %v4511_v30  ;;  %v4497_v45 = vld [vmem:[%s5240_s16 + $0x80] sm:$0xff]  ;;  %v4039_v48 = vld [vmem:[%s5242_s17 + $0x178] sm:$0xff]  ;;  %v4498_v52 = vld [vmem:[%s5240_s16 + $0x88] sm:$0xff] }
 0x3a4   : > { %v4501_v46 = vld [vmem:[%s5240_s16 + $0xa0] sm:$0xff]  ;;  %v4035_v49 = vld [vmem:[%s5242_s17 + $0x158] sm:$0xff]  ;;  %v4502_v53 = vld [vmem:[%s5240_s16 + $0xa8] sm:$0xff] }
 0x3a5   : > { %v4036_v50 = vld [vmem:[%s5242_s17 + $0x160] sm:$0xff]  ;;  %v4031_v51 = vld [vmem:[%s5242_s17 + $0x138] sm:$0xff]  ;;  %v4029_v54 = vld [vmem:[%s5242_s17 + $0x128] sm:$0xff] }
 0x3a6   : > { %v4030_v55 = vld [vmem:[%s5242_s17 + $0x130] sm:$0xff]  ;;  %v4500_v58 = vld [vmem:[%s5240_s16 + $0x98] sm:$0xff]  ;;  %v4518_v62 = vld [vmem:[%s5694_s3 + $0xa8] sm:$0xff] }
 0x3a7   : > { %2073 = vmatpush.bf16.msra.mxu0 %v4510_v32  ;;  %4667 = vmatpush.bf16.msra.mxu2 %v4510_v32  ;;  %v4499_v56 = vld [vmem:[%s5240_s16 + $0x90] sm:$0xff]  ;;  %v4504_v59 = vld [vmem:[%s5240_s16 + $0xb8] sm:$0xff]  ;;  %v4517_v63 = vld [vmem:[%s5694_s3 + $0xa0] sm:$0xff] }
 0x3a8   : > { %2184 = vperm.xlu0 %4794, %v4033_v33   ;;  %2144 = vperm.xlu1 %4795, %v4025_v34   ;;  %v4503_v57 = vld [vmem:[%s5240_s16 + $0xb0] sm:$0xff]  ;;  %v4520_v60 = vld [vmem:[%s5694_s3 + $0xb8] sm:$0xff]  ;;  %v4514_v2 = vld [vmem:[%s5694_s3 + $0x88] sm:$0xff] }
 0x3a9   : > { %2322 = vmatpush.bf16.msra.mxu1 %v4520_v60  ;;  %4673 = vmatpush.bf16.msra.mxu3 %v4520_v60  ;;  %v4519_v61 = vld [vmem:[%s5694_s3 + $0xb0] sm:$0xff]  ;;  %v4516_v0 = vld [vmem:[%s5694_s3 + $0x98] sm:$0xff]  ;;  %v4513_v3 = vld [vmem:[%s5694_s3 + $0x80] sm:$0xff] }
 0x3aa   : > { %2194 = vperm.xlu2 %4796, %v4035_v49   ;;  %v4515_v1 = vld [vmem:[%s5694_s3 + $0x90] sm:$0xff] }
 0x3ab   : > { %2074 = vmatpush.bf16.msra.mxu0 %v4509_v35  ;;  %4668 = vmatpush.bf16.msra.mxu2 %v4509_v35  ;;  %v2233_v60 = vld [vmem:[#allocation2 + $0x30] sm:$0xff] }
 0x3ad   : > { %2323 = vmatpush.bf16.msra.mxu1 %v4519_v61  ;;  %4674 = vmatpush.bf16.msra.mxu3 %v4519_v61 }
 0x3af   : > { %2075 = vmatpush.bf16.msra.mxu0 %v4508_v36  ;;  %4669 = vmatpush.bf16.msra.mxu2 %v4508_v36 }
 0x3b0   : > { %2149 = vperm.xlu0 %4794, %v4026_v37   ;;  %2154 = vperm.xlu1 %4795, %v4027_v38  }
 0x3b1   : > { %2324 = vmatpush.bf16.msra.mxu1 %v4518_v62  ;;  %4675 = vmatpush.bf16.msra.mxu3 %v4518_v62 }
 0x3b2   : > { %2199 = vperm.xlu2 %4796, %v4036_v50  }
 0x3b3   : > { %2076 = vmatpush.bf16.msra.mxu0 %v4507_v40  ;;  %4670 = vmatpush.bf16.msra.mxu2 %v4507_v40 }
 0x3b5   : > { %2325 = vmatpush.bf16.msra.mxu1 %v4517_v63  ;;  %4676 = vmatpush.bf16.msra.mxu3 %v4517_v63  ;;  %v2234_v63 = vld [vmem:[#allocation2] sm:$0xff] }
 0x3b7   : > { %2077 = vmatpush.bf16.msra.mxu0 %v4506_v41  ;;  %4671 = vmatpush.bf16.msra.mxu2 %v4506_v41 }
 0x3b8   : > { %2204 = vperm.xlu0 %4794, %v4037_v42   ;;  %2159 = vperm.xlu1 %4795, %v4028_v43  }
 0x3b9   : > { %2326 = vmatpush.bf16.msra.mxu1 %v4516_v0  ;;  %4677 = vmatpush.bf16.msra.mxu3 %v4516_v0 }
 0x3ba   : > { %2164 = vperm.xlu2 %4796, %v4029_v54  }
 0x3bb   : > { %2078 = vmatpush.bf16.msra.mxu0 %v4505_v44  ;;  %4672 = vmatpush.bf16.msra.mxu2 %v4505_v44 }
 0x3bd   : > { %2327 = vmatpush.bf16.msra.mxu1 %v4515_v1  ;;  %4678 = vmatpush.bf16.msra.mxu3 %v4515_v1 }
 0x3be   : > { %2079 = vmatmul.bf16.vlgmr.msra.gmra.mxu0 %v4497_v45  ;;  %2099 = vmatmul.bf16.vlgmr.msra.gmra.mxu2 %v4501_v46 }
 0x3c0   : > { %2209 = vperm.xlu0 %4794, %v4038_v47   ;;  %2214 = vperm.xlu1 %4795, %v4039_v48  }
 0x3c1   : > { %2328 = vmatpush.bf16.msra.mxu1 %v4514_v2  ;;  %4679 = vmatpush.bf16.msra.mxu3 %v4514_v2  ;;  %v2241_v2 = vld [vmem:[#allocation2 + $0x40] sm:$0xff] }
 0x3c2   : > { %2169 = vperm.xlu2 %4796, %v4030_v55  }
 0x3c5   : > { %2329 = vmatpush.bf16.msra.mxu1 %v4513_v3  ;;  %4680 = vmatpush.bf16.msra.mxu3 %v4513_v3 }
 0x3c8   : > { %2174 = vperm.xlu0 %4794, %v4031_v51  }
 0x3ce   : > { %2084 = vmatmul.bf16.gmra.mxu0 %v4498_v52  ;;  %2104 = vmatmul.bf16.gmra.mxu2 %v4502_v53 }
 0x3de   : > { %2089 = vmatmul.bf16.gmra.mxu0 %v4499_v56  ;;  %2109 = vmatmul.bf16.gmra.mxu2 %v4503_v57 }
 0x3ee   : > { %2094 = vmatmul.bf16.gmra.mxu0 %v4500_v58  ;;  %2114 = vmatmul.bf16.gmra.mxu2 %v4504_v59 }
 0x3fc   : > { %v2190_v11 = vpop.permute.xlu2 %2189 }
 0x404   : > { %v2195_v20 = vpop.permute.xlu2 %2194 }
 0x40c   : > { %v2200_v28 = vpop.permute.xlu2 %2199 }
 0x412   : > { %v2140_v4 = vpop.permute.xlu1 %2139  ;;  %v2180_v6 = vpop.permute.xlu0 %2179 }
 0x414   : > { %v2165_v36 = vpop.permute.xlu2 %2164 }
 0x41a   : > { %v2145_v9 = vpop.permute.xlu1 %2144  ;;  %v2185_v14 = vpop.permute.xlu0 %2184 }
 0x41c   : > { %v2170_v49 = vpop.permute.xlu2 %2169 }
 0x422   : > { %v2150_v22 = vpop.permute.xlu0 %2149  ;;  %v2155_v23 = vpop.permute.xlu1 %2154 }
 0x42a   : > { %v2205_v34 = vpop.permute.xlu0 %2204  ;;  %v2160_v37 = vpop.permute.xlu1 %2159 }
 0x432   : > { %v2210_v42 = vpop.permute.xlu0 %2209  ;;  %v2215_v55 = vpop.permute.xlu1 %2214 }
 0x43a   : > { %v2175_v50 = vpop.permute.xlu0 %2174 }
 0x43b   : > { %v2080_v5 = vpop.f32.mrf.mxu0 }
 0x43c   : > { %v2217_v8 = vmul.f32 %v2140_v4, %v2080_v5  ;;  %v2235_v5 = vld [vmem:[#allocation2 + $0x58] sm:$0xff] }
 0x441   : > { %v2100_v7 = vpop.f32.mrf.mxu2 }
 0x442   : > { %v2225_v16 = vmul.f32 %v2180_v6, %v2100_v7 }
 0x443   : > { %v2082_v10 = vpop.f32.mrf.mxu0 }
 0x444   : > { %v2218_v12 = vmul.f32 %v2145_v9, %v2082_v10 }
 0x446   : > { %v2249_v13 = vpack.c.bf16 %v2218_v12, %v2217_v8  ;;  %v2242_v8 = vld [vmem:[#allocation2 + $0x20] sm:$0xff] }
 0x448   : > { %2330 = vmatmul.bf16.vlgmr.msra.gmra.mxu1 %v2249_v13 }
 0x449   : > { %v2102_v15 = vpop.f32.mrf.mxu2 }
 0x44a   : > { %v2226_v17 = vmul.f32 %v2185_v14, %v2102_v15  ;;  %v2243_v14 = vld [vmem:[#allocation2 + $0x10] sm:$0xff] }
 0x44b   : > { %v2085_v18 = vpop.f32.mrf.mxu0 }
 0x44c   : > { %v2253_v19 = vpack.c.bf16 %v2226_v17, %v2225_v16  ;;  %v2219_v25 = vmul.f32 %v2150_v22, %v2085_v18  ;;  %v2237_v17 = vld [vmem:[#allocation2 + $0x50] sm:$0xff] }
 0x44e   : > { %2350 = vmatmul.bf16.vlgmr.msra.gmra.mxu3 %v2253_v19 }
 0x451   : > { %v2105_v21 = vpop.f32.mrf.mxu2 }
 0x452   : > { %v2227_v30 = vmul.f32 %v2190_v11, %v2105_v21  ;;  %v2236_v11 = vld [vmem:[#allocation2 + $0x18] sm:$0xff] }
 0x453   : > { %v2087_v24 = vpop.f32.mrf.mxu0 }
 0x454   : > { %v2220_v26 = vmul.f32 %v2155_v23, %v2087_v24  ;;  %v2238_v23 = vld [vmem:[#allocation2 + $0x68] sm:$0xff] }
 0x456   : > { %v2250_v27 = vpack.c.bf16 %v2220_v26, %v2219_v25  ;;  %v2245_v26 = vld [vmem:[#allocation2 + $0x60] sm:$0xff] }
 0x458   : > { %2335 = vmatmul.bf16.gmra.mxu1 %v2250_v27 }
 0x459   : > { %v2107_v29 = vpop.f32.mrf.mxu2 }
 0x45a   : > { %v2228_v31 = vmul.f32 %v2195_v20, %v2107_v29  ;;  %v2244_v20 = vld [vmem:[#allocation2 + $0x38] sm:$0xff]  ;;  %v2239_v29 = vld [vmem:[#allocation2 + $0x8] sm:$0xff] }
 0x45b   : > { %v2090_v32 = vpop.f32.mrf.mxu0 }
 0x45c   : > { %v2254_v33 = vpack.c.bf16 %v2228_v31, %v2227_v30  ;;  %v2221_v39 = vmul.f32 %v2160_v37, %v2090_v32  ;;  %v2246_v32 = vld [vmem:[#allocation2 + $0x70] sm:$0xff] }
 0x45e   : > { %2355 = vmatmul.bf16.gmra.mxu3 %v2254_v33 }
 0x461   : > { %v2110_v35 = vpop.f32.mrf.mxu2 }
 0x462   : > { %v2229_v44 = vmul.f32 %v2200_v28, %v2110_v35  ;;  %v2240_v35 = vld [vmem:[#allocation2 + $0x48] sm:$0xff] }
 0x463   : > { %v2092_v38 = vpop.f32.mrf.mxu0 }
 0x464   : > { %v2222_v40 = vmul.f32 %v2165_v36, %v2092_v38  ;;  %v2247_v38 = vld [vmem:[#allocation2 + $0x78] sm:$0xff] }
 0x466   : > { %v2251_v41 = vpack.c.bf16 %v2222_v40, %v2221_v39 }
 0x468   : > { %2340 = vmatmul.bf16.gmra.mxu1 %v2251_v41  ;;  %v2248_v41 = vld [vmem:[#allocation2 + $0x28] sm:$0xff] }
 0x469   : > { %v2112_v43 = vpop.f32.mrf.mxu2 }
 0x46a   : > { %v2230_v45 = vmul.f32 %v2205_v34, %v2112_v43 }
 0x46b   : > { %v2095_v46 = vpop.f32.mrf.mxu0 }
 0x46c   : > { %v2255_v47 = vpack.c.bf16 %v2230_v45, %v2229_v44  ;;  %v2223_v52 = vmul.f32 %v2170_v49, %v2095_v46 }
 0x46e   : > { %2360 = vmatmul.bf16.gmra.mxu3 %v2255_v47 }
 0x471   : > { %v2115_v48 = vpop.f32.mrf.mxu2 }
 0x472   : > { %v2231_v57 = vmul.f32 %v2210_v42, %v2115_v48 }
 0x473   : > { %v2097_v51 = vpop.f32.mrf.mxu0 }
 0x474   : > { %v2224_v53 = vmul.f32 %v2175_v50, %v2097_v51 }
 0x476   : > { %v2252_v54 = vpack.c.bf16 %v2224_v53, %v2223_v52 }
 0x478   : > { %2345 = vmatmul.bf16.gmra.mxu1 %v2252_v54 }
 0x479   : > { %v2117_v56 = vpop.f32.mrf.mxu2 }
 0x47a   : > { %v2232_v58 = vmul.f32 %v2215_v55, %v2117_v56 }
 0x47c   : > { %v2256_v59 = vpack.c.bf16 %v2232_v58, %v2231_v57 }
 0x47e   : > { %2365 = vmatmul.bf16.gmra.mxu3 %v2256_v59 }
 0x4c5   : > { %v2331_v61 = vpop.f32.mrf.mxu1 }
 0x4c6   : > { %v2371_v62 = vadd.f32 %v2331_v61, %v2233_v60 }
 0x4c8   : > { %2387 = vst [vmem:[#allocation2 + $0x30] sm:$0xff] %v2371_v62 }
 0x4cd   : > { %v2333_v0 = vpop.f32.mrf.mxu1 }
 0x4ce   : > { %v2372_v1 = vadd.f32 %v2333_v0, %v2234_v63 }
 0x4d0   : > { %2388 = vst [vmem:[#allocation2] sm:$0xff] %v2372_v1 }
 0x4d1   : > { %v2351_v3 = vpop.f32.mrf.mxu3 }
 0x4d2   : > { %v2379_v4 = vadd.f32 %v2351_v3, %v2241_v2 }
 0x4d4   : > { %2395 = vst [vmem:[#allocation2 + $0x40] sm:$0xff] %v2379_v4 }
 0x4d5   : > { %v2336_v6 = vpop.f32.mrf.mxu1 }
 0x4d6   : > { %v2373_v7 = vadd.f32 %v2336_v6, %v2235_v5 }
 0x4d8   : > { %2389 = vst [vmem:[#allocation2 + $0x58] sm:$0xff] %v2373_v7 }
 0x4d9   : > { %v2353_v9 = vpop.f32.mrf.mxu3 }
 0x4da   : > { %v2380_v10 = vadd.f32 %v2353_v9, %v2242_v8 }
 0x4dc   : > { %2396 = vst [vmem:[#allocation2 + $0x20] sm:$0xff] %v2380_v10 }
 0x4dd   : > { %v2338_v12 = vpop.f32.mrf.mxu1 }
 0x4de   : > { %v2374_v13 = vadd.f32 %v2338_v12, %v2236_v11 }
 0x4e0   : > { %2390 = vst [vmem:[#allocation2 + $0x18] sm:$0xff] %v2374_v13 }
 0x4e1   : > { %v2356_v15 = vpop.f32.mrf.mxu3 }
 0x4e2   : > { %v2381_v16 = vadd.f32 %v2356_v15, %v2243_v14 }
 0x4e4   : > { %2397 = vst [vmem:[#allocation2 + $0x10] sm:$0xff] %v2381_v16 }
 0x4e5   : > { %v2341_v18 = vpop.f32.mrf.mxu1 }
 0x4e6   : > { %v2375_v19 = vadd.f32 %v2341_v18, %v2237_v17 }
 0x4e8   : > { %2391 = vst [vmem:[#allocation2 + $0x50] sm:$0xff] %v2375_v19 }
 0x4e9   : > { %v2358_v21 = vpop.f32.mrf.mxu3 }
 0x4ea   : > { %v2382_v22 = vadd.f32 %v2358_v21, %v2244_v20 }
 0x4ec   : > { %2398 = vst [vmem:[#allocation2 + $0x38] sm:$0xff] %v2382_v22 }
 0x4ed   : > { %v2343_v24 = vpop.f32.mrf.mxu1 }
 0x4ee   : > { %v2376_v25 = vadd.f32 %v2343_v24, %v2238_v23 }
 0x4f0   : > { %2392 = vst [vmem:[#allocation2 + $0x68] sm:$0xff] %v2376_v25 }
 0x4f1   : > { %v2361_v27 = vpop.f32.mrf.mxu3 }
 0x4f2   : > { %v2383_v28 = vadd.f32 %v2361_v27, %v2245_v26 }
 0x4f4   : > { %2399 = vst [vmem:[#allocation2 + $0x60] sm:$0xff] %v2383_v28 }
 0x4f5   : > { %v2346_v30 = vpop.f32.mrf.mxu1 }
 0x4f6   : > { %v2377_v31 = vadd.f32 %v2346_v30, %v2239_v29 }
 0x4f8   : > { %2393 = vst [vmem:[#allocation2 + $0x8] sm:$0xff] %v2377_v31 }
 0x4f9   : > { %v2363_v33 = vpop.f32.mrf.mxu3 }
 0x4fa   : > { %v2384_v34 = vadd.f32 %v2363_v33, %v2246_v32 }
 0x4fc   : > { %2400 = vst [vmem:[#allocation2 + $0x70] sm:$0xff] %v2384_v34 }
 0x4fd   : > { %v2348_v36 = vpop.f32.mrf.mxu1 }
 0x4fe   : > { %v2378_v37 = vadd.f32 %v2348_v36, %v2240_v35 }
 0x500   : > { %2394 = vst [vmem:[#allocation2 + $0x48] sm:$0xff] %v2378_v37 }
 0x501   : > { %v2366_v39 = vpop.f32.mrf.mxu3 }
 0x502   : > { %v2385_v40 = vadd.f32 %v2366_v39, %v2247_v38 }
 0x504   : > { %2401 = vst [vmem:[#allocation2 + $0x78] sm:$0xff] %v2385_v40 }
 0x509   : > { %v2368_v42 = vpop.f32.mrf.mxu3 }
 0x50a   : > { %v2386_v43 = vadd.f32 %v2368_v42, %v2248_v41 }
 0x50c   : > { %2402 = vst [vmem:[#allocation2 + $0x28] sm:$0xff] %v2386_v43 }
 0x50d PF: > { %2404 = sbr.rel (%p5322_p4) target bundleno = 1666 (0x682), region = 139 }
 0x512   : > { %v4536_v44 = vld [vmem:[%s5693_s2 + $0x78] sm:$0xff]  ;;  %v4176_v45 = vld [vmem:[%s5242_s17 + $0x1c0] sm:$0xff]  ;;  %v4870_v46 = vmov 0   ;;  %v4535_v47 = vld [vmem:[%s5693_s2 + $0x70] sm:$0xff] }
 0x513   : > { %4797 = vset.pattern.permute.xlu0 %v4870_v46  ;;  %4798 = vset.pattern.permute.xlu1 %v4870_v46  ;;  %v4168_v48 = vld [vmem:[%s5242_s17 + $0x180] sm:$0xff]  ;;  %v4534_v49 = vld [vmem:[%s5693_s2 + $0x68] sm:$0xff]  ;;  %v4532_v53 = vld [vmem:[%s5693_s2 + $0x58] sm:$0xff] }
 0x514   : > { %2534 = vmatpush.bf16.msra.mxu0 %v4536_v44  ;;  %4681 = vmatpush.bf16.msra.mxu2 %v4536_v44  ;;  %v4177_v50 = vld [vmem:[%s5242_s17 + $0x1c8] sm:$0xff]  ;;  %v4533_v52 = vld [vmem:[%s5693_s2 + $0x60] sm:$0xff]  ;;  %v4170_v54 = vld [vmem:[%s5242_s17 + $0x190] sm:$0xff] }
 0x515   : > { %2642 = vperm.xlu0 %4797, %v4176_v45   ;;  %2602 = vperm.xlu1 %4798, %v4168_v48   ;;  %v4169_v51 = vld [vmem:[%s5242_s17 + $0x188] sm:$0xff]  ;;  %v4171_v55 = vld [vmem:[%s5242_s17 + $0x198] sm:$0xff]  ;;  %v4178_v56 = vld [vmem:[%s5242_s17 + $0x1d0] sm:$0xff] }
 0x516   : > { %4799 = vset.pattern.permute.xlu2 %v4870_v46  ;;  %v4531_v57 = vld [vmem:[%s5693_s2 + $0x50] sm:$0xff]  ;;  %v4530_v58 = vld [vmem:[%s5693_s2 + $0x48] sm:$0xff]  ;;  %v4172_v60 = vld [vmem:[%s5242_s17 + $0x1a0] sm:$0xff] }
 0x517   : > { %2652 = vperm.xlu2 %4799, %v4178_v56   ;;  %v4181_v59 = vld [vmem:[%s5242_s17 + $0x1e8] sm:$0xff]  ;;  %v4529_v61 = vld [vmem:[%s5693_s2 + $0x40] sm:$0xff]  ;;  %v4182_v0 = vld [vmem:[%s5242_s17 + $0x1f0] sm:$0xff] }
 0x518   : > { %2535 = vmatpush.bf16.msra.mxu0 %v4535_v47  ;;  %4682 = vmatpush.bf16.msra.mxu2 %v4535_v47  ;;  %v4521_v62 = vld [vmem:[%s5240_s16 + $0xc0] sm:$0xff]  ;;  %v4183_v1 = vld [vmem:[%s5242_s17 + $0x1f8] sm:$0xff]  ;;  %v4522_v5 = vld [vmem:[%s5240_s16 + $0xc8] sm:$0xff] }
 0x519   : > { %v4525_v63 = vld [vmem:[%s5240_s16 + $0xe0] sm:$0xff]  ;;  %v4179_v2 = vld [vmem:[%s5242_s17 + $0x1d8] sm:$0xff]  ;;  %v4526_v6 = vld [vmem:[%s5240_s16 + $0xe8] sm:$0xff] }
 0x51a   : > { %v4180_v3 = vld [vmem:[%s5242_s17 + $0x1e0] sm:$0xff]  ;;  %v4175_v4 = vld [vmem:[%s5242_s17 + $0x1b8] sm:$0xff]  ;;  %v4173_v7 = vld [vmem:[%s5242_s17 + $0x1a8] sm:$0xff] }
 0x51b   : > { %v4174_v8 = vld [vmem:[%s5242_s17 + $0x1b0] sm:$0xff]  ;;  %v4524_v11 = vld [vmem:[%s5240_s16 + $0xd8] sm:$0xff]  ;;  %v4542_v15 = vld [vmem:[%s5694_s3 + $0xe8] sm:$0xff] }
 0x51c   : > { %2536 = vmatpush.bf16.msra.mxu0 %v4534_v49  ;;  %4683 = vmatpush.bf16.msra.mxu2 %v4534_v49  ;;  %v4523_v9 = vld [vmem:[%s5240_s16 + $0xd0] sm:$0xff]  ;;  %v4528_v12 = vld [vmem:[%s5240_s16 + $0xf8] sm:$0xff]  ;;  %v4541_v16 = vld [vmem:[%s5694_s3 + $0xe0] sm:$0xff] }
 0x51d   : > { %2647 = vperm.xlu0 %4797, %v4177_v50   ;;  %2607 = vperm.xlu1 %4798, %v4169_v51   ;;  %v4527_v10 = vld [vmem:[%s5240_s16 + $0xf0] sm:$0xff]  ;;  %v4544_v13 = vld [vmem:[%s5694_s3 + $0xf8] sm:$0xff]  ;;  %v4538_v19 = vld [vmem:[%s5694_s3 + $0xc8] sm:$0xff] }
 0x51e   : > { %2785 = vmatpush.bf16.msra.mxu1 %v4544_v13  ;;  %4689 = vmatpush.bf16.msra.mxu3 %v4544_v13  ;;  %v4543_v14 = vld [vmem:[%s5694_s3 + $0xf0] sm:$0xff]  ;;  %v4540_v17 = vld [vmem:[%s5694_s3 + $0xd8] sm:$0xff]  ;;  %v4537_v20 = vld [vmem:[%s5694_s3 + $0xc0] sm:$0xff] }
 0x51f   : > { %2657 = vperm.xlu2 %4799, %v4179_v2   ;;  %v4539_v18 = vld [vmem:[%s5694_s3 + $0xd0] sm:$0xff] }
 0x520   : > { %2537 = vmatpush.bf16.msra.mxu0 %v4533_v52  ;;  %4684 = vmatpush.bf16.msra.mxu2 %v4533_v52  ;;  %v2696_v13 = vld [vmem:[#allocation2 + $0x30] sm:$0xff] }
 0x522   : > { %2786 = vmatpush.bf16.msra.mxu1 %v4543_v14  ;;  %4690 = vmatpush.bf16.msra.mxu3 %v4543_v14 }
 0x524   : > { %2538 = vmatpush.bf16.msra.mxu0 %v4532_v53  ;;  %4685 = vmatpush.bf16.msra.mxu2 %v4532_v53 }
 0x525   : > { %2612 = vperm.xlu0 %4797, %v4170_v54   ;;  %2617 = vperm.xlu1 %4798, %v4171_v55  }
 0x526   : > { %2787 = vmatpush.bf16.msra.mxu1 %v4542_v15  ;;  %4691 = vmatpush.bf16.msra.mxu3 %v4542_v15 }
 0x527   : > { %2662 = vperm.xlu2 %4799, %v4180_v3  }
 0x528   : > { %2539 = vmatpush.bf16.msra.mxu0 %v4531_v57  ;;  %4686 = vmatpush.bf16.msra.mxu2 %v4531_v57 }
 0x52a   : > { %2788 = vmatpush.bf16.msra.mxu1 %v4541_v16  ;;  %4692 = vmatpush.bf16.msra.mxu3 %v4541_v16  ;;  %v2697_v16 = vld [vmem:[#allocation2] sm:$0xff] }
 0x52c   : > { %2540 = vmatpush.bf16.msra.mxu0 %v4530_v58  ;;  %4687 = vmatpush.bf16.msra.mxu2 %v4530_v58 }
 0x52d   : > { %2667 = vperm.xlu0 %4797, %v4181_v59   ;;  %2622 = vperm.xlu1 %4798, %v4172_v60  }
 0x52e   : > { %2789 = vmatpush.bf16.msra.mxu1 %v4540_v17  ;;  %4693 = vmatpush.bf16.msra.mxu3 %v4540_v17 }
 0x52f   : > { %2627 = vperm.xlu2 %4799, %v4173_v7  }
 0x530   : > { %2541 = vmatpush.bf16.msra.mxu0 %v4529_v61  ;;  %4688 = vmatpush.bf16.msra.mxu2 %v4529_v61 }
 0x532   : > { %2790 = vmatpush.bf16.msra.mxu1 %v4539_v18  ;;  %4694 = vmatpush.bf16.msra.mxu3 %v4539_v18 }
 0x533   : > { %2542 = vmatmul.bf16.vlgmr.msra.gmra.mxu0 %v4521_v62  ;;  %2562 = vmatmul.bf16.vlgmr.msra.gmra.mxu2 %v4525_v63 }
 0x535   : > { %2672 = vperm.xlu0 %4797, %v4182_v0   ;;  %2677 = vperm.xlu1 %4798, %v4183_v1  }
 0x536   : > { %2791 = vmatpush.bf16.msra.mxu1 %v4538_v19  ;;  %4695 = vmatpush.bf16.msra.mxu3 %v4538_v19  ;;  %v2704_v19 = vld [vmem:[#allocation2 + $0x40] sm:$0xff] }
 0x537   : > { %2632 = vperm.xlu2 %4799, %v4174_v8  }
 0x53a   : > { %2792 = vmatpush.bf16.msra.mxu1 %v4537_v20  ;;  %4696 = vmatpush.bf16.msra.mxu3 %v4537_v20 }
 0x53d   : > { %2637 = vperm.xlu0 %4797, %v4175_v4  }
 0x543   : > { %2547 = vmatmul.bf16.gmra.mxu0 %v4522_v5  ;;  %2567 = vmatmul.bf16.gmra.mxu2 %v4526_v6 }
 0x553   : > { %2552 = vmatmul.bf16.gmra.mxu0 %v4523_v9  ;;  %2572 = vmatmul.bf16.gmra.mxu2 %v4527_v10 }
 0x563   : > { %2557 = vmatmul.bf16.gmra.mxu0 %v4524_v11  ;;  %2577 = vmatmul.bf16.gmra.mxu2 %v4528_v12 }
 0x571   : > { %v2653_v28 = vpop.permute.xlu2 %2652 }
 0x579   : > { %v2658_v37 = vpop.permute.xlu2 %2657 }
 0x581   : > { %v2663_v45 = vpop.permute.xlu2 %2662 }
 0x587   : > { %v2603_v21 = vpop.permute.xlu1 %2602  ;;  %v2643_v23 = vpop.permute.xlu0 %2642 }
 0x589   : > { %v2628_v53 = vpop.permute.xlu2 %2627 }
 0x58f   : > { %v2608_v26 = vpop.permute.xlu1 %2607  ;;  %v2648_v31 = vpop.permute.xlu0 %2647 }
 0x591   : > { %v2633_v2 = vpop.permute.xlu2 %2632 }
 0x597   : > { %v2613_v39 = vpop.permute.xlu0 %2612  ;;  %v2618_v40 = vpop.permute.xlu1 %2617 }
 0x59f   : > { %v2668_v51 = vpop.permute.xlu0 %2667  ;;  %v2623_v54 = vpop.permute.xlu1 %2622 }
 0x5a7   : > { %v2673_v59 = vpop.permute.xlu0 %2672  ;;  %v2678_v8 = vpop.permute.xlu1 %2677 }
 0x5af   : > { %v2638_v3 = vpop.permute.xlu0 %2637 }
 0x5b0   : > { %v2543_v22 = vpop.f32.mrf.mxu0 }
 0x5b1   : > { %v2680_v25 = vmul.f32 %v2603_v21, %v2543_v22  ;;  %v2698_v22 = vld [vmem:[#allocation2 + $0x58] sm:$0xff] }
 0x5b6   : > { %v2563_v24 = vpop.f32.mrf.mxu2 }
 0x5b7   : > { %v2688_v33 = vmul.f32 %v2643_v23, %v2563_v24 }
 0x5b8   : > { %v2545_v27 = vpop.f32.mrf.mxu0 }
 0x5b9   : > { %v2681_v29 = vmul.f32 %v2608_v26, %v2545_v27 }
 0x5bb   : > { %v2712_v30 = vpack.c.bf16 %v2681_v29, %v2680_v25  ;;  %v2705_v25 = vld [vmem:[#allocation2 + $0x20] sm:$0xff] }
 0x5bd   : > { %2793 = vmatmul.bf16.vlgmr.msra.gmra.mxu1 %v2712_v30 }
 0x5be   : > { %v2565_v32 = vpop.f32.mrf.mxu2 }
 0x5bf   : > { %v2689_v34 = vmul.f32 %v2648_v31, %v2565_v32  ;;  %v2706_v31 = vld [vmem:[#allocation2 + $0x10] sm:$0xff] }
 0x5c0   : > { %v2548_v35 = vpop.f32.mrf.mxu0 }
 0x5c1   : > { %v2716_v36 = vpack.c.bf16 %v2689_v34, %v2688_v33  ;;  %v2682_v42 = vmul.f32 %v2613_v39, %v2548_v35  ;;  %v2700_v34 = vld [vmem:[#allocation2 + $0x50] sm:$0xff] }
 0x5c3   : > { %2813 = vmatmul.bf16.vlgmr.msra.gmra.mxu3 %v2716_v36 }
 0x5c6   : > { %v2568_v38 = vpop.f32.mrf.mxu2 }
 0x5c7   : > { %v2690_v47 = vmul.f32 %v2653_v28, %v2568_v38  ;;  %v2699_v28 = vld [vmem:[#allocation2 + $0x18] sm:$0xff] }
 0x5c8   : > { %v2550_v41 = vpop.f32.mrf.mxu0 }
 0x5c9   : > { %v2683_v43 = vmul.f32 %v2618_v40, %v2550_v41  ;;  %v2701_v40 = vld [vmem:[#allocation2 + $0x68] sm:$0xff] }
 0x5cb   : > { %v2713_v44 = vpack.c.bf16 %v2683_v43, %v2682_v42  ;;  %v2708_v43 = vld [vmem:[#allocation2 + $0x60] sm:$0xff] }
 0x5cd   : > { %2798 = vmatmul.bf16.gmra.mxu1 %v2713_v44 }
 0x5ce   : > { %v2570_v46 = vpop.f32.mrf.mxu2 }
 0x5cf   : > { %v2691_v48 = vmul.f32 %v2658_v37, %v2570_v46  ;;  %v2707_v37 = vld [vmem:[#allocation2 + $0x38] sm:$0xff]  ;;  %v2702_v46 = vld [vmem:[#allocation2 + $0x8] sm:$0xff] }
 0x5d0   : > { %v2553_v49 = vpop.f32.mrf.mxu0 }
 0x5d1   : > { %v2717_v50 = vpack.c.bf16 %v2691_v48, %v2690_v47  ;;  %v2684_v56 = vmul.f32 %v2623_v54, %v2553_v49  ;;  %v2709_v49 = vld [vmem:[#allocation2 + $0x70] sm:$0xff] }
 0x5d3   : > { %2818 = vmatmul.bf16.gmra.mxu3 %v2717_v50 }
 0x5d6   : > { %v2573_v52 = vpop.f32.mrf.mxu2 }
 0x5d7   : > { %v2692_v61 = vmul.f32 %v2663_v45, %v2573_v52  ;;  %v2703_v52 = vld [vmem:[#allocation2 + $0x48] sm:$0xff] }
 0x5d8   : > { %v2555_v55 = vpop.f32.mrf.mxu0 }
 0x5d9   : > { %v2685_v57 = vmul.f32 %v2628_v53, %v2555_v55  ;;  %v2710_v55 = vld [vmem:[#allocation2 + $0x78] sm:$0xff] }
 0x5db   : > { %v2714_v58 = vpack.c.bf16 %v2685_v57, %v2684_v56 }
 0x5dd   : > { %2803 = vmatmul.bf16.gmra.mxu1 %v2714_v58  ;;  %v2711_v58 = vld [vmem:[#allocation2 + $0x28] sm:$0xff] }
 0x5de   : > { %v2575_v60 = vpop.f32.mrf.mxu2 }
 0x5df   : > { %v2693_v62 = vmul.f32 %v2668_v51, %v2575_v60 }
 0x5e0   : > { %v2558_v63 = vpop.f32.mrf.mxu0 }
 0x5e1   : > { %v2718_v0 = vpack.c.bf16 %v2693_v62, %v2692_v61  ;;  %v2686_v5 = vmul.f32 %v2633_v2, %v2558_v63 }
 0x5e3   : > { %2823 = vmatmul.bf16.gmra.mxu3 %v2718_v0 }
 0x5e6   : > { %v2578_v1 = vpop.f32.mrf.mxu2 }
 0x5e7   : > { %v2694_v10 = vmul.f32 %v2673_v59, %v2578_v1 }
 0x5e8   : > { %v2560_v4 = vpop.f32.mrf.mxu0 }
 0x5e9   : > { %v2687_v6 = vmul.f32 %v2638_v3, %v2560_v4 }
 0x5eb   : > { %v2715_v7 = vpack.c.bf16 %v2687_v6, %v2686_v5 }
 0x5ed   : > { %2808 = vmatmul.bf16.gmra.mxu1 %v2715_v7 }
 0x5ee   : > { %v2580_v9 = vpop.f32.mrf.mxu2 }
 0x5ef   : > { %v2695_v11 = vmul.f32 %v2678_v8, %v2580_v9 }
 0x5f1   : > { %v2719_v12 = vpack.c.bf16 %v2695_v11, %v2694_v10 }
 0x5f3   : > { %2828 = vmatmul.bf16.gmra.mxu3 %v2719_v12 }
 0x63a   : > { %v2794_v14 = vpop.f32.mrf.mxu1 }
 0x63b   : > { %v2834_v15 = vadd.f32 %v2794_v14, %v2696_v13 }
 0x63d   : > { %2850 = vst [vmem:[#allocation2 + $0x30] sm:$0xff] %v2834_v15 }
 0x642   : > { %v2796_v17 = vpop.f32.mrf.mxu1 }
 0x643   : > { %v2835_v18 = vadd.f32 %v2796_v17, %v2697_v16 }
 0x645   : > { %2851 = vst [vmem:[#allocation2] sm:$0xff] %v2835_v18 }
 0x646   : > { %v2814_v20 = vpop.f32.mrf.mxu3 }
 0x647   : > { %v2842_v21 = vadd.f32 %v2814_v20, %v2704_v19 }
 0x649   : > { %2858 = vst [vmem:[#allocation2 + $0x40] sm:$0xff] %v2842_v21 }
 0x64a   : > { %v2799_v23 = vpop.f32.mrf.mxu1 }
 0x64b   : > { %v2836_v24 = vadd.f32 %v2799_v23, %v2698_v22 }
 0x64d   : > { %2852 = vst [vmem:[#allocation2 + $0x58] sm:$0xff] %v2836_v24 }
 0x64e   : > { %v2816_v26 = vpop.f32.mrf.mxu3 }
 0x64f   : > { %v2843_v27 = vadd.f32 %v2816_v26, %v2705_v25 }
 0x651   : > { %2859 = vst [vmem:[#allocation2 + $0x20] sm:$0xff] %v2843_v27 }
 0x652   : > { %v2801_v29 = vpop.f32.mrf.mxu1 }
 0x653   : > { %v2837_v30 = vadd.f32 %v2801_v29, %v2699_v28 }
 0x655   : > { %2853 = vst [vmem:[#allocation2 + $0x18] sm:$0xff] %v2837_v30 }
 0x656   : > { %v2819_v32 = vpop.f32.mrf.mxu3 }
 0x657   : > { %v2844_v33 = vadd.f32 %v2819_v32, %v2706_v31 }
 0x659   : > { %2860 = vst [vmem:[#allocation2 + $0x10] sm:$0xff] %v2844_v33 }
 0x65a   : > { %v2804_v35 = vpop.f32.mrf.mxu1 }
 0x65b   : > { %v2838_v36 = vadd.f32 %v2804_v35, %v2700_v34 }
 0x65d   : > { %2854 = vst [vmem:[#allocation2 + $0x50] sm:$0xff] %v2838_v36 }
 0x65e   : > { %v2821_v38 = vpop.f32.mrf.mxu3 }
 0x65f   : > { %v2845_v39 = vadd.f32 %v2821_v38, %v2707_v37 }
 0x661   : > { %2861 = vst [vmem:[#allocation2 + $0x38] sm:$0xff] %v2845_v39 }
 0x662   : > { %v2806_v41 = vpop.f32.mrf.mxu1 }
 0x663   : > { %v2839_v42 = vadd.f32 %v2806_v41, %v2701_v40 }
 0x665   : > { %2855 = vst [vmem:[#allocation2 + $0x68] sm:$0xff] %v2839_v42 }
 0x666   : > { %v2824_v44 = vpop.f32.mrf.mxu3 }
 0x667   : > { %v2846_v45 = vadd.f32 %v2824_v44, %v2708_v43 }
 0x669   : > { %2862 = vst [vmem:[#allocation2 + $0x60] sm:$0xff] %v2846_v45 }
 0x66a   : > { %v2809_v47 = vpop.f32.mrf.mxu1 }
 0x66b   : > { %v2840_v48 = vadd.f32 %v2809_v47, %v2702_v46 }
 0x66d   : > { %2856 = vst [vmem:[#allocation2 + $0x8] sm:$0xff] %v2840_v48 }
 0x66e   : > { %v2826_v50 = vpop.f32.mrf.mxu3 }
 0x66f   : > { %v2847_v51 = vadd.f32 %v2826_v50, %v2709_v49 }
 0x671   : > { %2863 = vst [vmem:[#allocation2 + $0x70] sm:$0xff] %v2847_v51 }
 0x672   : > { %v2811_v53 = vpop.f32.mrf.mxu1 }
 0x673   : > { %v2841_v54 = vadd.f32 %v2811_v53, %v2703_v52 }
 0x675   : > { %2857 = vst [vmem:[#allocation2 + $0x48] sm:$0xff] %v2841_v54 }
 0x676   : > { %v2829_v56 = vpop.f32.mrf.mxu3 }
 0x677   : > { %v2848_v57 = vadd.f32 %v2829_v56, %v2710_v55 }
 0x679   : > { %2864 = vst [vmem:[#allocation2 + $0x78] sm:$0xff] %v2848_v57 }
 0x67e   : > { %v2831_v59 = vpop.f32.mrf.mxu3 }
 0x67f   : > { %v2849_v60 = vadd.f32 %v2831_v59, %v2711_v58 }
 0x681   : > { %2865 = vst [vmem:[#allocation2 + $0x28] sm:$0xff] %v2849_v60 }
 0x682 PF: > { %2867 = sbr.rel (%p5236_p1) target bundleno = 2039 (0x7f7), region = 143 }
 0x687   : > { %v4560_v61 = vld [vmem:[%s5693_s2 + $0xb8] sm:$0xff]  ;;  %v4320_v62 = vld [vmem:[%s5242_s17 + $0x240] sm:$0xff]  ;;  %v4871_v63 = vmov 0   ;;  %v4559_v0 = vld [vmem:[%s5693_s2 + $0xb0] sm:$0xff] }
 0x688   : > { %4800 = vset.pattern.permute.xlu0 %v4871_v63  ;;  %4801 = vset.pattern.permute.xlu1 %v4871_v63  ;;  %v4312_v1 = vld [vmem:[%s5242_s17 + $0x200] sm:$0xff]  ;;  %v4558_v2 = vld [vmem:[%s5693_s2 + $0xa8] sm:$0xff]  ;;  %v4556_v6 = vld [vmem:[%s5693_s2 + $0x98] sm:$0xff] }
 0x689   : > { %2997 = vmatpush.bf16.msra.mxu0 %v4560_v61  ;;  %4697 = vmatpush.bf16.msra.mxu2 %v4560_v61  ;;  %v4321_v3 = vld [vmem:[%s5242_s17 + $0x248] sm:$0xff]  ;;  %v4557_v5 = vld [vmem:[%s5693_s2 + $0xa0] sm:$0xff]  ;;  %v4314_v7 = vld [vmem:[%s5242_s17 + $0x210] sm:$0xff] }
 0x68a   : > { %3105 = vperm.xlu0 %4800, %v4320_v62   ;;  %3065 = vperm.xlu1 %4801, %v4312_v1   ;;  %v4313_v4 = vld [vmem:[%s5242_s17 + $0x208] sm:$0xff]  ;;  %v4315_v8 = vld [vmem:[%s5242_s17 + $0x218] sm:$0xff]  ;;  %v4322_v9 = vld [vmem:[%s5242_s17 + $0x250] sm:$0xff] }
 0x68b   : > { %4802 = vset.pattern.permute.xlu2 %v4871_v63  ;;  %v4555_v10 = vld [vmem:[%s5693_s2 + $0x90] sm:$0xff]  ;;  %v4554_v11 = vld [vmem:[%s5693_s2 + $0x88] sm:$0xff]  ;;  %v4316_v13 = vld [vmem:[%s5242_s17 + $0x220] sm:$0xff] }
 0x68c   : > { %3115 = vperm.xlu2 %4802, %v4322_v9   ;;  %v4325_v12 = vld [vmem:[%s5242_s17 + $0x268] sm:$0xff]  ;;  %v4553_v14 = vld [vmem:[%s5693_s2 + $0x80] sm:$0xff]  ;;  %v4326_v17 = vld [vmem:[%s5242_s17 + $0x270] sm:$0xff] }
 0x68d   : > { %2998 = vmatpush.bf16.msra.mxu0 %v4559_v0  ;;  %4698 = vmatpush.bf16.msra.mxu2 %v4559_v0  ;;  %v4545_v15 = vld [vmem:[%s5240_s16 + $0x100] sm:$0xff]  ;;  %v4327_v18 = vld [vmem:[%s5242_s17 + $0x278] sm:$0xff]  ;;  %v4546_v22 = vld [vmem:[%s5240_s16 + $0x108] sm:$0xff] }
 0x68e   : > { %v4549_v16 = vld [vmem:[%s5240_s16 + $0x120] sm:$0xff]  ;;  %v4323_v19 = vld [vmem:[%s5242_s17 + $0x258] sm:$0xff]  ;;  %v4550_v23 = vld [vmem:[%s5240_s16 + $0x128] sm:$0xff] }
 0x68f   : > { %v4324_v20 = vld [vmem:[%s5242_s17 + $0x260] sm:$0xff]  ;;  %v4319_v21 = vld [vmem:[%s5242_s17 + $0x238] sm:$0xff]  ;;  %v4317_v24 = vld [vmem:[%s5242_s17 + $0x228] sm:$0xff] }
 0x690   : > { %v4318_v25 = vld [vmem:[%s5242_s17 + $0x230] sm:$0xff]  ;;  %v4548_v28 = vld [vmem:[%s5240_s16 + $0x118] sm:$0xff]  ;;  %v4566_v32 = vld [vmem:[%s5694_s3 + $0x128] sm:$0xff] }
 0x691   : > { %2999 = vmatpush.bf16.msra.mxu0 %v4558_v2  ;;  %4699 = vmatpush.bf16.msra.mxu2 %v4558_v2  ;;  %v4547_v26 = vld [vmem:[%s5240_s16 + $0x110] sm:$0xff]  ;;  %v4552_v29 = vld [vmem:[%s5240_s16 + $0x138] sm:$0xff]  ;;  %v4565_v33 = vld [vmem:[%s5694_s3 + $0x120] sm:$0xff] }
 0x692   : > { %3110 = vperm.xlu0 %4800, %v4321_v3   ;;  %3070 = vperm.xlu1 %4801, %v4313_v4   ;;  %v4551_v27 = vld [vmem:[%s5240_s16 + $0x130] sm:$0xff]  ;;  %v4568_v30 = vld [vmem:[%s5694_s3 + $0x138] sm:$0xff]  ;;  %v4562_v36 = vld [vmem:[%s5694_s3 + $0x108] sm:$0xff] }
 0x693   : > { %3248 = vmatpush.bf16.msra.mxu1 %v4568_v30  ;;  %4705 = vmatpush.bf16.msra.mxu3 %v4568_v30  ;;  %v4567_v31 = vld [vmem:[%s5694_s3 + $0x130] sm:$0xff]  ;;  %v4564_v34 = vld [vmem:[%s5694_s3 + $0x118] sm:$0xff]  ;;  %v4561_v37 = vld [vmem:[%s5694_s3 + $0x100] sm:$0xff] }
 0x694   : > { %3120 = vperm.xlu2 %4802, %v4323_v19   ;;  %v4563_v35 = vld [vmem:[%s5694_s3 + $0x110] sm:$0xff] }
 0x695   : > { %3000 = vmatpush.bf16.msra.mxu0 %v4557_v5  ;;  %4700 = vmatpush.bf16.msra.mxu2 %v4557_v5  ;;  %v3159_v30 = vld [vmem:[#allocation2 + $0x30] sm:$0xff] }
 0x697   : > { %3249 = vmatpush.bf16.msra.mxu1 %v4567_v31  ;;  %4706 = vmatpush.bf16.msra.mxu3 %v4567_v31 }
 0x699   : > { %3001 = vmatpush.bf16.msra.mxu0 %v4556_v6  ;;  %4701 = vmatpush.bf16.msra.mxu2 %v4556_v6 }
 0x69a   : > { %3075 = vperm.xlu0 %4800, %v4314_v7   ;;  %3080 = vperm.xlu1 %4801, %v4315_v8  }
 0x69b   : > { %3250 = vmatpush.bf16.msra.mxu1 %v4566_v32  ;;  %4707 = vmatpush.bf16.msra.mxu3 %v4566_v32 }
 0x69c   : > { %3125 = vperm.xlu2 %4802, %v4324_v20  }
 0x69d   : > { %3002 = vmatpush.bf16.msra.mxu0 %v4555_v10  ;;  %4702 = vmatpush.bf16.msra.mxu2 %v4555_v10 }
 0x69f   : > { %3251 = vmatpush.bf16.msra.mxu1 %v4565_v33  ;;  %4708 = vmatpush.bf16.msra.mxu3 %v4565_v33  ;;  %v3160_v33 = vld [vmem:[#allocation2] sm:$0xff] }
 0x6a1   : > { %3003 = vmatpush.bf16.msra.mxu0 %v4554_v11  ;;  %4703 = vmatpush.bf16.msra.mxu2 %v4554_v11 }
 0x6a2   : > { %3130 = vperm.xlu0 %4800, %v4325_v12   ;;  %3085 = vperm.xlu1 %4801, %v4316_v13  }
 0x6a3   : > { %3252 = vmatpush.bf16.msra.mxu1 %v4564_v34  ;;  %4709 = vmatpush.bf16.msra.mxu3 %v4564_v34 }
 0x6a4   : > { %3090 = vperm.xlu2 %4802, %v4317_v24  }
 0x6a5   : > { %3004 = vmatpush.bf16.msra.mxu0 %v4553_v14  ;;  %4704 = vmatpush.bf16.msra.mxu2 %v4553_v14 }
 0x6a7   : > { %3253 = vmatpush.bf16.msra.mxu1 %v4563_v35  ;;  %4710 = vmatpush.bf16.msra.mxu3 %v4563_v35 }
 0x6a8   : > { %3005 = vmatmul.bf16.vlgmr.msra.gmra.mxu0 %v4545_v15  ;;  %3025 = vmatmul.bf16.vlgmr.msra.gmra.mxu2 %v4549_v16 }
 0x6aa   : > { %3135 = vperm.xlu0 %4800, %v4326_v17   ;;  %3140 = vperm.xlu1 %4801, %v4327_v18  }
 0x6ab   : > { %3254 = vmatpush.bf16.msra.mxu1 %v4562_v36  ;;  %4711 = vmatpush.bf16.msra.mxu3 %v4562_v36  ;;  %v3167_v36 = vld [vmem:[#allocation2 + $0x40] sm:$0xff] }
 0x6ac   : > { %3095 = vperm.xlu2 %4802, %v4318_v25  }
 0x6af   : > { %3255 = vmatpush.bf16.msra.mxu1 %v4561_v37  ;;  %4712 = vmatpush.bf16.msra.mxu3 %v4561_v37 }
 0x6b2   : > { %3100 = vperm.xlu0 %4800, %v4319_v21  }
 0x6b8   : > { %3010 = vmatmul.bf16.gmra.mxu0 %v4546_v22  ;;  %3030 = vmatmul.bf16.gmra.mxu2 %v4550_v23 }
 0x6c8   : > { %3015 = vmatmul.bf16.gmra.mxu0 %v4547_v26  ;;  %3035 = vmatmul.bf16.gmra.mxu2 %v4551_v27 }
 0x6d8   : > { %3020 = vmatmul.bf16.gmra.mxu0 %v4548_v28  ;;  %3040 = vmatmul.bf16.gmra.mxu2 %v4552_v29 }
 0x6e6   : > { %v3116_v45 = vpop.permute.xlu2 %3115 }
 0x6ee   : > { %v3121_v54 = vpop.permute.xlu2 %3120 }
 0x6f6   : > { %v3126_v62 = vpop.permute.xlu2 %3125 }
 0x6fc   : > { %v3066_v38 = vpop.permute.xlu1 %3065  ;;  %v3106_v40 = vpop.permute.xlu0 %3105 }
 0x6fe   : > { %v3091_v6 = vpop.permute.xlu2 %3090 }
 0x704   : > { %v3071_v43 = vpop.permute.xlu1 %3070  ;;  %v3111_v48 = vpop.permute.xlu0 %3110 }
 0x706   : > { %v3096_v19 = vpop.permute.xlu2 %3095 }
 0x70c   : > { %v3076_v56 = vpop.permute.xlu0 %3075  ;;  %v3081_v57 = vpop.permute.xlu1 %3080 }
 0x714   : > { %v3131_v4 = vpop.permute.xlu0 %3130  ;;  %v3086_v7 = vpop.permute.xlu1 %3085 }
 0x71c   : > { %v3136_v12 = vpop.permute.xlu0 %3135  ;;  %v3141_v25 = vpop.permute.xlu1 %3140 }
 0x724   : > { %v3101_v20 = vpop.permute.xlu0 %3100 }
 0x725   : > { %v3006_v39 = vpop.f32.mrf.mxu0 }
 0x726   : > { %v3143_v42 = vmul.f32 %v3066_v38, %v3006_v39  ;;  %v3161_v39 = vld [vmem:[#allocation2 + $0x58] sm:$0xff] }
 0x72b   : > { %v3026_v41 = vpop.f32.mrf.mxu2 }
 0x72c   : > { %v3151_v50 = vmul.f32 %v3106_v40, %v3026_v41 }
 0x72d   : > { %v3008_v44 = vpop.f32.mrf.mxu0 }
 0x72e   : > { %v3144_v46 = vmul.f32 %v3071_v43, %v3008_v44 }
 0x730   : > { %v3175_v47 = vpack.c.bf16 %v3144_v46, %v3143_v42  ;;  %v3168_v42 = vld [vmem:[#allocation2 + $0x20] sm:$0xff] }
 0x732   : > { %3256 = vmatmul.bf16.vlgmr.msra.gmra.mxu1 %v3175_v47 }
 0x733   : > { %v3028_v49 = vpop.f32.mrf.mxu2 }
 0x734   : > { %v3152_v51 = vmul.f32 %v3111_v48, %v3028_v49  ;;  %v3169_v48 = vld [vmem:[#allocation2 + $0x10] sm:$0xff] }
 0x735   : > { %v3011_v52 = vpop.f32.mrf.mxu0 }
 0x736   : > { %v3179_v53 = vpack.c.bf16 %v3152_v51, %v3151_v50  ;;  %v3145_v59 = vmul.f32 %v3076_v56, %v3011_v52  ;;  %v3163_v51 = vld [vmem:[#allocation2 + $0x50] sm:$0xff] }
 0x738   : > { %3276 = vmatmul.bf16.vlgmr.msra.gmra.mxu3 %v3179_v53 }
 0x73b   : > { %v3031_v55 = vpop.f32.mrf.mxu2 }
 0x73c   : > { %v3153_v0 = vmul.f32 %v3116_v45, %v3031_v55  ;;  %v3162_v45 = vld [vmem:[#allocation2 + $0x18] sm:$0xff] }
 0x73d   : > { %v3013_v58 = vpop.f32.mrf.mxu0 }
 0x73e   : > { %v3146_v60 = vmul.f32 %v3081_v57, %v3013_v58  ;;  %v3164_v57 = vld [vmem:[#allocation2 + $0x68] sm:$0xff] }
 0x740   : > { %v3176_v61 = vpack.c.bf16 %v3146_v60, %v3145_v59  ;;  %v3171_v60 = vld [vmem:[#allocation2 + $0x60] sm:$0xff] }
 0x742   : > { %3261 = vmatmul.bf16.gmra.mxu1 %v3176_v61 }
 0x743   : > { %v3033_v63 = vpop.f32.mrf.mxu2 }
 0x744   : > { %v3154_v1 = vmul.f32 %v3121_v54, %v3033_v63  ;;  %v3170_v54 = vld [vmem:[#allocation2 + $0x38] sm:$0xff]  ;;  %v3165_v63 = vld [vmem:[#allocation2 + $0x8] sm:$0xff] }
 0x745   : > { %v3016_v2 = vpop.f32.mrf.mxu0 }
 0x746   : > { %v3180_v3 = vpack.c.bf16 %v3154_v1, %v3153_v0  ;;  %v3147_v9 = vmul.f32 %v3086_v7, %v3016_v2  ;;  %v3172_v2 = vld [vmem:[#allocation2 + $0x70] sm:$0xff] }
 0x748   : > { %3281 = vmatmul.bf16.gmra.mxu3 %v3180_v3 }
 0x74b   : > { %v3036_v5 = vpop.f32.mrf.mxu2 }
 0x74c   : > { %v3155_v14 = vmul.f32 %v3126_v62, %v3036_v5  ;;  %v3166_v5 = vld [vmem:[#allocation2 + $0x48] sm:$0xff] }
 0x74d   : > { %v3018_v8 = vpop.f32.mrf.mxu0 }
 0x74e   : > { %v3148_v10 = vmul.f32 %v3091_v6, %v3018_v8  ;;  %v3173_v8 = vld [vmem:[#allocation2 + $0x78] sm:$0xff] }
 0x750   : > { %v3177_v11 = vpack.c.bf16 %v3148_v10, %v3147_v9 }
 0x752   : > { %3266 = vmatmul.bf16.gmra.mxu1 %v3177_v11  ;;  %v3174_v11 = vld [vmem:[#allocation2 + $0x28] sm:$0xff] }
 0x753   : > { %v3038_v13 = vpop.f32.mrf.mxu2 }
 0x754   : > { %v3156_v15 = vmul.f32 %v3131_v4, %v3038_v13 }
 0x755   : > { %v3021_v16 = vpop.f32.mrf.mxu0 }
 0x756   : > { %v3181_v17 = vpack.c.bf16 %v3156_v15, %v3155_v14  ;;  %v3149_v22 = vmul.f32 %v3096_v19, %v3021_v16 }
 0x758   : > { %3286 = vmatmul.bf16.gmra.mxu3 %v3181_v17 }
 0x75b   : > { %v3041_v18 = vpop.f32.mrf.mxu2 }
 0x75c   : > { %v3157_v27 = vmul.f32 %v3136_v12, %v3041_v18 }
 0x75d   : > { %v3023_v21 = vpop.f32.mrf.mxu0 }
 0x75e   : > { %v3150_v23 = vmul.f32 %v3101_v20, %v3023_v21 }
 0x760   : > { %v3178_v24 = vpack.c.bf16 %v3150_v23, %v3149_v22 }
 0x762   : > { %3271 = vmatmul.bf16.gmra.mxu1 %v3178_v24 }
 0x763   : > { %v3043_v26 = vpop.f32.mrf.mxu2 }
 0x764   : > { %v3158_v28 = vmul.f32 %v3141_v25, %v3043_v26 }
 0x766   : > { %v3182_v29 = vpack.c.bf16 %v3158_v28, %v3157_v27 }
 0x768   : > { %3291 = vmatmul.bf16.gmra.mxu3 %v3182_v29 }
 0x7af   : > { %v3257_v31 = vpop.f32.mrf.mxu1 }
 0x7b0   : > { %v3297_v32 = vadd.f32 %v3257_v31, %v3159_v30 }
 0x7b2   : > { %3313 = vst [vmem:[#allocation2 + $0x30] sm:$0xff] %v3297_v32 }
 0x7b7   : > { %v3259_v34 = vpop.f32.mrf.mxu1 }
 0x7b8   : > { %v3298_v35 = vadd.f32 %v3259_v34, %v3160_v33 }
 0x7ba   : > { %3314 = vst [vmem:[#allocation2] sm:$0xff] %v3298_v35 }
 0x7bb   : > { %v3277_v37 = vpop.f32.mrf.mxu3 }
 0x7bc   : > { %v3305_v38 = vadd.f32 %v3277_v37, %v3167_v36 }
 0x7be   : > { %3321 = vst [vmem:[#allocation2 + $0x40] sm:$0xff] %v3305_v38 }
 0x7bf   : > { %v3262_v40 = vpop.f32.mrf.mxu1 }
 0x7c0   : > { %v3299_v41 = vadd.f32 %v3262_v40, %v3161_v39 }
 0x7c2   : > { %3315 = vst [vmem:[#allocation2 + $0x58] sm:$0xff] %v3299_v41 }
 0x7c3   : > { %v3279_v43 = vpop.f32.mrf.mxu3 }
 0x7c4   : > { %v3306_v44 = vadd.f32 %v3279_v43, %v3168_v42 }
 0x7c6   : > { %3322 = vst [vmem:[#allocation2 + $0x20] sm:$0xff] %v3306_v44 }
 0x7c7   : > { %v3264_v46 = vpop.f32.mrf.mxu1 }
 0x7c8   : > { %v3300_v47 = vadd.f32 %v3264_v46, %v3162_v45 }
 0x7ca   : > { %3316 = vst [vmem:[#allocation2 + $0x18] sm:$0xff] %v3300_v47 }
 0x7cb   : > { %v3282_v49 = vpop.f32.mrf.mxu3 }
 0x7cc   : > { %v3307_v50 = vadd.f32 %v3282_v49, %v3169_v48 }
 0x7ce   : > { %3323 = vst [vmem:[#allocation2 + $0x10] sm:$0xff] %v3307_v50 }
 0x7cf   : > { %v3267_v52 = vpop.f32.mrf.mxu1 }
 0x7d0   : > { %v3301_v53 = vadd.f32 %v3267_v52, %v3163_v51 }
 0x7d2   : > { %3317 = vst [vmem:[#allocation2 + $0x50] sm:$0xff] %v3301_v53 }
 0x7d3   : > { %v3284_v55 = vpop.f32.mrf.mxu3 }
 0x7d4   : > { %v3308_v56 = vadd.f32 %v3284_v55, %v3170_v54 }
 0x7d6   : > { %3324 = vst [vmem:[#allocation2 + $0x38] sm:$0xff] %v3308_v56 }
 0x7d7   : > { %v3269_v58 = vpop.f32.mrf.mxu1 }
 0x7d8   : > { %v3302_v59 = vadd.f32 %v3269_v58, %v3164_v57 }
 0x7da   : > { %3318 = vst [vmem:[#allocation2 + $0x68] sm:$0xff] %v3302_v59 }
 0x7db   : > { %v3287_v61 = vpop.f32.mrf.mxu3 }
 0x7dc   : > { %v3309_v62 = vadd.f32 %v3287_v61, %v3171_v60 }
 0x7de   : > { %3325 = vst [vmem:[#allocation2 + $0x60] sm:$0xff] %v3309_v62 }
 0x7df   : > { %v3272_v0 = vpop.f32.mrf.mxu1 }
 0x7e0   : > { %v3303_v1 = vadd.f32 %v3272_v0, %v3165_v63 }
 0x7e2   : > { %3319 = vst [vmem:[#allocation2 + $0x8] sm:$0xff] %v3303_v1 }
 0x7e3   : > { %v3289_v3 = vpop.f32.mrf.mxu3 }
 0x7e4   : > { %v3310_v4 = vadd.f32 %v3289_v3, %v3172_v2 }
 0x7e6   : > { %3326 = vst [vmem:[#allocation2 + $0x70] sm:$0xff] %v3310_v4 }
 0x7e7   : > { %v3274_v6 = vpop.f32.mrf.mxu1 }
 0x7e8   : > { %v3304_v7 = vadd.f32 %v3274_v6, %v3166_v5 }
 0x7ea   : > { %3320 = vst [vmem:[#allocation2 + $0x48] sm:$0xff] %v3304_v7 }
 0x7eb   : > { %v3292_v9 = vpop.f32.mrf.mxu3 }
 0x7ec   : > { %v3311_v10 = vadd.f32 %v3292_v9, %v3173_v8 }
 0x7ee   : > { %3327 = vst [vmem:[#allocation2 + $0x78] sm:$0xff] %v3311_v10 }
 0x7f3   : > { %v3294_v12 = vpop.f32.mrf.mxu3 }
 0x7f4   : > { %v3312_v13 = vadd.f32 %v3294_v12, %v3174_v11 }
 0x7f6   : > { %3328 = vst [vmem:[#allocation2 + $0x28] sm:$0xff] %v3312_v13 }
 0x7f7 PF: > { %v4584_v14 = vld [vmem:[%s5695_s4 + $0x38] sm:$0xff]  ;;  %v4583_v15 = vld [vmem:[%s5695_s4 + $0x30] sm:$0xff]  ;;  %v4582_v16 = vld [vmem:[%s5695_s4 + $0x28] sm:$0xff]  ;;  %s4376_s14 = sshll.u32 %s4930_s25, 7  ;;  %s4585_s15 = sshll.u32 %s4930_s25, 6 }
 0x7f8   : > { %3478 = vmatpush.bf16.msra.mxu0 %v4584_v14  ;;  %4713 = vmatpush.bf16.msra.mxu1 %v4584_v14  ;;  %v4581_v17 = vld [vmem:[%s5695_s4 + $0x20] sm:$0xff]  ;;  %v4580_v18 = vld [vmem:[%s5695_s4 + $0x18] sm:$0xff]  ;;  %v4579_v19 = vld [vmem:[%s5695_s4 + $0x10] sm:$0xff]  ;;  %s3330_s28 = sshra.s32 %s4376_s14, 3  ;;  %s3603_s20 = scalar_lea.hbm %s5697_s6, %s4585_s15 }
 0x7f9   : > { %4714 = vmatpush.bf16.msra.mxu2 %v4584_v14  ;;  %4715 = vmatpush.bf16.msra.mxu3 %v4584_v14  ;;  %v4578_v20 = vld [vmem:[%s5695_s4 + $0x8] sm:$0xff]  ;;  %s4377_s16 = sshll.u32 %s3330_s28, 2  ;;  %v4577_v21 = vld [vmem:[%s5695_s4] sm:$0xff]  ;;  %v3350_v32 = vld [vmem:[#allocation2 + $0x30] sm:$0xff]  ;;  %s3604_s25 = sshll.u32 %s5244_s18, 4  ;;  %s3605_s25 = int_to_ptr.vmem [resolvable:$true] %s3604_s25 }
 0x7fa   : > { %s3333_s13 = scalar_lea.vmem %s5693_s2, %s4377_s16  ;;  %v3354_v33 = vld [vmem:[#allocation2 + $0x50] sm:$0xff]  ;;  %v3351_v34 = vld [vmem:[#allocation2] sm:$0xff]  ;;  %v3355_v35 = vld [vmem:[#allocation2 + $0x68] sm:$0xff]  ;;  %s3606_s28 = sshll.u32 %s3603_s20, 4  ;;  %s3607_s28 = int_to_ptr.hbm [resolvable:$true] %s3606_s28 }
 0x7fb   : > { %v4569_v22 = vld [vmem:[%s3333_s13] sm:$0xff]  ;;  %v4571_v23 = vld [vmem:[%s3333_s13 + $0x10] sm:$0xff]  ;;  %v4570_v26 = vld [vmem:[%s3333_s13 + $0x8] sm:$0xff]  ;;  %s3592_s17 = scalar_lea.sflag [#allocation6], %s5226_s7  ;;  %s4817_s29 = sshra.s32 %s3607_s28, 4  ;;  %s4818_s29 = int_to_ptr.hbm [resolvable:$true] %s4817_s29 }
 0x7fc   : > { %3479 = vmatpush.bf16.msra.mxu0 %v4583_v15  ;;  %4716 = vmatpush.bf16.msra.mxu1 %v4583_v15  ;;  %v4573_v24 = vld [vmem:[%s3333_s13 + $0x20] sm:$0xff]  ;;  %v4575_v25 = vld [vmem:[%s3333_s13 + $0x30] sm:$0xff]  ;;  %v4572_v27 = vld [vmem:[%s3333_s13 + $0x18] sm:$0xff]  ;;  %s4819_s16 = scalar_lea.hbm %s4818_s29, 64  ;;  %s4823_s12 = scalar_lea.hbm %s5697_s6, 192 }
 0x7fd   : > { %4717 = vmatpush.bf16.msra.mxu2 %v4583_v15  ;;  %4718 = vmatpush.bf16.msra.mxu3 %v4583_v15  ;;  %v4574_v28 = vld [vmem:[%s3333_s13 + $0x28] sm:$0xff]  ;;  %v4576_v29 = vld [vmem:[%s3333_s13 + $0x38] sm:$0xff]  ;;  %v3358_v46 = vld [vmem:[#allocation2 + $0x40] sm:$0xff]  ;;  %p4820_p10 = scmp.ne.s32.totalorder %s4818_s29, %s4819_s16  ;;  %p4824_p13 = scmp.lt.s32.totalorder %s4818_s29, %s5697_s6 }
 0x7fe   : > { %v3362_v47 = vld [vmem:[#allocation2 + $0x60] sm:$0xff]  ;;  %v3363_v53 = vld [vmem:[#allocation2 + $0x70] sm:$0xff]  ;;  %v3352_v4 = vld [vmem:[#allocation2 + $0x58] sm:$0xff]  ;;  %p4825_p0 = scmp.lt.s32.totalorder %s4823_s12, %s4819_s16 }
 0x7ff   : > { %v3359_v52 = vld [vmem:[#allocation2 + $0x20] sm:$0xff]  ;;  %v3356_v5 = vld [vmem:[#allocation2 + $0x8] sm:$0xff]  ;;  %v3353_v6 = vld [vmem:[#allocation2 + $0x18] sm:$0xff]  ;;  %p4821_p11 = pnand %p4820_p10, %p4952_p6 }
 0x800   : > { %3480 = vmatpush.bf16.msra.mxu0 %v4582_v16  ;;  %4719 = vmatpush.bf16.msra.mxu1 %v4582_v16  ;;  %v3357_v7 = vld [vmem:[#allocation2 + $0x48] sm:$0xff]  ;;  %p4826_p1 = por %p4825_p0, %p4824_p13 }
 0x801   : > { %4720 = vmatpush.bf16.msra.mxu2 %v4582_v16  ;;  %4721 = vmatpush.bf16.msra.mxu3 %v4582_v16  ;;  %p4822_p12 = pneg %p4821_p11 }
 0x803   : > { %p4827_p2 = pnand %p4826_p1, %p4822_p12 }
 0x804   : > { %3481 = vmatpush.bf16.msra.mxu0 %v4581_v17  ;;  %4722 = vmatpush.bf16.msra.mxu1 %v4581_v17 }
 0x805   : > { %4723 = vmatpush.bf16.msra.mxu2 %v4581_v17  ;;  %4724 = vmatpush.bf16.msra.mxu3 %v4581_v17 }
 0x808   : > { %3482 = vmatpush.bf16.msra.mxu0 %v4580_v18  ;;  %4725 = vmatpush.bf16.msra.mxu1 %v4580_v18 }
 0x809   : > { %4726 = vmatpush.bf16.msra.mxu2 %v4580_v18  ;;  %4727 = vmatpush.bf16.msra.mxu3 %v4580_v18  ;;  %v3360_v18 = vld [vmem:[#allocation2 + $0x10] sm:$0xff] }
 0x80c   : > { %3483 = vmatpush.bf16.msra.mxu0 %v4579_v19  ;;  %4728 = vmatpush.bf16.msra.mxu1 %v4579_v19 }
 0x80d   : > { %4729 = vmatpush.bf16.msra.mxu2 %v4579_v19  ;;  %4730 = vmatpush.bf16.msra.mxu3 %v4579_v19  ;;  %v3364_v19 = vld [vmem:[#allocation2 + $0x78] sm:$0xff] }
 0x810   : > { %3484 = vmatpush.bf16.msra.mxu0 %v4578_v20  ;;  %4731 = vmatpush.bf16.msra.mxu1 %v4578_v20 }
 0x811   : > { %4732 = vmatpush.bf16.msra.mxu2 %v4578_v20  ;;  %4733 = vmatpush.bf16.msra.mxu3 %v4578_v20 }
 0x814   : > { %3485 = vmatpush.bf16.msra.mxu0 %v4577_v21  ;;  %4734 = vmatpush.bf16.msra.mxu1 %v4577_v21 }
 0x815   : > { %4735 = vmatpush.bf16.msra.mxu2 %v4577_v21  ;;  %4736 = vmatpush.bf16.msra.mxu3 %v4577_v21 }
 0x817   : > { %3486 = vmatmul.bf16.vlgmr.msra.gmra.mxu0 %v4569_v22  ;;  %3496 = vmatmul.bf16.vlgmr.msra.gmra.mxu1 %v4571_v23 }
 0x818   : > { %3506 = vmatmul.bf16.vlgmr.msra.gmra.mxu2 %v4573_v24  ;;  %3516 = vmatmul.bf16.vlgmr.msra.gmra.mxu3 %v4575_v25  ;;  %v3361_v24 = vld [vmem:[#allocation2 + $0x38] sm:$0xff]  ;;  %v3365_v25 = vld [vmem:[#allocation2 + $0x28] sm:$0xff] }
 0x827   : > { %3491 = vmatmul.bf16.gmra.mxu0 %v4570_v26  ;;  %3501 = vmatmul.bf16.gmra.mxu1 %v4572_v27 }
 0x828   : > { %3511 = vmatmul.bf16.gmra.mxu2 %v4574_v28  ;;  %3521 = vmatmul.bf16.gmra.mxu3 %v4576_v29 }
 0x894   : > { %v3487_v30 = vpop.f32.mrf.mxu0  ;;  %v3497_v31 = vpop.f32.mrf.mxu1 }
 0x895   : > { %v3527_v36 = vadd.f32 %v3487_v30, %v3350_v32  ;;  %v3531_v37 = vadd.f32 %v3497_v31, %v3354_v33 }
 0x897   : > { %v3543_v44 = vmax.f32 %v3527_v36, 0.0  ;;  %v3547_v45 = vmax.f32 %v3531_v37, 0.0 }
 0x89b   : > { %v3507_v38 = vpop.f32.mrf.mxu2  ;;  %v3517_v39 = vpop.f32.mrf.mxu3 }
 0x89c   : > { %v3489_v40 = vpop.f32.mrf.mxu0  ;;  %v3499_v41 = vpop.f32.mrf.mxu1  ;;  %v3535_v54 = vadd.f32 %v3507_v38, %v3358_v46  ;;  %v3539_v55 = vadd.f32 %v3517_v39, %v3362_v47 }
 0x89d   : > { %v3528_v42 = vadd.f32 %v3489_v40, %v3351_v34  ;;  %v3532_v43 = vadd.f32 %v3499_v41, %v3355_v35 }
 0x89e   : > { %v3551_v62 = vmax.f32 %v3535_v54, 0.0  ;;  %v3555_v63 = vmax.f32 %v3539_v55, 0.0 }
 0x89f   : > { %v3544_v48 = vmax.f32 %v3528_v42, 0.0  ;;  %v3548_v49 = vmax.f32 %v3532_v43, 0.0 }
 0x8a1   : > { %v4589_v50 = vpack.c.bf16 %v3544_v48, %v3543_v44  ;;  %v4599_v51 = vpack.c.bf16 %v3548_v49, %v3547_v45 }
 0x8a3   : > { %4590 = vst [vmem:[%s5244_s18] sm:$0xff] %v4589_v50   ;;  %v3509_v56 = vpop.f32.mrf.mxu2  ;;  %v3519_v57 = vpop.f32.mrf.mxu3 }
 0x8a4   : > { %4627 = vst [vmem:[%s5244_s18 + $0x10] sm:$0xff] %v4599_v51   ;;  %v3536_v58 = vadd.f32 %v3509_v56, %v3359_v52  ;;  %v3540_v59 = vadd.f32 %v3519_v57, %v3363_v53  ;;  %v3492_v60 = vpop.f32.mrf.mxu0  ;;  %v3502_v61 = vpop.f32.mrf.mxu1 }
 0x8a5   : > { %v3529_v8 = vadd.f32 %v3492_v60, %v3352_v4  ;;  %v3533_v9 = vadd.f32 %v3502_v61, %v3356_v5 }
 0x8a6   : > { %v3552_v0 = vmax.f32 %v3536_v58, 0.0  ;;  %v3556_v1 = vmax.f32 %v3540_v59, 0.0 }
 0x8a7   : > { %v3545_v16 = vmax.f32 %v3529_v8, 0.0  ;;  %v3549_v17 = vmax.f32 %v3533_v9, 0.0 }
 0x8a8   : > { %v4609_v2 = vpack.c.bf16 %v3552_v0, %v3551_v62  ;;  %v4619_v3 = vpack.c.bf16 %v3556_v1, %v3555_v63 }
 0x8aa   : > { %4629 = vst [vmem:[%s5244_s18 + $0x20] sm:$0xff] %v4609_v2  }
 0x8ab   : > { %4631 = vst [vmem:[%s5244_s18 + $0x30] sm:$0xff] %v4619_v3   ;;  %v3512_v10 = vpop.f32.mrf.mxu2  ;;  %v3522_v11 = vpop.f32.mrf.mxu3 }
 0x8ac   : > { %v3494_v12 = vpop.f32.mrf.mxu0  ;;  %v3504_v13 = vpop.f32.mrf.mxu1  ;;  %v3537_v26 = vadd.f32 %v3512_v10, %v3360_v18  ;;  %v3541_v27 = vadd.f32 %v3522_v11, %v3364_v19 }
 0x8ad   : > { %v3530_v14 = vadd.f32 %v3494_v12, %v3353_v6  ;;  %v3534_v15 = vadd.f32 %v3504_v13, %v3357_v7 }
 0x8ae   : > { %v3553_v32 = vmax.f32 %v3537_v26, 0.0  ;;  %v3557_v33 = vmax.f32 %v3541_v27, 0.0 }
 0x8af   : > { %v3546_v20 = vmax.f32 %v3530_v14, 0.0  ;;  %v3550_v21 = vmax.f32 %v3534_v15, 0.0 }
 0x8b1   : > { %v4594_v22 = vpack.c.bf16 %v3546_v20, %v3545_v16  ;;  %v4604_v23 = vpack.c.bf16 %v3550_v21, %v3549_v17 }
 0x8b3   : > { %4626 = vst [vmem:[%s5244_s18 + $0x8] sm:$0xff] %v4594_v22   ;;  %v3514_v28 = vpop.f32.mrf.mxu2  ;;  %v3524_v29 = vpop.f32.mrf.mxu3 }
 0x8b4   : > { %4628 = vst [vmem:[%s5244_s18 + $0x18] sm:$0xff] %v4604_v23   ;;  %v3538_v30 = vadd.f32 %v3514_v28, %v3361_v24  ;;  %v3542_v31 = vadd.f32 %v3524_v29, %v3365_v25 }
 0x8b6   : > { %v3554_v34 = vmax.f32 %v3538_v30, 0.0  ;;  %v3558_v35 = vmax.f32 %v3542_v31, 0.0 }
 0x8b8   : > { %v4614_v36 = vpack.c.bf16 %v3554_v34, %v3553_v32  ;;  %v4624_v37 = vpack.c.bf16 %v3558_v35, %v3557_v33 }
 0x8ba   : > { %4630 = vst [vmem:[%s5244_s18 + $0x28] sm:$0xff] %v4614_v36  }
 0x8bb   : > { %4632 = vst [vmem:[%s5244_s18 + $0x38] sm:$0xff] %v4624_v37  }
 0x8bc   : > { %4830 = shalt.err (!%p4827_p2)
}
 0x8bd   : > { %s4872_s7 = smov 64   ;;  %s4873_s18 = smov 4  }
 0x8be   : > { %4741 = dma.vmem_to_hbm [thread:$0]  (%p4952_p6), %s3605_s25, 1024, %s3607_s28, %s3592_s17, %s4872_s7, %s4872_s7, %s4873_s18  }
 0x8bf PF: > { %p4747_p3 = scmp.ge.s32.totalorder %s4865_s24, 2  ;;  %s3621_s15 = sand.u32 1, %s4853_s21  }
 0x8c0   : > { %s3622_s14 = scalar_lea.sflag [#allocation6], %s3621_s15 }
 0x8c1   : > { %p4744_p4 = pnand %p4747_p3, %p4956_p8 }
 0x8c3   : > { %p4745_p5 = pneg %p4744_p4 }
 0x8c5   : > { %4848 = dma.done.wait (%p4745_p5), %s3622_s14, 1024  }
 0x8c6   : > { %4850 = vsyncadd (%p4745_p5), %s3622_s14, 4294966272  ;;  %p16_p7 = scmp.ge.s32.totalorder %s4934_s27, 5   ;;  %s5703_s21 = smov %s4857_s22 }
 0x8c7   : > { %s5704_s22 = smov %s4861_s23  ;;  %s5705_s23 = smov %s4946_s30 }
 0x8c8   : > { %s5706_s24 = smov %s4934_s27  ;;  %18 = sbr.rel (!%p16_p7) target bundleno = 3 (0x3), region = 204 }
 0x8cd   :  { %3628 = vsyncpa [#allocation6], 1 }
 0x8ce   :  { %3630 = vsyncpa [#allocation6 + $0x1], 1 }

</bundles_post_ra>
